<compile_context>
chip_gen: v5e
topology: v5e:2x2
jax: 0.10.0
libtpu: 0.0.40
codegen_flags: <defaults>
</compile_context>

<pallas_src>
import jax
import jax.numpy as jnp
from jax.experimental import pallas as pl
from jax.experimental.pallas import tpu as pltpu


# ---------------------------------------------------------------------------
# Fused kernel (one grid step == one image):
#   x_ref  : (1, H, W, C)        input image tile (original dtype, e.g. f32)
#   w1_ref : (C, Cmid)           1x1 conv weight as matmul (bf16)
#   w2_ref : (9, Cmid, G)        3x3 conv weight, one (Cmid, G) slab per tap (bf16)
#   s1/b1  : (1, C)              folded BN1 scale / bias (f32)
#   s2/b2  : (1, Cmid)           folded BN2 scale / bias (f32)
#   o_ref  : (1, H, W, C+G)      output slab = concat(x, new features)
#   hp_ref : (H+2, W+2, Cmid)    VMEM scratch: zero-padded intermediate (bf16)
# ---------------------------------------------------------------------------
def _bottleneck_fused_kernel(x_ref, w1_ref, w2_ref, s1_ref, b1_ref, s2_ref,
                             b2_ref, o_ref, hp_ref):
    H, W = o_ref.shape[1], o_ref.shape[2]
    C = x_ref.shape[3]
    Cmid = hp_ref.shape[2]
    G = o_ref.shape[3] - C

    # ---- stage 1: relu(bn2( relu(bn1(x)) @ W1 )) ------------------------------
    x = x_ref[0]                                           # (H, W, C)
    xf = x.astype(jnp.float32).reshape(H * W, C)
    h = jnp.maximum(xf * s1_ref[...] + b1_ref[...], 0.0)   # BN1 + ReLU (f32, VPU)
    y = jnp.dot(h.astype(jnp.bfloat16), w1_ref[...],       # 1x1 conv (bf16 MXU, f32 acc)
                preferred_element_type=jnp.float32)
    h2 = jnp.maximum(y * s2_ref[...] + b2_ref[...], 0.0)   # BN2 + ReLU, (H*W, Cmid) f32

    # ---- zero-padded intermediate stays in VMEM (bf16 scratch) -----------------
    # Only the 1-wide halo border is zeroed (cheap, O(perimeter)); done every step
    # so correctness does not depend on scratch state from other grid steps/cores.
    zr = jnp.zeros((1, W + 2, Cmid), hp_ref.dtype)
    hp_ref[0:1, :, :] = zr                                  # top border row
    hp_ref[H + 1:H + 2, :, :] = zr                          # bottom border row
    zc = jnp.zeros((H, 1, Cmid), hp_ref.dtype)
    hp_ref[1:H + 1, 0:1, :] = zc                            # left border column
    hp_ref[1:H + 1, W + 1:W + 2, :] = zc                    # right border column
    hp_ref[1:H + 1, 1:W + 1, :] = h2.reshape(H, W, Cmid).astype(hp_ref.dtype)

    # ---- stage 2: 3x3 conv as 9 accumulating MXU dots (no patches tensor) ------
    acc = jnp.zeros((H * W, G), jnp.float32)
    for ky in range(3):                                     # static unroll: 9 taps
        for kx in range(3):
            tap = hp_ref[ky:ky + H, kx:kx + W, :].reshape(H * W, Cmid)   # bf16
            acc = acc + jnp.dot(tap, w2_ref[3 * ky + kx],
                                preferred_element_type=jnp.float32)

    # ---- channel concat written directly into the (C+G)-wide output slab -------
    # TODO(synk): offload this input->output copy to a DMA engine / stack-level alias.
    o_ref[0, :, :, :C] = x.astype(o_ref.dtype)
    o_ref[0, :, :, C:] = acc.reshape(H, W, G).astype(o_ref.dtype)


# ---------------------------------------------------------------------------
# Wrapper (keeps the PyTorch NCHW interface of the single block)
# ---------------------------------------------------------------------------
def bottleneck_forward(x_nchw, params):
    N, C, H, W = x_nchw.shape
    w1 = params["w1"].astype(jnp.bfloat16)                 # (C, Cmid)
    w2 = params["w2"]                                      # (3, 3, Cmid, G) HWIO
    Cmid = w1.shape[1]
    G = w2.shape[3]
    # one (Cmid, G) slab per tap, tap index = 3*ky + kx (matches kernel loop order)
    w2k = w2.reshape(9, Cmid, G).astype(jnp.bfloat16)

    s1 = params["s1"].reshape(1, C).astype(jnp.float32)
    b1 = params["b1"].reshape(1, C).astype(jnp.float32)
    s2 = params["s2"].reshape(1, Cmid).astype(jnp.float32)
    b2 = params["b2"].reshape(1, Cmid).astype(jnp.float32)

    # NHWC at the kernel boundary (a full DenseNet should stay NHWC end-to-end).
    x_nhwc = jnp.transpose(x_nchw, (0, 2, 3, 1))

    out_nhwc = pl.pallas_call(
        _bottleneck_fused_kernel,
        out_shape=jax.ShapeDtypeStruct((N, H, W, C + G), x_nchw.dtype),
        grid_spec=pltpu.PrefetchScalarGridSpec(
            num_scalar_prefetch=0,
            grid=(N,),
            in_specs=[
                pl.BlockSpec((1, H, W, C), lambda n: (n, 0, 0, 0)),
                pl.BlockSpec((C, Cmid), lambda n: (0, 0)),
                pl.BlockSpec((9, Cmid, G), lambda n: (0, 0, 0)),
                pl.BlockSpec((1, C), lambda n: (0, 0)),
                pl.BlockSpec((1, C), lambda n: (0, 0)),
                pl.BlockSpec((1, Cmid), lambda n: (0, 0)),
                pl.BlockSpec((1, Cmid), lambda n: (0, 0)),
            ],
            out_specs=pl.BlockSpec((1, H, W, C + G), lambda n: (n, 0, 0, 0)),
            scratch_shapes=[pltpu.VMEM((H + 2, W + 2, Cmid), jnp.bfloat16)],
        ),
        compiler_params=pltpu.CompilerParams(
            dimension_semantics=("parallel",),
            vmem_limit_bytes=32 * 1024 * 1024,   # raise v5e's 16 MiB default; safe on v6e/v7x
        ),
    )(x_nhwc, w1, w2k, s1, b1, s2, b2)

    return jnp.transpose(out_nhwc, (0, 3, 1, 2))


# ---------------------------------------------------------------------------
# Pure-JAX f32 reference (for correctness check)
# ---------------------------------------------------------------------------
def bottleneck_ref(x_nchw, params):
    x = jnp.transpose(x_nchw, (0, 2, 3, 1)).astype(jnp.float32)  # NHWC
    h = jnp.maximum(x * params["s1"] + params["b1"], 0.0)
    h = jnp.einsum("nhwc,cd->nhwd", h, params["w1"])
    h = jnp.maximum(h * params["s2"] + params["b2"], 0.0)
    out = jax.lax.conv_general_dilated(
        h, params["w2"], window_strides=(1, 1), padding="SAME",
        dimension_numbers=("NHWC", "HWIO", "NHWC"),
    )
    out = jnp.concatenate([x, out], axis=-1)
    return jnp.transpose(out, (0, 3, 1, 2))


# ---------------------------------------------------------------------------
# Deterministic parameter construction (mirrors Bottleneck.__init__ shapes)
# ---------------------------------------------------------------------------
def make_params(key, nChannels, growthRate):
    interChannels = 4 * growthRate
    ks = jax.random.split(key, 10)
    eps = 1e-5

    # conv1: (interC, nC, 1, 1) in PyTorch -> (nC, interC) matmul weight here
    w1 = jax.random.normal(ks[0], (nChannels, interChannels), jnp.float32) * 0.1
    # conv2: (growthRate, interC, 3, 3) in PyTorch -> (3, 3, interC, growthRate) HWIO here
    w2 = jax.random.normal(ks[1], (3, 3, interChannels, growthRate), jnp.float32) * 0.1

    # BN1 params (eval mode, folded)
    g1 = 1.0 + 0.1 * jax.random.normal(ks[2], (nChannels,), jnp.float32)
    be1 = 0.1 * jax.random.normal(ks[3], (nChannels,), jnp.float32)
    m1 = 0.1 * jax.random.normal(ks[4], (nChannels,), jnp.float32)
    v1 = jax.random.uniform(ks[5], (nChannels,), jnp.float32, 0.5, 1.5)
    s1 = g1 / jnp.sqrt(v1 + eps)
    b1 = be1 - m1 * s1

    # BN2 params (eval mode, folded)
    g2 = 1.0 + 0.1 * jax.random.normal(ks[6], (interChannels,), jnp.float32)
    be2 = 0.1 * jax.random.normal(ks[7], (interChannels,), jnp.float32)
    m2 = 0.1 * jax.random.normal(ks[8], (interChannels,), jnp.float32)
    v2 = jax.random.uniform(ks[9], (interChannels,), jnp.float32, 0.5, 1.5)
    s2 = g2 / jnp.sqrt(v2 + eps)
    b2 = be2 - m2 * s2

    return {"w1": w1, "w2": w2, "s1": s1, "b1": b1, "s2": s2, "b2": b2}


if __name__ == "__main__":
    key = jax.random.PRNGKey(0)
    k_x, k_p = jax.random.split(key)

    # Small but DenseNet-representative widths: growthRate=32 -> interChannels=128,
    # output channels = 128 + 32 = 160 (keeps the heavy lane ops 128-aligned).
    N, H, W = 2, 16, 16
    nChannels, growthRate = 128, 32

    x = jax.random.normal(k_x, (N, nChannels, H, W), jnp.float32)  # NCHW like PyTorch
    params = make_params(k_p, nChannels, growthRate)

    out = jax.block_until_ready(bottleneck_forward(x, params))
    ref = jax.block_until_ready(bottleneck_ref(x, params))

    assert out.shape == (N, nChannels + growthRate, H, W), out.shape
    # bf16 MXU operands with f32 accumulation vs. pure-f32 reference -> loose-ish tolerance.
    assert jnp.allclose(out, ref, atol=5e-2, rtol=5e-2), \
        f"mismatch vs JAX reference, max abs err = {float(jnp.max(jnp.abs(out - ref)))}"

    print("KERNEL_OK")
</pallas_src>

<mosaic_0001>
module attributes {stable_mosaic.version = 11 : i64} {
  func.func @_bottleneck_fused_kernel(%arg0: i32, %arg1: memref<1x16x16x128xf32, #tpu.memory_space<vmem>>, %arg2: memref<128x128xbf16, #tpu.memory_space<vmem>>, %arg3: memref<9x128x32xbf16, #tpu.memory_space<vmem>>, %arg4: memref<1x128xf32, #tpu.memory_space<vmem>>, %arg5: memref<1x128xf32, #tpu.memory_space<vmem>>, %arg6: memref<1x128xf32, #tpu.memory_space<vmem>>, %arg7: memref<1x128xf32, #tpu.memory_space<vmem>>, %arg8: memref<1x16x16x160xf32, #tpu.memory_space<vmem>>, %arg9: memref<18x18x128xbf16, #tpu.memory_space<vmem>>) attributes {dimension_semantics = [#tpu.dimension_semantics<parallel>], iteration_bounds = array<i64: 2>, scalar_prefetch = 0 : i64, scratch_operands = 1 : i64, tpu.core_type = #tpu.core_type<tc>, window_params = [{transform_indices = @transform_0, window_bounds = array<i64: 1, 16, 16, 128>}, {pipeline_mode = #tpu.pipeline_mode<synchronous>, transform_indices = @transform_1, window_bounds = array<i64: 128, 128>}, {pipeline_mode = #tpu.pipeline_mode<synchronous>, transform_indices = @transform_2, window_bounds = array<i64: 9, 128, 32>}, {pipeline_mode = #tpu.pipeline_mode<synchronous>, transform_indices = @transform_3, window_bounds = array<i64: 1, 128>}, {pipeline_mode = #tpu.pipeline_mode<synchronous>, transform_indices = @transform_4, window_bounds = array<i64: 1, 128>}, {pipeline_mode = #tpu.pipeline_mode<synchronous>, transform_indices = @transform_5, window_bounds = array<i64: 1, 128>}, {pipeline_mode = #tpu.pipeline_mode<synchronous>, transform_indices = @transform_6, window_bounds = array<i64: 1, 128>}, {transform_indices = @transform_7, window_bounds = array<i64: 1, 16, 16, 160>}]} {
    %c0 = arith.constant 0 : index
    %c0_0 = arith.constant 0 : index
    %c0_1 = arith.constant 0 : index
    %c0_2 = arith.constant 0 : index
    %0 = vector.load %arg1[%c0, %c0_0, %c0_1, %c0_2] : memref<1x16x16x128xf32, #tpu.memory_space<vmem>>, vector<1x16x16x128xf32>
    %1 = vector.shape_cast %0 : vector<1x16x16x128xf32> to vector<16x16x128xf32>
    %2 = vector.shape_cast %1 : vector<16x16x128xf32> to vector<256x128xf32>
    %c0_3 = arith.constant 0 : index
    %c0_4 = arith.constant 0 : index
    %3 = vector.load %arg4[%c0_3, %c0_4] : memref<1x128xf32, #tpu.memory_space<vmem>>, vector<1x128xf32>
    %4 = vector.broadcast %3 : vector<1x128xf32> to vector<256x128xf32>
    %5 = arith.mulf %2, %4 : vector<256x128xf32>
    %c0_5 = arith.constant 0 : index
    %c0_6 = arith.constant 0 : index
    %6 = vector.load %arg5[%c0_5, %c0_6] : memref<1x128xf32, #tpu.memory_space<vmem>>, vector<1x128xf32>
    %7 = vector.broadcast %6 : vector<1x128xf32> to vector<256x128xf32>
    %8 = arith.addf %5, %7 : vector<256x128xf32>
    %cst = arith.constant 0.000000e+00 : f32
    %9 = vector.broadcast %cst : f32 to vector<256x128xf32>
    %10 = arith.maximumf %8, %9 : vector<256x128xf32>
    %11 = arith.truncf %10 : vector<256x128xf32> to vector<256x128xbf16>
    %c0_7 = arith.constant 0 : index
    %c0_8 = arith.constant 0 : index
    %12 = vector.load %arg2[%c0_7, %c0_8] : memref<128x128xbf16, #tpu.memory_space<vmem>>, vector<128x128xbf16>
    %cst_9 = arith.constant dense<0.000000e+00> : vector<256x128xf32>
    %13 = tpu.matmul %11, %12, %cst_9 {dimension_numbers = #tpu.dot_dimension_numbers<[1], [0], [0], [1], [0, 0, 1, 1], [], []>} : vector<256x128xbf16>, vector<128x128xbf16>, vector<256x128xf32> -> vector<256x128xf32>
    %c0_10 = arith.constant 0 : index
    %c0_11 = arith.constant 0 : index
    %14 = vector.load %arg6[%c0_10, %c0_11] : memref<1x128xf32, #tpu.memory_space<vmem>>, vector<1x128xf32>
    %15 = vector.broadcast %14 : vector<1x128xf32> to vector<256x128xf32>
    %16 = arith.mulf %13, %15 : vector<256x128xf32>
    %c0_12 = arith.constant 0 : index
    %c0_13 = arith.constant 0 : index
    %17 = vector.load %arg7[%c0_12, %c0_13] : memref<1x128xf32, #tpu.memory_space<vmem>>, vector<1x128xf32>
    %18 = vector.broadcast %17 : vector<1x128xf32> to vector<256x128xf32>
    %19 = arith.addf %16, %18 : vector<256x128xf32>
    %cst_14 = arith.constant 0.000000e+00 : f32
    %20 = vector.broadcast %cst_14 : f32 to vector<256x128xf32>
    %21 = arith.maximumf %19, %20 : vector<256x128xf32>
    %cst_15 = arith.constant 0.000000e+00 : bf16
    %22 = vector.broadcast %cst_15 : bf16 to vector<1x18x128xbf16>
    %c0_16 = arith.constant 0 : index
    %c0_17 = arith.constant 0 : index
    %c0_18 = arith.constant 0 : index
    %23 = vector.load %arg9[%c0_16, %c0_17, %c0_18] : memref<18x18x128xbf16, #tpu.memory_space<vmem>>, vector<1x18x128xbf16>
    tpu.vector_store %arg9[%c0_16, %c0_17, %c0_18], %22 {strides = array<i32>} : memref<18x18x128xbf16, #tpu.memory_space<vmem>>, vector<1x18x128xbf16>,
    %c17 = arith.constant 17 : index
    %c0_19 = arith.constant 0 : index
    %c0_20 = arith.constant 0 : index
    %24 = vector.load %arg9[%c17, %c0_19, %c0_20] : memref<18x18x128xbf16, #tpu.memory_space<vmem>>, vector<1x18x128xbf16>
    tpu.vector_store %arg9[%c17, %c0_19, %c0_20], %22 {strides = array<i32>} : memref<18x18x128xbf16, #tpu.memory_space<vmem>>, vector<1x18x128xbf16>,
    %cst_21 = arith.constant 0.000000e+00 : bf16
    %25 = vector.broadcast %cst_21 : bf16 to vector<16x1x128xbf16>
    %c1 = arith.constant 1 : index
    %c0_22 = arith.constant 0 : index
    %c0_23 = arith.constant 0 : index
    %26 = vector.load %arg9[%c1, %c0_22, %c0_23] : memref<18x18x128xbf16, #tpu.memory_space<vmem>>, vector<16x1x128xbf16>
    tpu.vector_store %arg9[%c1, %c0_22, %c0_23], %25 {strides = array<i32>} : memref<18x18x128xbf16, #tpu.memory_space<vmem>>, vector<16x1x128xbf16>,
    %c1_24 = arith.constant 1 : index
    %c17_25 = arith.constant 17 : index
    %c0_26 = arith.constant 0 : index
    %27 = vector.load %arg9[%c1_24, %c17_25, %c0_26] : memref<18x18x128xbf16, #tpu.memory_space<vmem>>, vector<16x1x128xbf16>
    tpu.vector_store %arg9[%c1_24, %c17_25, %c0_26], %25 {strides = array<i32>} : memref<18x18x128xbf16, #tpu.memory_space<vmem>>, vector<16x1x128xbf16>,
    %28 = vector.shape_cast %21 : vector<256x128xf32> to vector<16x16x128xf32>
    %29 = arith.truncf %28 : vector<16x16x128xf32> to vector<16x16x128xbf16>
    %c1_27 = arith.constant 1 : index
    %c1_28 = arith.constant 1 : index
    %c0_29 = arith.constant 0 : index
    %30 = vector.load %arg9[%c1_27, %c1_28, %c0_29] : memref<18x18x128xbf16, #tpu.memory_space<vmem>>, vector<16x16x128xbf16>
    tpu.vector_store %arg9[%c1_27, %c1_28, %c0_29], %29 {strides = array<i32>} : memref<18x18x128xbf16, #tpu.memory_space<vmem>>, vector<16x16x128xbf16>,
    %cst_30 = arith.constant 0.000000e+00 : f32
    %31 = vector.broadcast %cst_30 : f32 to vector<256x32xf32>
    %c0_31 = arith.constant 0 : index
    %c0_32 = arith.constant 0 : index
    %c0_33 = arith.constant 0 : index
    %32 = vector.load %arg9[%c0_31, %c0_32, %c0_33] : memref<18x18x128xbf16, #tpu.memory_space<vmem>>, vector<16x16x128xbf16>
    %33 = vector.shape_cast %32 : vector<16x16x128xbf16> to vector<256x128xbf16>
    %c0_34 = arith.constant 0 : index
    %c0_35 = arith.constant 0 : index
    %c0_36 = arith.constant 0 : index
    %34 = vector.load %arg3[%c0_34, %c0_35, %c0_36] : memref<9x128x32xbf16, #tpu.memory_space<vmem>>, vector<1x128x32xbf16>
    %35 = vector.shape_cast %34 : vector<1x128x32xbf16> to vector<128x32xbf16>
    %cst_37 = arith.constant dense<0.000000e+00> : vector<256x32xf32>
    %36 = tpu.matmul %33, %35, %cst_37 {dimension_numbers = #tpu.dot_dimension_numbers<[1], [0], [0], [1], [0, 0, 1, 1], [], []>} : vector<256x128xbf16>, vector<128x32xbf16>, vector<256x32xf32> -> vector<256x32xf32>
    %37 = arith.addf %31, %36 : vector<256x32xf32>
    %c0_38 = arith.constant 0 : index
    %c1_39 = arith.constant 1 : index
    %c0_40 = arith.constant 0 : index
    %38 = vector.load %arg9[%c0_38, %c1_39, %c0_40] : memref<18x18x128xbf16, #tpu.memory_space<vmem>>, vector<16x16x128xbf16>
    %39 = vector.shape_cast %38 : vector<16x16x128xbf16> to vector<256x128xbf16>
    %c1_41 = arith.constant 1 : index
    %c0_42 = arith.constant 0 : index
    %c0_43 = arith.constant 0 : index
    %40 = vector.load %arg3[%c1_41, %c0_42, %c0_43] : memref<9x128x32xbf16, #tpu.memory_space<vmem>>, vector<1x128x32xbf16>
    %41 = vector.shape_cast %40 : vector<1x128x32xbf16> to vector<128x32xbf16>
    %cst_44 = arith.constant dense<0.000000e+00> : vector<256x32xf32>
    %42 = tpu.matmul %39, %41, %cst_44 {dimension_numbers = #tpu.dot_dimension_numbers<[1], [0], [0], [1], [0, 0, 1, 1], [], []>} : vector<256x128xbf16>, vector<128x32xbf16>, vector<256x32xf32> -> vector<256x32xf32>
    %43 = arith.addf %37, %42 : vector<256x32xf32>
    %c0_45 = arith.constant 0 : index
    %c2 = arith.constant 2 : index
    %c0_46 = arith.constant 0 : index
    %44 = vector.load %arg9[%c0_45, %c2, %c0_46] : memref<18x18x128xbf16, #tpu.memory_space<vmem>>, vector<16x16x128xbf16>
    %45 = vector.shape_cast %44 : vector<16x16x128xbf16> to vector<256x128xbf16>
    %c2_47 = arith.constant 2 : index
    %c0_48 = arith.constant 0 : index
    %c0_49 = arith.constant 0 : index
    %46 = vector.load %arg3[%c2_47, %c0_48, %c0_49] : memref<9x128x32xbf16, #tpu.memory_space<vmem>>, vector<1x128x32xbf16>
    %47 = vector.shape_cast %46 : vector<1x128x32xbf16> to vector<128x32xbf16>
    %cst_50 = arith.constant dense<0.000000e+00> : vector<256x32xf32>
    %48 = tpu.matmul %45, %47, %cst_50 {dimension_numbers = #tpu.dot_dimension_numbers<[1], [0], [0], [1], [0, 0, 1, 1], [], []>} : vector<256x128xbf16>, vector<128x32xbf16>, vector<256x32xf32> -> vector<256x32xf32>
    %49 = arith.addf %43, %48 : vector<256x32xf32>
    %c1_51 = arith.constant 1 : index
    %c0_52 = arith.constant 0 : index
    %c0_53 = arith.constant 0 : index
    %50 = vector.load %arg9[%c1_51, %c0_52, %c0_53] : memref<18x18x128xbf16, #tpu.memory_space<vmem>>, vector<16x16x128xbf16>
    %51 = vector.shape_cast %50 : vector<16x16x128xbf16> to vector<256x128xbf16>
    %c3 = arith.constant 3 : index
    %c0_54 = arith.constant 0 : index
    %c0_55 = arith.constant 0 : index
    %52 = vector.load %arg3[%c3, %c0_54, %c0_55] : memref<9x128x32xbf16, #tpu.memory_space<vmem>>, vector<1x128x32xbf16>
    %53 = vector.shape_cast %52 : vector<1x128x32xbf16> to vector<128x32xbf16>
    %cst_56 = arith.constant dense<0.000000e+00> : vector<256x32xf32>
    %54 = tpu.matmul %51, %53, %cst_56 {dimension_numbers = #tpu.dot_dimension_numbers<[1], [0], [0], [1], [0, 0, 1, 1], [], []>} : vector<256x128xbf16>, vector<128x32xbf16>, vector<256x32xf32> -> vector<256x32xf32>
    %55 = arith.addf %49, %54 : vector<256x32xf32>
    %c1_57 = arith.constant 1 : index
    %c1_58 = arith.constant 1 : index
    %c0_59 = arith.constant 0 : index
    %56 = vector.load %arg9[%c1_57, %c1_58, %c0_59] : memref<18x18x128xbf16, #tpu.memory_space<vmem>>, vector<16x16x128xbf16>
    %57 = vector.shape_cast %56 : vector<16x16x128xbf16> to vector<256x128xbf16>
    %c4 = arith.constant 4 : index
    %c0_60 = arith.constant 0 : index
    %c0_61 = arith.constant 0 : index
    %58 = vector.load %arg3[%c4, %c0_60, %c0_61] : memref<9x128x32xbf16, #tpu.memory_space<vmem>>, vector<1x128x32xbf16>
    %59 = vector.shape_cast %58 : vector<1x128x32xbf16> to vector<128x32xbf16>
    %cst_62 = arith.constant dense<0.000000e+00> : vector<256x32xf32>
    %60 = tpu.matmul %57, %59, %cst_62 {dimension_numbers = #tpu.dot_dimension_numbers<[1], [0], [0], [1], [0, 0, 1, 1], [], []>} : vector<256x128xbf16>, vector<128x32xbf16>, vector<256x32xf32> -> vector<256x32xf32>
    %61 = arith.addf %55, %60 : vector<256x32xf32>
    %c1_63 = arith.constant 1 : index
    %c2_64 = arith.constant 2 : index
    %c0_65 = arith.constant 0 : index
    %62 = vector.load %arg9[%c1_63, %c2_64, %c0_65] : memref<18x18x128xbf16, #tpu.memory_space<vmem>>, vector<16x16x128xbf16>
    %63 = vector.shape_cast %62 : vector<16x16x128xbf16> to vector<256x128xbf16>
    %c5 = arith.constant 5 : index
    %c0_66 = arith.constant 0 : index
    %c0_67 = arith.constant 0 : index
    %64 = vector.load %arg3[%c5, %c0_66, %c0_67] : memref<9x128x32xbf16, #tpu.memory_space<vmem>>, vector<1x128x32xbf16>
    %65 = vector.shape_cast %64 : vector<1x128x32xbf16> to vector<128x32xbf16>
    %cst_68 = arith.constant dense<0.000000e+00> : vector<256x32xf32>
    %66 = tpu.matmul %63, %65, %cst_68 {dimension_numbers = #tpu.dot_dimension_numbers<[1], [0], [0], [1], [0, 0, 1, 1], [], []>} : vector<256x128xbf16>, vector<128x32xbf16>, vector<256x32xf32> -> vector<256x32xf32>
    %67 = arith.addf %61, %66 : vector<256x32xf32>
    %c2_69 = arith.constant 2 : index
    %c0_70 = arith.constant 0 : index
    %c0_71 = arith.constant 0 : index
    %68 = vector.load %arg9[%c2_69, %c0_70, %c0_71] : memref<18x18x128xbf16, #tpu.memory_space<vmem>>, vector<16x16x128xbf16>
    %69 = vector.shape_cast %68 : vector<16x16x128xbf16> to vector<256x128xbf16>
    %c6 = arith.constant 6 : index
    %c0_72 = arith.constant 0 : index
    %c0_73 = arith.constant 0 : index
    %70 = vector.load %arg3[%c6, %c0_72, %c0_73] : memref<9x128x32xbf16, #tpu.memory_space<vmem>>, vector<1x128x32xbf16>
    %71 = vector.shape_cast %70 : vector<1x128x32xbf16> to vector<128x32xbf16>
    %cst_74 = arith.constant dense<0.000000e+00> : vector<256x32xf32>
    %72 = tpu.matmul %69, %71, %cst_74 {dimension_numbers = #tpu.dot_dimension_numbers<[1], [0], [0], [1], [0, 0, 1, 1], [], []>} : vector<256x128xbf16>, vector<128x32xbf16>, vector<256x32xf32> -> vector<256x32xf32>
    %73 = arith.addf %67, %72 : vector<256x32xf32>
    %c2_75 = arith.constant 2 : index
    %c1_76 = arith.constant 1 : index
    %c0_77 = arith.constant 0 : index
    %74 = vector.load %arg9[%c2_75, %c1_76, %c0_77] : memref<18x18x128xbf16, #tpu.memory_space<vmem>>, vector<16x16x128xbf16>
    %75 = vector.shape_cast %74 : vector<16x16x128xbf16> to vector<256x128xbf16>
    %c7 = arith.constant 7 : index
    %c0_78 = arith.constant 0 : index
    %c0_79 = arith.constant 0 : index
    %76 = vector.load %arg3[%c7, %c0_78, %c0_79] : memref<9x128x32xbf16, #tpu.memory_space<vmem>>, vector<1x128x32xbf16>
    %77 = vector.shape_cast %76 : vector<1x128x32xbf16> to vector<128x32xbf16>
    %cst_80 = arith.constant dense<0.000000e+00> : vector<256x32xf32>
    %78 = tpu.matmul %75, %77, %cst_80 {dimension_numbers = #tpu.dot_dimension_numbers<[1], [0], [0], [1], [0, 0, 1, 1], [], []>} : vector<256x128xbf16>, vector<128x32xbf16>, vector<256x32xf32> -> vector<256x32xf32>
    %79 = arith.addf %73, %78 : vector<256x32xf32>
    %c2_81 = arith.constant 2 : index
    %c2_82 = arith.constant 2 : index
    %c0_83 = arith.constant 0 : index
    %80 = vector.load %arg9[%c2_81, %c2_82, %c0_83] : memref<18x18x128xbf16, #tpu.memory_space<vmem>>, vector<16x16x128xbf16>
    %81 = vector.shape_cast %80 : vector<16x16x128xbf16> to vector<256x128xbf16>
    %c8 = arith.constant 8 : index
    %c0_84 = arith.constant 0 : index
    %c0_85 = arith.constant 0 : index
    %82 = vector.load %arg3[%c8, %c0_84, %c0_85] : memref<9x128x32xbf16, #tpu.memory_space<vmem>>, vector<1x128x32xbf16>
    %83 = vector.shape_cast %82 : vector<1x128x32xbf16> to vector<128x32xbf16>
    %cst_86 = arith.constant dense<0.000000e+00> : vector<256x32xf32>
    %84 = tpu.matmul %81, %83, %cst_86 {dimension_numbers = #tpu.dot_dimension_numbers<[1], [0], [0], [1], [0, 0, 1, 1], [], []>} : vector<256x128xbf16>, vector<128x32xbf16>, vector<256x32xf32> -> vector<256x32xf32>
    %85 = arith.addf %79, %84 : vector<256x32xf32>
    %c0_87 = arith.constant 0 : index
    %c0_88 = arith.constant 0 : index
    %c0_89 = arith.constant 0 : index
    %c0_90 = arith.constant 0 : index
    %86 = vector.load %arg8[%c0_87, %c0_88, %c0_89, %c0_90] : memref<1x16x16x160xf32, #tpu.memory_space<vmem>>, vector<1x16x16x128xf32>
    %87 = vector.shape_cast %86 : vector<1x16x16x128xf32> to vector<16x16x128xf32>
    %88 = vector.shape_cast %1 : vector<16x16x128xf32> to vector<1x16x16x128xf32>
    tpu.vector_store %arg8[%c0_87, %c0_88, %c0_89, %c0_90], %88 {strides = array<i32>} : memref<1x16x16x160xf32, #tpu.memory_space<vmem>>, vector<1x16x16x128xf32>,
    %89 = vector.shape_cast %85 : vector<256x32xf32> to vector<16x16x32xf32>
    %c0_91 = arith.constant 0 : index
    %c0_92 = arith.constant 0 : index
    %c0_93 = arith.constant 0 : index
    %c128 = arith.constant 128 : index
    %90 = vector.load %arg8[%c0_91, %c0_92, %c0_93, %c128] : memref<1x16x16x160xf32, #tpu.memory_space<vmem>>, vector<1x16x16x32xf32>
    %91 = vector.shape_cast %90 : vector<1x16x16x32xf32> to vector<16x16x32xf32>
    %92 = vector.shape_cast %89 : vector<16x16x32xf32> to vector<1x16x16x32xf32>
    tpu.vector_store %arg8[%c0_91, %c0_92, %c0_93, %c128], %92 {strides = array<i32>} : memref<1x16x16x160xf32, #tpu.memory_space<vmem>>, vector<1x16x16x32xf32>,
    return
  }
  func.func @transform_0(%arg0: i32) -> (i32, i32, i32, i32) {
    %c0_i32 = arith.constant 0 : i32
    %c0_i32_0 = arith.constant 0 : i32
    %c0_i32_1 = arith.constant 0 : i32
    %c0_i32_2 = arith.constant 0 : i32
    return %arg0, %c0_i32, %c0_i32_0, %c0_i32_1 : i32, i32, i32, i32
  }
  func.func @transform_1(%arg0: i32) -> (i32, i32) {
    %c0_i32 = arith.constant 0 : i32
    %c0_i32_0 = arith.constant 0 : i32
    %c0_i32_1 = arith.constant 0 : i32
    return %c0_i32, %c0_i32_0 : i32, i32
  }
  func.func @transform_2(%arg0: i32) -> (i32, i32, i32) {
    %c0_i32 = arith.constant 0 : i32
    %c0_i32_0 = arith.constant 0 : i32
    %c0_i32_1 = arith.constant 0 : i32
    %c0_i32_2 = arith.constant 0 : i32
    return %c0_i32, %c0_i32_0, %c0_i32_1 : i32, i32, i32
  }
  func.func @transform_3(%arg0: i32) -> (i32, i32) {
    %c0_i32 = arith.constant 0 : i32
    %c0_i32_0 = arith.constant 0 : i32
    %c0_i32_1 = arith.constant 0 : i32
    return %c0_i32, %c0_i32_0 : i32, i32
  }
  func.func @transform_4(%arg0: i32) -> (i32, i32) {
    %c0_i32 = arith.constant 0 : i32
    %c0_i32_0 = arith.constant 0 : i32
    %c0_i32_1 = arith.constant 0 : i32
    return %c0_i32, %c0_i32_0 : i32, i32
  }
  func.func @transform_5(%arg0: i32) -> (i32, i32) {
    %c0_i32 = arith.constant 0 : i32
    %c0_i32_0 = arith.constant 0 : i32
    %c0_i32_1 = arith.constant 0 : i32
    return %c0_i32, %c0_i32_0 : i32, i32
  }
  func.func @transform_6(%arg0: i32) -> (i32, i32) {
    %c0_i32 = arith.constant 0 : i32
    %c0_i32_0 = arith.constant 0 : i32
    %c0_i32_1 = arith.constant 0 : i32
    return %c0_i32, %c0_i32_0 : i32, i32
  }
  func.func @transform_7(%arg0: i32) -> (i32, i32, i32, i32) {
    %c0_i32 = arith.constant 0 : i32
    %c0_i32_0 = arith.constant 0 : i32
    %c0_i32_1 = arith.constant 0 : i32
    %c0_i32_2 = arith.constant 0 : i32
    return %arg0, %c0_i32, %c0_i32_0, %c0_i32_1 : i32, i32, i32, i32
  }
}

</mosaic_0001>

<bundles_post_ra>
// kernel: tpu_custom_call.1
= control target key start
LH: loop header
LB: loop body
LE: loop exit
PB: predicated region body
PF: predicated region fallthrough
CT: control target
= control target key end

     0   :  { %12 = vsyncpa [#allocation4], 0  ;;  %s8679_s0 = inlined_call_operand.vmem [shape: f32[2,16,16,128], index: 0, kind: input, shape index: {}]   ;;  %s8680_s1 = inlined_call_operand.vmem [shape: bf16[128,128], index: 1, kind: input, shape index: {}]   ;;  %s8681_s2 = inlined_call_operand.vmem [shape: bf16[9,128,32], index: 2, kind: input, shape index: {}]   ;;  %s8682_s3 = inlined_call_operand.vmem [shape: f32[1,128], index: 3, kind: input, shape index: {}]   ;;  %s8683_s4 = inlined_call_operand.vmem [shape: f32[1,128], index: 4, kind: input, shape index: {}]   ;;  %s8684_s5 = inlined_call_operand.vmem [shape: f32[1,128], index: 5, kind: input, shape index: {}]   ;;  %s8685_s6 = inlined_call_operand.vmem [shape: f32[1,128], index: 6, kind: input, shape index: {}]   ;;  %s8686_s7 = inlined_call_operand.hbm [shape: f32[2,16,16,160], index: 7, kind: output, shape index: {}]  }
   0x1   :  { %14 = vsyncpa [#allocation4 + $0x1], 0  ;;  %s6639_s24 = smov 0   ;;  %s6641_s25 = smov 0  }
   0x2   :  { %s6643_s26 = smov 0   ;;  %s6645_s27 = smov 0  }
   0x3 LB: > { %s6660_s28 = sadd.s32 4294967295, %s6594_s27   ;;  %s5567_s29 = sadd.s32 4294967294, %s6594_s27   ;;  %s6594_s27 = sphi %s6645_s27, %s8864_s27   ;;  %s6590_s26 = sphi %s6643_s26, %s8863_s26   ;;  %s6586_s25 = sphi %s6641_s25, %s8862_s25   ;;  %s6582_s24 = sphi %s6639_s24, %s8861_s24  }
   0x4   : > { %s6664_s30 = sadd.s32 1, %s6594_s27   ;;  %s179_s8 = sadd.s32 1, %s6590_s26 }
   0x5   : > { %s176_s9 = ssub.s32 %s6594_s27, %s6664_s30  ;;  %p189_p0 = scmp.ne.s32.totalorder %s6590_s26, %s6586_s25 }
   0x6   : > { %p177_p1 = scmp.eq.s32.totalorder %s176_s9, 0  ;;  %p190_p2 = scmp.eq.s32.totalorder %s6660_s28, 1 }
   0x7   : > { %p195_p3 = scmp.ne.s32.totalorder %s6586_s25, %s6582_s24  ;;  %p196_p4 = scmp.eq.s32.totalorder %s5567_s29, 1 }
   0x8   : > { %s6675_s10 = scalar_select %p177_p1, %s6590_s26, %s179_s8  }
   0x9   : > { %p6677_p5 = por %p190_p2, %p189_p0  ;;  %p6681_p6 = por %p196_p4, %p195_p3 }
   0xa   : > { %p5570_p7 = scmp.ge.s32.totalorder %s6594_s27, 1  ;;  %p240_p8 = scmp.lt.s32.totalorder %s6594_s27, 3 }
   0xc   : > { %p241_p9 = pnand %p5570_p7, %p240_p8 }
   0xe   : > { %244 = sbr.rel (%p241_p9) target bundleno = 1109 (0x455), region = 48 }
  0x13   : > { %v6275_v0 = vld [vmem:[%s8680_s1 + $0x38] sm:$0xff]  ;;  %p272_p10 = scmp.lt.s32.totalorder %s6660_s28, 1  ;;  %s269_s15 = sand.u32 1, %s6586_s25   ;;  %v6274_v1 = vld [vmem:[%s8680_s1 + $0x30] sm:$0xff]  ;;  %v6273_v2 = vld [vmem:[%s8680_s1 + $0x28] sm:$0xff]  ;;  %vm695_vm0 = vcmask 1040384  }
  0x14   : > { %494 = vmatpush.bf16.msra.mxu0 %v6275_v0  ;;  %6397 = vmatpush.bf16.msra.mxu2 %v6275_v0  ;;  %s5571_s19 = sshll.u32 %s269_s15, 9  ;;  %v6272_v6 = vld [vmem:[%s8680_s1 + $0x20] sm:$0xff]  ;;  %v6271_v11 = vld [vmem:[%s8680_s1 + $0x18] sm:$0xff]  ;;  %v6270_v18 = vld [vmem:[%s8680_s1 + $0x10] sm:$0xff]  ;;  %vm696_vm1 = vsmask.f32 256 }
  0x15   : > { %s273_s18 = scalar_select %p272_p10, %s6660_s28, 1  ;;  %v6725_v10 = vld [vmem:[%s8682_s3] ss:$0 sm:$0xff]  ;;  %v6269_v26 = vld [vmem:[%s8680_s1 + $0x8] sm:$0xff]  ;;  %vm6892_vm2 = vmand %vm695_vm0, %vm696_vm1  ;;  %vm746_vm3 = vsmask.f32 7938 }
  0x16   : > { %s6708_s9 = scalar_lea.vmem [#allocation3], %s5571_s19  ;;  %v6736_v14 = vld [vmem:[%s8683_s4] ss:$0 sm:$0xff]  ;;  %vm6913_vm4 = vmand %vm695_vm0, %vm746_vm3  ;;  %vm1328_vm5 = vsmask.f32 3328  ;;  %vm1150_vm8 = vcmask 1043456  }
  0x17   : > { %s6267_s20 = sshll.u32 %s273_s18, 8  ;;  %v6268_v31 = vld [vmem:[%s8680_s1] sm:$0xff]  ;;  %vm1329_vm6 = vsmask.f32 7440  ;;  %vm6984_vm9 = vmand %vm1150_vm8, %vm746_vm3  ;;  %vm828_vm10 = vsmask.f32 4368 }
  0x18   : > { %495 = vmatpush.bf16.msra.mxu0 %v6274_v1  ;;  %6398 = vmatpush.bf16.msra.mxu2 %v6274_v1  ;;  %s6704_s8 = scalar_lea.vmem %s8679_s0, %s6267_s20  ;;  %vm6942_vm7 = vmor %vm1328_vm5, %vm1329_vm6  ;;  %vm2214_vm12 = vcmask 1042432   ;;  %vm2215_vm13 = vcmask 1046532   ;;  %vm5456_vm15 = vcmask 261120   ;;  %s6396_s13 = sshll.u32 %s6660_s28, 9 }
  0x19   : > { %v278_v3 = vld [vmem:[%s6704_s8] sm:$0xff]  ;;  %v279_v4 = vld [vmem:[%s6704_s8 + $0x8] sm:$0xff]  ;;  %v280_v8 = vld [vmem:[%s6704_s8 + $0x10] sm:$0xff]  ;;  %s5501_s17 = scalar_lea.hbm %s8686_s7, %s6396_s13  ;;  %s5502_s18 = sshll.u32 %s6708_s9, 4  ;;  %s5503_s18 = int_to_ptr.vmem [resolvable:$true] %s5502_s18 }
  0x1a   : > { %5424 = vst [vmem:[%s6708_s9] sm:$0xff] %v278_v3  ;;  %v294_v5 = vld [vmem:[%s6704_s8 + $0x80] sm:$0xff]  ;;  %v295_v7 = vld [vmem:[%s6704_s8 + $0x88] sm:$0xff]  ;;  %v281_v9 = vld [vmem:[%s6704_s8 + $0x18] sm:$0xff]  ;;  %v314_v12 = vmul.f32 %v6725_v10, %v278_v3  ;;  %v315_v13 = vmul.f32 %v6725_v10, %v279_v4  ;;  %v316_v34 = vmul.f32 %v6725_v10, %v280_v8  ;;  %s5490_s28 = scalar_lea.sflag [#allocation4], %s269_s15  ;;  %s6552_s23 = scalar_lea.hbm %s8686_s7, 1024 }
  0x1b   : > { %5425 = vst [vmem:[%s6708_s9 + $0x10] sm:$0xff] %v279_v4  ;;  %v330_v15 = vmul.f32 %v6725_v10, %v294_v5  ;;  %v331_v16 = vmul.f32 %v6725_v10, %v295_v7  ;;  %v296_v17 = vld [vmem:[%s6704_s8 + $0x90] sm:$0xff]  ;;  %v297_v19 = vld [vmem:[%s6704_s8 + $0x98] sm:$0xff]  ;;  %v282_v20 = vld [vmem:[%s6704_s8 + $0x20] sm:$0xff]  ;;  %v317_v35 = vmul.f32 %v6725_v10, %v281_v9 }
  0x1c   : > { %496 = vmatpush.bf16.msra.mxu0 %v6273_v2  ;;  %6399 = vmatpush.bf16.msra.mxu2 %v6273_v2  ;;  %5440 = vst [vmem:[%s6708_s9 + $0x100] sm:$0xff] %v294_v5  ;;  %v283_v21 = vld [vmem:[%s6704_s8 + $0x28] sm:$0xff]  ;;  %v350_v22 = vadd.f32 %v6736_v14, %v314_v12  ;;  %v351_v23 = vadd.f32 %v6736_v14, %v315_v13  ;;  %v298_v38 = vld [vmem:[%s6704_s8 + $0xa0] sm:$0xff]  ;;  %v284_v40 = vld [vmem:[%s6704_s8 + $0x30] sm:$0xff] }
  0x1d   : > { %5441 = vst [vmem:[%s6708_s9 + $0x110] sm:$0xff] %v295_v7  ;;  %v366_v24 = vadd.f32 %v6736_v14, %v330_v15  ;;  %v367_v25 = vadd.f32 %v6736_v14, %v331_v16  ;;  %v332_v36 = vmul.f32 %v6725_v10, %v296_v17  ;;  %v333_v37 = vmul.f32 %v6725_v10, %v297_v19  ;;  %v299_v39 = vld [vmem:[%s6704_s8 + $0xa8] sm:$0xff]  ;;  %v285_v41 = vld [vmem:[%s6704_s8 + $0x38] sm:$0xff]  ;;  %v300_v56 = vld [vmem:[%s6704_s8 + $0xb0] sm:$0xff] }
  0x1e   : > { %5426 = vst [vmem:[%s6708_s9 + $0x20] sm:$0xff] %v280_v8  ;;  %v382_v27 = vmax.f32 %v350_v22, 0.0  ;;  %v383_v28 = vmax.f32 %v351_v23, 0.0  ;;  %v352_v42 = vadd.f32 %v6736_v14, %v316_v34  ;;  %v353_v43 = vadd.f32 %v6736_v14, %v317_v35  ;;  %v301_v57 = vld [vmem:[%s6704_s8 + $0xb8] sm:$0xff]  ;;  %v286_v58 = vld [vmem:[%s6704_s8 + $0x40] sm:$0xff]  ;;  %v287_v59 = vld [vmem:[%s6704_s8 + $0x48] sm:$0xff] }
  0x1f   : > { %5427 = vst [vmem:[%s6708_s9 + $0x30] sm:$0xff] %v281_v9  ;;  %v398_v29 = vmax.f32 %v366_v24, 0.0  ;;  %v399_v30 = vmax.f32 %v367_v25, 0.0  ;;  %v368_v44 = vadd.f32 %v6736_v14, %v332_v36  ;;  %v369_v45 = vadd.f32 %v6736_v14, %v333_v37  ;;  %v303_v12 = vld [vmem:[%s6704_s8 + $0xc8] sm:$0xff]  ;;  %v288_v13 = vld [vmem:[%s6704_s8 + $0x50] sm:$0xff]  ;;  %v289_v15 = vld [vmem:[%s6704_s8 + $0x58] sm:$0xff] }
  0x20   : > { %497 = vmatpush.bf16.msra.mxu0 %v6272_v6  ;;  %6400 = vmatpush.bf16.msra.mxu2 %v6272_v6  ;;  %5442 = vst [vmem:[%s6708_s9 + $0x120] sm:$0xff] %v296_v17  ;;  %v414_v32 = vpack.c.bf16 %v383_v28, %v382_v27  ;;  %v384_v46 = vmax.f32 %v352_v42, 0.0  ;;  %v385_v47 = vmax.f32 %v353_v43, 0.0  ;;  %v318_v52 = vmul.f32 %v6725_v10, %v282_v20  ;;  %vm6999_vm11 = vmor %vm696_vm1, %vm828_vm10 }
  0x21   : > { %5443 = vst [vmem:[%s6708_s9 + $0x130] sm:$0xff] %v297_v19  ;;  %v422_v33 = vpack.c.bf16 %v399_v30, %v398_v29  ;;  %v400_v48 = vmax.f32 %v368_v44, 0.0  ;;  %v401_v49 = vmax.f32 %v369_v45, 0.0  ;;  %v319_v53 = vmul.f32 %v6725_v10, %v283_v21  ;;  %v304_v30 = vld [vmem:[%s6704_s8 + $0xd0] sm:$0xff]  ;;  %vm7375_vm14 = vmor %vm2214_vm12, %vm2215_vm13 }
  0x22   : > { %5428 = vst [vmem:[%s6708_s9 + $0x40] sm:$0xff] %v282_v20  ;;  %v415_v50 = vpack.c.bf16 %v385_v47, %v384_v46  ;;  %v334_v54 = vmul.f32 %v6725_v10, %v298_v38  ;;  %v335_v55 = vmul.f32 %v6725_v10, %v299_v39  ;;  %v354_v60 = vadd.f32 %v6736_v14, %v318_v52 }
  0x23   : > { %5429 = vst [vmem:[%s6708_s9 + $0x50] sm:$0xff] %v283_v21  ;;  %v423_v51 = vpack.c.bf16 %v401_v49, %v400_v48  ;;  %v355_v61 = vadd.f32 %v6736_v14, %v319_v53  ;;  %v320_v6 = vmul.f32 %v6725_v10, %v284_v40  ;;  %v321_v7 = vmul.f32 %v6725_v10, %v285_v41  ;;  %v306_v48 = vld [vmem:[%s6704_s8 + $0xe0] sm:$0xff]  ;;  %v307_v49 = vld [vmem:[%s6704_s8 + $0xe8] sm:$0xff] }
  0x24   : > { %498 = vmatpush.bf16.msra.mxu0 %v6271_v11  ;;  %6401 = vmatpush.bf16.msra.mxu2 %v6271_v11  ;;  %5444 = vst [vmem:[%s6708_s9 + $0x140] sm:$0xff] %v298_v38  ;;  %v370_v62 = vadd.f32 %v6736_v14, %v334_v54  ;;  %v371_v63 = vadd.f32 %v6736_v14, %v335_v55  ;;  %v386_v0 = vmax.f32 %v354_v60, 0.0  ;;  %v302_v11 = vld [vmem:[%s6704_s8 + $0xc0] sm:$0xff] }
  0x25   : > { %5445 = vst [vmem:[%s6708_s9 + $0x150] sm:$0xff] %v299_v39  ;;  %v387_v1 = vmax.f32 %v355_v61, 0.0  ;;  %v336_v8 = vmul.f32 %v6725_v10, %v300_v56  ;;  %v337_v9 = vmul.f32 %v6725_v10, %v301_v57  ;;  %v356_v16 = vadd.f32 %v6736_v14, %v320_v6 }
  0x26   : > { %5430 = vst [vmem:[%s6708_s9 + $0x60] sm:$0xff] %v284_v40  ;;  %v402_v2 = vmax.f32 %v370_v62, 0.0  ;;  %v403_v3 = vmax.f32 %v371_v63, 0.0  ;;  %v357_v17 = vadd.f32 %v6736_v14, %v321_v7  ;;  %v323_v27 = vmul.f32 %v6725_v10, %v287_v59  ;;  %v6299_v62 = vld [vmem:[%s8681_s2 + $0x38] sm:$0xff] }
  0x27   : > { %5431 = vst [vmem:[%s6708_s9 + $0x70] sm:$0xff] %v285_v41  ;;  %v416_v4 = vpack.c.bf16 %v387_v1, %v386_v0  ;;  %v373_v19 = vadd.f32 %v6736_v14, %v337_v9  ;;  %v388_v20 = vmax.f32 %v356_v16, 0.0  ;;  %v338_v28 = vmul.f32 %v6725_v10, %v302_v11 }
  0x28   : > { %499 = vmatpush.bf16.msra.mxu0 %v6270_v18  ;;  %6402 = vmatpush.bf16.msra.mxu2 %v6270_v18  ;;  %5446 = vst [vmem:[%s6708_s9 + $0x160] sm:$0xff] %v300_v56  ;;  %v424_v5 = vpack.c.bf16 %v403_v3, %v402_v2  ;;  %v372_v18 = vadd.f32 %v6736_v14, %v336_v8  ;;  %v389_v21 = vmax.f32 %v357_v17, 0.0  ;;  %v6298_v3 = vld [vmem:[%s8681_s2 + $0x30] sm:$0xff] }
  0x29   : > { %5447 = vst [vmem:[%s6708_s9 + $0x170] sm:$0xff] %v301_v57  ;;  %v405_v23 = vmax.f32 %v373_v19, 0.0  ;;  %v339_v29 = vmul.f32 %v6725_v10, %v303_v12  ;;  %v359_v35 = vadd.f32 %v6736_v14, %v323_v27  ;;  %v374_v36 = vadd.f32 %v6736_v14, %v338_v28  ;;  %v6305_v28 = vld [vmem:[%s8681_s2 + $0x68] sm:$0xff] }
  0x2a   : > { %5432 = vst [vmem:[%s6708_s9 + $0x80] sm:$0xff] %v286_v58  ;;  %v404_v22 = vmax.f32 %v372_v18, 0.0  ;;  %v417_v24 = vpack.c.bf16 %v389_v21, %v388_v20  ;;  %v324_v44 = vmul.f32 %v6725_v10, %v288_v13  ;;  %v325_v45 = vmul.f32 %v6725_v10, %v289_v15  ;;  %v6306_v21 = vld [vmem:[%s8681_s2 + $0x70] sm:$0xff] }
  0x2b   : > { %5433 = vst [vmem:[%s6708_s9 + $0x90] sm:$0xff] %v287_v59  ;;  %v375_v37 = vadd.f32 %v6736_v14, %v339_v29  ;;  %v391_v39 = vmax.f32 %v359_v35, 0.0  ;;  %v406_v40 = vmax.f32 %v374_v36, 0.0  ;;  %v340_v46 = vmul.f32 %v6725_v10, %v304_v30  ;;  %v6294_v29 = vld [vmem:[%s8681_s2 + $0x10] sm:$0xff] }
  0x2c   : > { %500 = vmatpush.bf16.msra.mxu0 %v6269_v26  ;;  %6403 = vmatpush.bf16.msra.mxu2 %v6269_v26  ;;  %5448 = vst [vmem:[%s6708_s9 + $0x180] sm:$0xff] %v302_v11  ;;  %v425_v25 = vpack.c.bf16 %v405_v23, %v404_v22  ;;  %v322_v26 = vmul.f32 %v6725_v10, %v286_v58  ;;  %v308_v11 = vld [vmem:[%s6704_s8 + $0xf0] sm:$0xff]  ;;  %v6295_v22 = vld [vmem:[%s8681_s2 + $0x18] sm:$0xff] }
  0x2d   : > { %5449 = vst [vmem:[%s6708_s9 + $0x190] sm:$0xff] %v303_v12  ;;  %v407_v41 = vmax.f32 %v375_v37, 0.0  ;;  %v360_v52 = vadd.f32 %v6736_v14, %v324_v44  ;;  %v361_v53 = vadd.f32 %v6736_v14, %v325_v45  ;;  %v376_v54 = vadd.f32 %v6736_v14, %v340_v46  ;;  %v309_v12 = vld [vmem:[%s6704_s8 + $0xf8] sm:$0xff]  ;;  %v6304_v37 = vld [vmem:[%s8681_s2 + $0x60] sm:$0xff]  ;;  %v748_v45 = vld [vmem:[#allocation2 + $0x14] sm:$0x1] }
  0x2e   : > { %5434 = vst [vmem:[%s6708_s9 + $0xa0] sm:$0xff] %v288_v13  ;;  %v358_v34 = vadd.f32 %v6736_v14, %v322_v26  ;;  %v342_v1 = vmul.f32 %v6725_v10, %v306_v48  ;;  %v343_v2 = vmul.f32 %v6725_v10, %v307_v49  ;;  %v6296_v13 = vld [vmem:[%s8681_s2 + $0x20] sm:$0xff]  ;;  %v6339_v23 = vld [vmem:[%s8681_s2 + $0xf8] sm:$0xff]  ;;  %v344_v26 = vmul.f32 %v6725_v10, %v308_v11 }
  0x2f   : > { %5435 = vst [vmem:[%s6708_s9 + $0xb0] sm:$0xff] %v289_v15  ;;  %v426_v43 = vpack.c.bf16 %v407_v41, %v406_v40  ;;  %v392_v56 = vmax.f32 %v360_v52, 0.0  ;;  %v393_v57 = vmax.f32 %v361_v53, 0.0  ;;  %v408_v58 = vmax.f32 %v376_v54, 0.0  ;;  %v6303_v46 = vld [vmem:[%s8681_s2 + $0x58] sm:$0xff]  ;;  %v6302_v53 = vld [vmem:[%s8681_s2 + $0x50] sm:$0xff] }
  0x30   : > { %501 = vmatpush.bf16.msra.mxu0 %v6268_v31  ;;  %6404 = vmatpush.bf16.msra.mxu2 %v6268_v31  ;;  %v305_v31 = vld [vmem:[%s6704_s8 + $0xd8] sm:$0xff]  ;;  %5450 = vst [vmem:[%s6708_s9 + $0x1a0] sm:$0xff] %v304_v30  ;;  %v390_v38 = vmax.f32 %v358_v34, 0.0  ;;  %v378_v8 = vadd.f32 %v6736_v14, %v342_v1  ;;  %v379_v9 = vadd.f32 %v6736_v14, %v343_v2  ;;  %v6338_v30 = vld [vmem:[%s8681_s2 + $0xf0] sm:$0xff]  ;;  %v6596_v40 = vmov 0  }
  0x31   : > { %5451 = vst [vmem:[%s6708_s9 + $0x1b0] sm:$0xff] %v305_v31  ;;  %v341_v47 = vmul.f32 %v6725_v10, %v305_v31  ;;  %v419_v60 = vpack.c.bf16 %v393_v57, %v392_v56  ;;  %v345_v27 = vmul.f32 %v6725_v10, %v309_v12  ;;  %v698_v31 = vld [vmem:[#allocation2 + $0xc] sm:$0x1]  ;;  %v380_v35 = vadd.f32 %v6736_v14, %v344_v26  ;;  %v6335_v56 = vld [vmem:[%s8681_s2 + $0xd8] sm:$0xff] }
  0x32   : > { %v418_v42 = vpack.c.bf16 %v391_v39, %v390_v38  ;;  %5452 = vst [vmem:[%s6708_s9 + $0x1c0] sm:$0xff] %v306_v48  ;;  %v410_v17 = vmax.f32 %v378_v8, 0.0  ;;  %v411_v18 = vmax.f32 %v379_v9, 0.0  ;;  %v6293_v38 = vld [vmem:[%s8681_s2 + $0x8] sm:$0xff]  ;;  %v749_v48 = vsel %vm6913_vm4, 0, %v748_v45 }
  0x33   : > { %502 = vmatmul.bf16.vlgmr.msra.gmra.mxu0 %v414_v32  ;;  %542 = vmatmul.bf16.vlgmr.msra.gmra.mxu2 %v422_v33  ;;  %v290_v32 = vld [vmem:[%s6704_s8 + $0x60] sm:$0xff]  ;;  %v291_v33 = vld [vmem:[%s6704_s8 + $0x68] sm:$0xff]  ;;  %5453 = vst [vmem:[%s6708_s9 + $0x1d0] sm:$0xff] %v307_v49  ;;  %v377_v55 = vadd.f32 %v6736_v14, %v341_v47  ;;  %v381_v36 = vadd.f32 %v6736_v14, %v345_v27 }
  0x34   : > { %5436 = vst [vmem:[%s6708_s9 + $0xc0] sm:$0xff] %v290_v32  ;;  %v326_v63 = vmul.f32 %v6725_v10, %v290_v32  ;;  %2077 = vmatpush.bf16.msrb.mxu2 %v6299_v62  ;;  %v327_v0 = vmul.f32 %v6725_v10, %v291_v33  ;;  %v428_v20 = vpack.c.bf16 %v411_v18, %v410_v17  ;;  %v699_v32 = vsel %vm6892_vm2, 0, %v698_v31  ;;  %v6337_v39 = vld [vmem:[%s8681_s2 + $0xe8] sm:$0xff]  ;;  %v6292_v47 = vld [vmem:[%s8681_s2] sm:$0xff] }
  0x35   : > { %5437 = vst [vmem:[%s6708_s9 + $0xd0] sm:$0xff] %v291_v33  ;;  %v409_v59 = vmax.f32 %v377_v55, 0.0  ;;  %2772 = vmatpush.bf16.msrb.mxu0 %v6339_v23  ;;  %v413_v44 = vmax.f32 %v381_v36, 0.0  ;;  %v6336_v49 = vld [vmem:[%s8681_s2 + $0xe0] sm:$0xff] }
  0x36   : > { %v362_v6 = vadd.f32 %v6736_v14, %v326_v63  ;;  %v363_v7 = vadd.f32 %v6736_v14, %v327_v0  ;;  %5454 = vst [vmem:[%s6708_s9 + $0x1e0] sm:$0xff] %v308_v11  ;;  %v6301_v63 = vld [vmem:[%s8681_s2 + $0x48] sm:$0xff]  ;;  %v6334_v0 = vld [vmem:[%s8681_s2 + $0xd0] sm:$0xff]  ;;  %v6967_v23 = vld [vmem:[%s8685_s6] ss:$0 sm:$0xff] }
  0x37   : > { %v427_v61 = vpack.c.bf16 %v409_v59, %v408_v58  ;;  %5455 = vst [vmem:[%s6708_s9 + $0x1f0] sm:$0xff] %v309_v12  ;;  %v6300_v12 = vld [vmem:[%s8681_s2 + $0x40] sm:$0xff] }
  0x38   : > { %2078 = vmatpush.bf16.msrb.mxu2 %v6298_v3  ;;  %v394_v15 = vmax.f32 %v362_v6, 0.0  ;;  %v395_v16 = vmax.f32 %v363_v7, 0.0  ;;  %700 = vst [vmem:[#allocation2 + $0xc] sm:$0x1] %v699_v32 }
  0x39   : > { %2773 = vmatpush.bf16.msrb.mxu0 %v6338_v30  ;;  %687 = vst [vmem:[#allocation2] sm:$0xf] %v6596_v40 }
  0x3a   : > { %v420_v19 = vpack.c.bf16 %v395_v16, %v394_v15  ;;  %688 = vst [vmem:[#allocation2 + $0x4] sm:$0xf] %v6596_v40 }
  0x3b   : > { %689 = vst [vmem:[#allocation2 + $0x8] sm:$0x1] %v6596_v40 }
  0x3c   : > { %691 = vst [vmem:[#allocation2 + $0xcc] sm:$0xf] %v6596_v40 }
  0x3d   : > { %2774 = vmatpush.bf16.msrb.mxu0 %v6337_v39  ;;  %692 = vst [vmem:[#allocation2 + $0xd0] sm:$0xf] %v6596_v40 }
  0x3e   : > { %750 = vst [vmem:[#allocation2 + $0x14] sm:$0x1] %v749_v48 }
  0x3f   : > { %693 = vst [vmem:[#allocation2 + $0xd4] sm:$0x1] %v6596_v40 }
  0x40   : > { %v1264_v52 = vld [vmem:[#allocation2] sm:$0xf] }
  0x41   : > { %2775 = vmatpush.bf16.msrb.mxu0 %v6336_v49  ;;  %v1332_v54 = vshrl.u32 %v1264_v52, 16  ;;  %v1335_v55 = vshll.u32 %v1264_v52, 16  ;;  %v1265_v57 = vld [vmem:[#allocation2 + $0x4] sm:$0xf]  ;;  %v1152_v49 = vld [vmem:[#allocation2 + $0xc] sm:$0xf] }
  0x42   : > { %v1312_v62 = vld [vmem:[#allocation2 + $0x8] sm:$0x1] }
  0x43   : > { %507 = vmatmul.bf16.gmra.mxu0 %v415_v50  ;;  %547 = vmatmul.bf16.gmra.mxu2 %v423_v51  ;;  %v292_v50 = vld [vmem:[%s6704_s8 + $0x70] sm:$0xff]  ;;  %v293_v51 = vld [vmem:[%s6704_s8 + $0x78] sm:$0xff]  ;;  %v1334_v58 = vrot.slane %v1332_v54, 4  ;;  %v1337_v59 = vrot.slane %v1335_v55, 5  ;;  %v754_v54 = vld [vmem:[#allocation2 + $0x2c] sm:$0x1] }
  0x44   : > { %5438 = vst [vmem:[%s6708_s9 + $0xe0] sm:$0xff] %v292_v50  ;;  %s5504_s8 = sshll.u32 %s5501_s17, 4  ;;  %s5505_s8 = int_to_ptr.hbm [resolvable:$true] %s5504_s8 }
  0x45   : > { %5439 = vst [vmem:[%s6708_s9 + $0xf0] sm:$0xff] %v293_v51  ;;  %2776 = vmatpush.bf16.msrb.mxu0 %v6335_v56  ;;  %v1338_v1 = vor.u32 %v1337_v59, %v1334_v58  ;;  %s6546_s19 = sshra.s32 %s5505_s8, 4  ;;  %s6547_s19 = int_to_ptr.hbm [resolvable:$true] %s6546_s19 }
  0x46   : > { %s6548_s20 = scalar_lea.hbm %s6547_s19, 512  ;;  %p6553_p0 = scmp.lt.s32.totalorder %s6547_s19, %s8686_s7 }
  0x47   : > { %v1339_v7 = vrot.slane %v1338_v1, 4  ;;  %p6549_p11 = scmp.ne.s32.totalorder %s6547_s19, %s6548_s20  ;;  %p6554_p1 = scmp.lt.s32.totalorder %s6552_s23, %s6548_s20 }
  0x49   : > { %2777 = vmatpush.bf16.msrb.mxu0 %v6334_v0  ;;  %p6550_p12 = pnand %p6549_p11, %p6677_p5  ;;  %p6555_p2 = por %p6554_p1, %p6553_p0 }
  0x4b   : > { %p6551_p13 = pneg %p6550_p12 }
  0x4d   : > { %p6556_p3 = pnand %p6555_p2, %p6551_p13 }
  0x53   : > { %512 = vmatmul.bf16.gmra.mxu0 %v416_v4  ;;  %552 = vmatmul.bf16.gmra.mxu2 %v424_v5  ;;  %v6307_v4 = vld [vmem:[%s8681_s2 + $0x78] sm:$0xff]  ;;  %v6297_v5 = vld [vmem:[%s8681_s2 + $0x28] sm:$0xff] }
  0x54   : > { %1844 = vmatpush.bf16.msra.mxu1 %v6307_v4  ;;  %6405 = vmatpush.bf16.msra.mxu3 %v6307_v4  ;;  %v1351_v4 = vshll.u32 %v1312_v62, 16  ;;  %v755_v62 = vsel %vm6913_vm4, 0, %v754_v54 }
  0x55   : > { %2079 = vmatpush.bf16.msrb.mxu2 %v6297_v5  ;;  %v701_v5 = vld [vmem:[#allocation2 + $0x18] sm:$0x1]  ;;  %756 = vst [vmem:[#allocation2 + $0x2c] sm:$0x1] %v755_v62 }
  0x56   : > { %v702_v6 = vsel %vm6892_vm2, 0, %v701_v5  ;;  %v1353_v11 = vrot.slane %v1351_v4, 5 }
  0x57   : > { %703 = vst [vmem:[#allocation2 + $0x18] sm:$0x1] %v702_v6 }
  0x58   : > { %1845 = vmatpush.bf16.msra.mxu1 %v6306_v21  ;;  %6406 = vmatpush.bf16.msra.mxu3 %v6306_v21  ;;  %v6332_v21 = vld [vmem:[%s8681_s2 + $0xc0] sm:$0xff] }
  0x59   : > { %2080 = vmatpush.bf16.msrb.mxu2 %v6296_v13  ;;  %v6333_v13 = vld [vmem:[%s8681_s2 + $0xc8] sm:$0xff] }
  0x5a   : > { %2778 = vmatpush.bf16.msrb.mxu0 %v6333_v13  ;;  %v1156_v13 = vld [vmem:[#allocation2 + $0x14] sm:$0x1] }
  0x5c   : > { %1846 = vmatpush.bf16.msra.mxu1 %v6305_v28  ;;  %6407 = vmatpush.bf16.msra.mxu3 %v6305_v28  ;;  %v722_v28 = vld [vmem:[#allocation2 + $0x6c] sm:$0x1] }
  0x5d   : > { %2081 = vmatpush.bf16.msrb.mxu2 %v6295_v22  ;;  %v751_v22 = vld [vmem:[#allocation2 + $0x20] sm:$0x1]  ;;  %v723_v30 = vsel %vm6892_vm2, 0, %v722_v28 }
  0x5e   : > { %2779 = vmatpush.bf16.msrb.mxu0 %v6332_v21  ;;  %724 = vst [vmem:[#allocation2 + $0x6c] sm:$0x1] %v723_v30 }
  0x60   : > { %1847 = vmatpush.bf16.msra.mxu1 %v6304_v37  ;;  %6408 = vmatpush.bf16.msra.mxu3 %v6304_v37 }
  0x61   : > { %2082 = vmatpush.bf16.msrb.mxu2 %v6294_v29 }
  0x63   : > { %517 = vmatmul.bf16.gmra.mxu0 %v417_v24  ;;  %557 = vmatmul.bf16.gmra.mxu2 %v425_v25  ;;  %v328_v24 = vmul.f32 %v6725_v10, %v292_v50  ;;  %v329_v25 = vmul.f32 %v6725_v10, %v293_v51 }
  0x64   : > { %1848 = vmatpush.bf16.msra.mxu1 %v6303_v46  ;;  %6409 = vmatpush.bf16.msra.mxu3 %v6303_v46 }
  0x65   : > { %v364_v33 = vadd.f32 %v6736_v14, %v328_v24  ;;  %v365_v34 = vadd.f32 %v6736_v14, %v329_v25  ;;  %2083 = vmatpush.bf16.msrb.mxu2 %v6293_v38  ;;  %v6276_v24 = vld [vmem:[#allocation2] sm:$0xff]  ;;  %v752_v25 = vsel %vm6913_vm4, 0, %v751_v22 }
  0x66   : > { %753 = vst [vmem:[#allocation2 + $0x20] sm:$0x1] %v752_v25 }
  0x67   : > { %v396_v41 = vmax.f32 %v364_v33, 0.0  ;;  %v397_v14 = vmax.f32 %v365_v34, 0.0  ;;  %v704_v34 = vld [vmem:[#allocation2 + $0x24] sm:$0x1] }
  0x68   : > { %1849 = vmatpush.bf16.msra.mxu1 %v6302_v53  ;;  %6410 = vmatpush.bf16.msra.mxu3 %v6302_v53  ;;  %v705_v37 = vsel %vm6892_vm2, 0, %v704_v34 }
  0x69   : > { %v421_v50 = vpack.c.bf16 %v397_v14, %v396_v41  ;;  %2084 = vmatpush.bf16.msrb.mxu2 %v6292_v47  ;;  %706 = vst [vmem:[#allocation2 + $0x24] sm:$0x1] %v705_v37  ;;  %v772_v14 = vld [vmem:[#allocation2 + $0x74] sm:$0x1]  ;;  %v775_v37 = vld [vmem:[#allocation2 + $0x80] sm:$0x1] }
  0x6c   : > { %1850 = vmatpush.bf16.msra.mxu1 %v6301_v63  ;;  %6411 = vmatpush.bf16.msra.mxu3 %v6301_v63 }
  0x70   : > { %1851 = vmatpush.bf16.msra.mxu1 %v6300_v12  ;;  %6412 = vmatpush.bf16.msra.mxu3 %v6300_v12 }
  0x73   : > { %522 = vmatmul.bf16.gmra.mxu0 %v418_v42  ;;  %562 = vmatmul.bf16.gmra.mxu2 %v426_v43  ;;  %v412_v43 = vmax.f32 %v380_v35, 0.0  ;;  %v6340_v42 = vld [vmem:[%s8681_s2 + $0x100] sm:$0xff] }
  0x75   : > { %v429_v51 = vpack.c.bf16 %v413_v44, %v412_v43  ;;  %v773_v43 = vsel %vm6913_vm4, 0, %v772_v14 }
  0x76   : > { %774 = vst [vmem:[#allocation2 + $0x74] sm:$0x1] %v773_v43 }
  0x83   : > { %527 = vmatmul.bf16.gmra.mxu0 %v419_v60  ;;  %567 = vmatmul.bf16.gmra.mxu2 %v427_v61  ;;  %v1341_v60 = vshll.u32 %v1265_v57, 16  ;;  %v1345_v61 = vshrl.u32 %v1265_v57, 16 }
  0x85   : > { %v1343_v2 = vrot.slane %v1341_v60, 5  ;;  %v1347_v3 = vrot.slane %v1345_v61, 4  ;;  %v725_v61 = vld [vmem:[#allocation2 + $0x78] sm:$0x1] }
  0x86   : > { %v726_v4 = vsel %vm6892_vm2, 0, %v725_v61 }
  0x87   : > { %v1348_v9 = vor.u32 %v1347_v3, %v1343_v2  ;;  %v1344_v15 = vsel %vm6942_vm7, %v1339_v7, %v1343_v2  ;;  %v1208_v2 = vld [vmem:[#allocation2 + $0x6c] sm:$0xf]  ;;  %727 = vst [vmem:[#allocation2 + $0x78] sm:$0x1] %v726_v4 }
  0x88   : > { %v1732_v17 = vunpack.c.l.b16 %v1344_v15 }
  0x89   : > { %v1349_v16 = vrot.slane %v1348_v9, 4 }
  0x8b   : > { %v1354_v18 = vsel %vm6942_vm7, %v1349_v16, %v1353_v11 }
  0x93   : > { %532 = vmatmul.bf16.gmra.mxu0 %v420_v19  ;;  %572 = vmatmul.bf16.gmra.mxu2 %v428_v20  ;;  %v6959_v19 = vld [vmem:[%s8684_s5] ss:$0 sm:$0xff]  ;;  %v1733_v20 = vunpack.c.l.b16 %v1354_v18 }
  0x95   : > { %v1764_v26 = vpack.c.b16 %v1733_v20, %v1732_v17 }
  0x97   : > { %1852 = vmatmul.bf16.vlgmr.msra.gmra.mxu1 %v1764_v26 }
  0xa3   : > { %537 = vmatmul.bf16.gmra.mxu0 %v421_v50  ;;  %577 = vmatmul.bf16.gmra.mxu2 %v429_v51 }
  0xb0   : > { %v503_v27 = vpop.f32.mrf.mxu0 }
  0xb1   : > { %v587_v29 = vmul.f32 %v6959_v19, %v503_v27 }
  0xb3   : > { %v623_v31 = vadd.f32 %v6967_v23, %v587_v29  ;;  %2085 = vmatmul.bf16.vlgmr.msrb.gmra.mxu2 %v6276_v24 }
  0xb5   : > { %v655_v32 = vmax.f32 %v623_v31, 0.0 }
  0xb6   : > { %v543_v33 = vpop.f32.mrf.mxu2 }
  0xb7   : > { %v796_v35 = vpack.c.bf16 %v655_v32, %v655_v32  ;;  %v603_v36 = vmul.f32 %v6959_v19, %v543_v33 }
  0xb8   : > { %v505_v38 = vpop.f32.mrf.mxu0 }
  0xb9   : > { %v831_v39 = vshrl.u32 %v796_v35, 16  ;;  %v588_v40 = vmul.f32 %v6959_v19, %v505_v38  ;;  %v639_v41 = vadd.f32 %v6967_v23, %v603_v36  ;;  %v834_v45 = vshll.u32 %v796_v35, 16 }
  0xbb   : > { %v833_v44 = vrot.slane %v831_v39, 7  ;;  %v624_v46 = vadd.f32 %v6967_v23, %v588_v40  ;;  %v671_v47 = vmax.f32 %v639_v41, 0.0  ;;  %v1212_v39 = vld [vmem:[#allocation2 + $0x74] sm:$0x1]  ;;  %v776_v40 = vsel %vm6913_vm4, 0, %v775_v37 }
  0xbc   : > { %777 = vst [vmem:[#allocation2 + $0x80] sm:$0x1] %v776_v40 }
  0xbd   : > { %v836_v50 = vor.u32 %v834_v45, %v833_v44  ;;  %v656_v51 = vmax.f32 %v624_v46, 0.0  ;;  %v812_v52 = vpack.c.bf16 %v671_v47, %v671_v47  ;;  %v837_v11 = vrot.slane %v833_v44, 4  ;;  %v707_v46 = vld [vmem:[#allocation2 + $0x30] sm:$0x1]  ;;  %v1159_v47 = vld [vmem:[#allocation2 + $0x18] sm:$0xf] }
  0xbe   : > { %v545_v53 = vpop.f32.mrf.mxu2  ;;  %v708_v61 = vsel %vm6892_vm2, 0, %v707_v46  ;;  %v757_v46 = vld [vmem:[#allocation2 + $0x38] sm:$0x1] }
  0xbf   : > { %v1153_v55 = vsel %vm6984_vm9, %v836_v50, %v1152_v49  ;;  %v797_v56 = vpack.c.bf16 %v656_v51, %v656_v51  ;;  %v967_v57 = vshrl.u32 %v812_v52, 16  ;;  %v970_v58 = vshll.u32 %v812_v52, 16  ;;  %709 = vst [vmem:[#allocation2 + $0x30] sm:$0x1] %v708_v61 }
  0xc0   : > { %1154 = vst [vmem:[#allocation2 + $0xc] sm:$0xf] %v1153_v55  ;;  %v508_v59 = vpop.f32.mrf.mxu0  ;;  %v604_v60 = vmul.f32 %v6959_v19, %v545_v53 }
  0xc1   : > { %v839_v63 = vshrl.u32 %v797_v56, 16  ;;  %v589_v0 = vmul.f32 %v6959_v19, %v508_v59  ;;  %v969_v1 = vrot.slane %v967_v57, 7  ;;  %v842_v6 = vshll.u32 %v797_v56, 16 }
  0xc2   : > { %v640_v3 = vadd.f32 %v6967_v23, %v604_v60 }
  0xc3   : > { %v841_v5 = vrot.slane %v839_v63, 7  ;;  %v625_v7 = vadd.f32 %v6967_v23, %v589_v0  ;;  %v972_v9 = vor.u32 %v970_v58, %v969_v1  ;;  %v973_v29 = vrot.slane %v969_v1, 4 }
  0xc4   : > { %v672_v15 = vmax.f32 %v640_v3, 0.0 }
  0xc5   : > { %v844_v16 = vor.u32 %v842_v6, %v841_v5  ;;  %v846_v17 = vrot.slane %v841_v5, 4  ;;  %v657_v18 = vmax.f32 %v625_v7, 0.0  ;;  %v1209_v20 = vsel %vm6984_vm9, %v972_v9, %v1208_v2 }
  0xc6   : > { %1210 = vst [vmem:[#allocation2 + $0x6c] sm:$0xf] %v1209_v20  ;;  %v813_v21 = vpack.c.bf16 %v672_v15, %v672_v15  ;;  %v548_v22 = vpop.f32.mrf.mxu2 }
  0xc7   : > { %v845_v24 = vsel %vm6999_vm11, %v837_v11, %v844_v16  ;;  %v1157_v25 = vsel %vm6892_vm2, %v846_v17, %v1156_v13  ;;  %v798_v26 = vpack.c.bf16 %v657_v18, %v657_v18  ;;  %v605_v27 = vmul.f32 %v6959_v19, %v548_v22  ;;  %v1266_v28 = vld [vmem:[#allocation2 + $0xc] sm:$0xf]  ;;  %v1215_v16 = vld [vmem:[#allocation2 + $0x78] sm:$0xf] }
  0xc8   : > { %1155 = vst [vmem:[#allocation2 + $0x10] sm:$0xf] %v845_v24  ;;  %v510_v30 = vpop.f32.mrf.mxu0  ;;  %v975_v31 = vshrl.u32 %v813_v21, 16  ;;  %v978_v32 = vshll.u32 %v813_v21, 16  ;;  %v1356_v41 = vshrl.u32 %v1266_v28, 16  ;;  %v1359_v14 = vshll.u32 %v1266_v28, 16 }
  0xc9   : > { %1158 = vst [vmem:[#allocation2 + $0x14] sm:$0x1] %v1157_v25  ;;  %v848_v33 = vshrl.u32 %v798_v26, 16  ;;  %v851_v34 = vshll.u32 %v798_v26, 16  ;;  %v590_v35 = vmul.f32 %v6959_v19, %v510_v30  ;;  %v641_v36 = vadd.f32 %v6967_v23, %v605_v27  ;;  %v1163_v27 = vld [vmem:[#allocation2 + $0x20] sm:$0x1] }
  0xca   : > { %v977_v38 = vrot.slane %v975_v31, 7  ;;  %v1358_v51 = vrot.slane %v1356_v41, 4  ;;  %v1361_v52 = vrot.slane %v1359_v14, 5  ;;  %v728_v41 = vld [vmem:[#allocation2 + $0x84] sm:$0x1] }
  0xcb   : > { %v7014_v43 = vrot.slane %v848_v33, 7  ;;  %v626_v44 = vadd.f32 %v6967_v23, %v590_v35  ;;  %v673_v45 = vmax.f32 %v641_v36, 0.0 }
  0xcc   : > { %v980_v49 = vor.u32 %v978_v32, %v977_v38  ;;  %v982_v50 = vrot.slane %v977_v38, 4  ;;  %v1362_v60 = vor.u32 %v1361_v52, %v1358_v51 }
  0xcd   : > { %v853_v53 = vor.u32 %v851_v34, %v7014_v43  ;;  %v854_v54 = vrot.slane %v7014_v43, 4  ;;  %v658_v55 = vmax.f32 %v626_v44, 0.0  ;;  %v814_v56 = vpack.c.bf16 %v673_v45, %v673_v45 }
  0xce   : > { %v981_v57 = vsel %vm6999_vm11, %v973_v29, %v980_v49  ;;  %v1213_v58 = vsel %vm6892_vm2, %v982_v50, %v1212_v39  ;;  %v550_v59 = vpop.f32.mrf.mxu2  ;;  %v1363_v18 = vrot.slane %v1362_v60, 4 }
  0xcf   : > { %v1160_v62 = vsel %vm6984_vm9, %v853_v53, %v1159_v47  ;;  %v799_v63 = vpack.c.bf16 %v658_v55, %v658_v55  ;;  %1211 = vst [vmem:[#allocation2 + $0x70] sm:$0xf] %v981_v57  ;;  %v6277_v0 = vld [vmem:[#allocation2 + $0xc] sm:$0xff]  ;;  %v984_v2 = vshrl.u32 %v814_v56, 16  ;;  %v987_v3 = vshll.u32 %v814_v56, 16 }
  0xd0   : > { %v6316_v1 = vld [vmem:[#allocation2 + $0xc] sm:$0xff]  ;;  %1161 = vst [vmem:[#allocation2 + $0x18] sm:$0xf] %v1160_v62  ;;  %v513_v4 = vpop.f32.mrf.mxu0  ;;  %v606_v5 = vmul.f32 %v6959_v19, %v550_v59  ;;  %v1313_v7 = vld [vmem:[#allocation2 + $0x14] sm:$0x1]  ;;  %2090 = vmatmul.bf16.gmra.mxu2 %v6277_v0  ;;  %v729_v57 = vsel %vm6892_vm2, 0, %v728_v41 }
  0xd1   : > { %v1267_v6 = vld [vmem:[#allocation2 + $0x10] sm:$0xf]  ;;  %v856_v9 = vshrl.u32 %v799_v63, 16  ;;  %v859_v11 = vshll.u32 %v799_v63, 16  ;;  %1214 = vst [vmem:[#allocation2 + $0x74] sm:$0x1] %v1213_v58  ;;  %v591_v13 = vmul.f32 %v6959_v19, %v513_v4  ;;  %2780 = vmatmul.bf16.vlgmr.msrb.gmra.mxu0 %v6316_v1 }
  0xd2   : > { %v7029_v15 = vrot.slane %v984_v2, 7  ;;  %v642_v17 = vadd.f32 %v6967_v23, %v606_v5  ;;  %v1365_v20 = vshll.u32 %v1267_v6, 16  ;;  %v1369_v21 = vshrl.u32 %v1267_v6, 16  ;;  %v1219_v59 = vld [vmem:[#allocation2 + $0x80] sm:$0x1] }
  0xd3   : > { %v858_v22 = vrot.slane %v856_v9, 7  ;;  %v627_v24 = vadd.f32 %v6967_v23, %v591_v13  ;;  %v1375_v31 = vshll.u32 %v1313_v7, 16  ;;  %730 = vst [vmem:[#allocation2 + $0x84] sm:$0x1] %v729_v57  ;;  %v758_v62 = vsel %vm6913_vm4, 0, %v757_v46 }
  0xd4   : > { %v989_v25 = vor.u32 %v987_v3, %v7029_v15  ;;  %v990_v26 = vrot.slane %v7029_v15, 4  ;;  %v674_v28 = vmax.f32 %v642_v17, 0.0  ;;  %v1367_v29 = vrot.slane %v1365_v20, 5  ;;  %759 = vst [vmem:[#allocation2 + $0x38] sm:$0x1] %v758_v62 }
  0xd5   : > { %v1371_v30 = vrot.slane %v1369_v21, 4  ;;  %v861_v32 = vor.u32 %v859_v11, %v858_v22  ;;  %v863_v33 = vrot.slane %v858_v22, 4  ;;  %v659_v34 = vmax.f32 %v627_v24, 0.0  ;;  %v778_v2 = vld [vmem:[#allocation2 + $0x8c] sm:$0x1] }
  0xd6   : > { %v1216_v35 = vsel %vm6984_vm9, %v989_v25, %v1215_v16  ;;  %v815_v36 = vpack.c.bf16 %v674_v28, %v674_v28  ;;  %v1368_v37 = vsel %vm6942_vm7, %v1363_v18, %v1367_v29  ;;  %v1377_v39 = vrot.slane %v1375_v31, 5  ;;  %v553_v40 = vpop.f32.mrf.mxu2  ;;  %v1166_v4 = vld [vmem:[#allocation2 + $0x24] sm:$0xf] }
  0xd7   : > { %1217 = vst [vmem:[#allocation2 + $0x78] sm:$0xf] %v1216_v35  ;;  %v1372_v38 = vor.u32 %v1371_v30, %v1367_v29  ;;  %v862_v14 = vsel %vm6999_vm11, %v854_v54, %v861_v32  ;;  %v1164_v43 = vsel %vm6892_vm2, %v863_v33, %v1163_v27  ;;  %v800_v44 = vpack.c.bf16 %v659_v34, %v659_v34  ;;  %v7043_v47 = vld [vmem:[#allocation2 + $0x18] sm:$0xf] }
  0xd8   : > { %v1734_v45 = vunpack.c.l.b16 %v1368_v37  ;;  %1162 = vst [vmem:[#allocation2 + $0x1c] sm:$0xf] %v862_v14  ;;  %v515_v49 = vpop.f32.mrf.mxu0  ;;  %v992_v50 = vshrl.u32 %v815_v36, 16  ;;  %v995_v51 = vshll.u32 %v815_v36, 16  ;;  %v607_v53 = vmul.f32 %v6959_v19, %v553_v40 }
  0xd9   : > { %v1373_v52 = vrot.slane %v1372_v38, 4  ;;  %1165 = vst [vmem:[#allocation2 + $0x20] sm:$0x1] %v1164_v43  ;;  %v865_v55 = vshrl.u32 %v800_v44, 16  ;;  %v868_v56 = vshll.u32 %v800_v44, 16  ;;  %v592_v54 = vmul.f32 %v6959_v19, %v515_v49 }
  0xda   : > { %v994_v58 = vrot.slane %v992_v50, 7  ;;  %v643_v61 = vadd.f32 %v6967_v23, %v607_v53  ;;  %v1380_v3 = vshrl.u32 %v7043_v47, 16  ;;  %v779_v9 = vsel %vm6913_vm4, 0, %v778_v2  ;;  %v1222_v44 = vld [vmem:[#allocation2 + $0x84] sm:$0xf] }
  0xdb   : > { %v1378_v60 = vsel %vm6942_vm7, %v1373_v52, %v1377_v39  ;;  %v7054_v63 = vrot.slane %v865_v55, 7  ;;  %v628_v0 = vadd.f32 %v6967_v23, %v592_v54  ;;  %780 = vst [vmem:[#allocation2 + $0x8c] sm:$0x1] %v779_v9  ;;  %v1383_v39 = vshll.u32 %v7043_v47, 16  ;;  %v1170_v49 = vld [vmem:[#allocation2 + $0x2c] sm:$0x1] }
  0xdc   : > { %v1735_v1 = vunpack.c.l.b16 %v1378_v60  ;;  %v997_v5 = vor.u32 %v995_v51, %v994_v58  ;;  %v999_v6 = vrot.slane %v994_v58, 4  ;;  %v675_v7 = vmax.f32 %v643_v61, 0.0  ;;  %v710_v58 = vld [vmem:[#allocation2 + $0x3c] sm:$0x1] }
  0xdd   : > { %v870_v11 = vor.u32 %v868_v56, %v7054_v63  ;;  %v871_v13 = vrot.slane %v7054_v63, 4  ;;  %v660_v15 = vmax.f32 %v628_v0, 0.0  ;;  %v1382_v22 = vrot.slane %v1380_v3, 4  ;;  %v731_v63 = vld [vmem:[#allocation2 + $0x90] sm:$0x1] }
  0xde   : > { %v1765_v16 = vpack.c.b16 %v1735_v1, %v1734_v45  ;;  %v998_v17 = vsel %vm6999_vm11, %v990_v26, %v997_v5  ;;  %v1220_v18 = vsel %vm6892_vm2, %v999_v6, %v1219_v59  ;;  %v816_v20 = vpack.c.bf16 %v675_v7, %v675_v7  ;;  %v555_v21 = vpop.f32.mrf.mxu2 }
  0xdf   : > { %v1167_v24 = vsel %vm6984_vm9, %v870_v11, %v1166_v4  ;;  %v801_v25 = vpack.c.bf16 %v660_v15, %v660_v15  ;;  %1218 = vst [vmem:[#allocation2 + $0x7c] sm:$0xf] %v998_v17  ;;  %v6278_v27 = vld [vmem:[#allocation2 + $0x18] sm:$0xff]  ;;  %v608_v29 = vmul.f32 %v6959_v19, %v555_v21  ;;  %v1385_v52 = vrot.slane %v1383_v39, 5  ;;  %v760_v4 = vld [vmem:[#allocation2 + $0x44] sm:$0x1] }
  0xe0   : > { %1857 = vmatmul.bf16.gmra.mxu1 %v1765_v16  ;;  %v6317_v28 = vld [vmem:[#allocation2 + $0x18] sm:$0xff]  ;;  %1168 = vst [vmem:[#allocation2 + $0x24] sm:$0xf] %v1167_v24  ;;  %v518_v31 = vpop.f32.mrf.mxu0  ;;  %v1001_v26 = vshrl.u32 %v816_v20, 16  ;;  %v1004_v32 = vshll.u32 %v816_v20, 16  ;;  %2095 = vmatmul.bf16.gmra.mxu2 %v6278_v27  ;;  %v711_v11 = vsel %vm6892_vm2, 0, %v710_v58 }
  0xe1   : > { %v1269_v30 = vld [vmem:[#allocation2 + $0x1c] sm:$0xf]  ;;  %v1314_v33 = vld [vmem:[#allocation2 + $0x20] sm:$0x1]  ;;  %v873_v34 = vshrl.u32 %v801_v25, 16  ;;  %v876_v35 = vshll.u32 %v801_v25, 16  ;;  %v593_v36 = vmul.f32 %v6959_v19, %v518_v31  ;;  %2785 = vmatmul.bf16.gmra.mxu0 %v6317_v28  ;;  %v644_v37 = vadd.f32 %v6967_v23, %v608_v29 }
  0xe2   : > { %1221 = vst [vmem:[#allocation2 + $0x80] sm:$0x1] %v1220_v18  ;;  %v1003_v38 = vrot.slane %v1001_v26, 7  ;;  %v1389_v40 = vshll.u32 %v1269_v30, 16  ;;  %v1393_v41 = vshrl.u32 %v1269_v30, 16  ;;  %v1399_v46 = vshll.u32 %v1314_v33, 16 }
  0xe3   : > { %v875_v14 = vrot.slane %v873_v34, 7  ;;  %v629_v43 = vadd.f32 %v6967_v23, %v593_v36  ;;  %v676_v45 = vmax.f32 %v644_v37, 0.0  ;;  %v1386_v59 = vor.u32 %v1385_v52, %v1382_v22  ;;  %v1226_v18 = vld [vmem:[#allocation2 + $0x8c] sm:$0x1]  ;;  %712 = vst [vmem:[#allocation2 + $0x3c] sm:$0x1] %v711_v11 }
  0xe4   : > { %v1006_v50 = vor.u32 %v1004_v32, %v1003_v38  ;;  %v1007_v51 = vrot.slane %v1003_v38, 4  ;;  %v1391_v53 = vrot.slane %v1389_v40, 5  ;;  %v1395_v60 = vrot.slane %v1393_v41, 4  ;;  %v781_v30 = vld [vmem:[#allocation2 + $0x98] sm:$0x1] }
  0xe5   : > { %v878_v55 = vor.u32 %v876_v35, %v875_v14  ;;  %v880_v56 = vrot.slane %v875_v14, 4  ;;  %v661_v54 = vmax.f32 %v629_v43, 0.0  ;;  %v817_v57 = vpack.c.bf16 %v676_v45, %v676_v45  ;;  %v1173_v31 = vld [vmem:[#allocation2 + $0x30] sm:$0xf] }
  0xe6   : > { %v1223_v47 = vsel %vm6984_vm9, %v1006_v50, %v1222_v44  ;;  %v1401_v61 = vrot.slane %v1399_v46, 5  ;;  %v558_v62 = vpop.f32.mrf.mxu2  ;;  %v1387_v7 = vrot.slane %v1386_v59, 4  ;;  %v1396_v9 = vor.u32 %v1395_v60, %v1391_v53 }
  0xe7   : > { %v879_v0 = vsel %vm6999_vm11, %v871_v13, %v878_v55  ;;  %v1171_v1 = vsel %vm6892_vm2, %v880_v56, %v1170_v49  ;;  %v802_v2 = vpack.c.bf16 %v661_v54, %v661_v54  ;;  %1224 = vst [vmem:[#allocation2 + $0x84] sm:$0xf] %v1223_v47  ;;  %v1009_v3 = vshrl.u32 %v817_v57, 16  ;;  %v1270_v38 = vld [vmem:[#allocation2 + $0x24] sm:$0xf] }
  0xe8   : > { %1169 = vst [vmem:[#allocation2 + $0x28] sm:$0xf] %v879_v0  ;;  %v520_v5 = vpop.f32.mrf.mxu0  ;;  %v1012_v6 = vshll.u32 %v817_v57, 16  ;;  %v1392_v20 = vsel %vm6942_vm7, %v1387_v7, %v1391_v53  ;;  %v1397_v21 = vrot.slane %v1396_v9, 4  ;;  %v609_v22 = vmul.f32 %v6959_v19, %v558_v62 }
  0xe9   : > { %1172 = vst [vmem:[#allocation2 + $0x2c] sm:$0x1] %v1171_v1  ;;  %v882_v15 = vshrl.u32 %v802_v2, 16  ;;  %v885_v16 = vshll.u32 %v802_v2, 16  ;;  %v594_v13 = vmul.f32 %v6959_v19, %v520_v5  ;;  %v1011_v17 = vrot.slane %v1009_v3, 7 }
  0xea   : > { %v732_v24 = vsel %vm6892_vm2, 0, %v731_v63  ;;  %v1402_v26 = vsel %vm6942_vm7, %v1397_v21, %v1401_v61  ;;  %v645_v32 = vadd.f32 %v6967_v23, %v609_v22  ;;  %v761_v33 = vsel %vm6913_vm4, 0, %v760_v4 }
  0xeb   : > { %v7087_v25 = vrot.slane %v882_v15, 7  ;;  %v630_v27 = vadd.f32 %v6967_v23, %v594_v13  ;;  %v1014_v28 = vor.u32 %v1012_v6, %v1011_v17  ;;  %v1016_v29 = vrot.slane %v1011_v17, 4  ;;  %733 = vst [vmem:[#allocation2 + $0x90] sm:$0x1] %v732_v24  ;;  %v1177_v6 = vld [vmem:[#allocation2 + $0x38] sm:$0x1] }
  0xec   : > { %v1736_v37 = vunpack.c.l.b16 %v1392_v20  ;;  %762 = vst [vmem:[#allocation2 + $0x44] sm:$0x1] %v761_v33  ;;  %v1737_v40 = vunpack.c.l.b16 %v1402_v26  ;;  %v677_v41 = vmax.f32 %v645_v32, 0.0  ;;  %v782_v43 = vsel %vm6913_vm4, 0, %v781_v30  ;;  %v713_v26 = vld [vmem:[#allocation2 + $0x48] sm:$0x1] }
  0xed   : > { %v887_v34 = vor.u32 %v885_v16, %v7087_v25  ;;  %v662_v35 = vmax.f32 %v630_v27, 0.0  ;;  %v1015_v36 = vsel %vm6999_vm11, %v1007_v51, %v1014_v28  ;;  %v1227_v39 = vsel %vm6892_vm2, %v1016_v29, %v1226_v18  ;;  %783 = vst [vmem:[#allocation2 + $0x98] sm:$0x1] %v782_v43  ;;  %v734_v32 = vld [vmem:[#allocation2 + $0x9c] sm:$0x1] }
  0xee   : > { %1225 = vst [vmem:[#allocation2 + $0x88] sm:$0xf] %v1015_v36  ;;  %v560_v14 = vpop.f32.mrf.mxu2  ;;  %v888_v44 = vrot.slane %v7087_v25, 4  ;;  %v1766_v52 = vpack.c.b16 %v1737_v40, %v1736_v37  ;;  %v818_v55 = vpack.c.bf16 %v677_v41, %v677_v41  ;;  %v1404_v54 = vshrl.u32 %v1270_v38, 16 }
  0xef   : > { %v1174_v45 = vsel %vm6984_vm9, %v887_v34, %v1173_v31  ;;  %v803_v46 = vpack.c.bf16 %v662_v35, %v662_v35  ;;  %1228 = vst [vmem:[#allocation2 + $0x8c] sm:$0x1] %v1227_v39  ;;  %v6279_v49 = vld [vmem:[#allocation2 + $0x24] sm:$0xff]  ;;  %v610_v51 = vmul.f32 %v6959_v19, %v560_v14  ;;  %v1407_v57 = vshll.u32 %v1270_v38, 16  ;;  %v763_v38 = vld [vmem:[#allocation2 + $0x50] sm:$0x1] }
  0xf0   : > { %v6318_v50 = vld [vmem:[#allocation2 + $0x24] sm:$0xff]  ;;  %1175 = vst [vmem:[#allocation2 + $0x30] sm:$0xf] %v1174_v45  ;;  %v523_v53 = vpop.f32.mrf.mxu0  ;;  %2100 = vmatmul.bf16.gmra.mxu2 %v6279_v49  ;;  %v1315_v61 = vld [vmem:[#allocation2 + $0x2c] sm:$0x1]  ;;  %1862 = vmatmul.bf16.gmra.mxu1 %v1766_v52  ;;  %v1018_v62 = vshrl.u32 %v818_v55, 16 }
  0xf1   : > { %v1271_v56 = vld [vmem:[#allocation2 + $0x28] sm:$0xf]  ;;  %v890_v58 = vshrl.u32 %v803_v46, 16  ;;  %v893_v47 = vshll.u32 %v803_v46, 16  ;;  %v595_v59 = vmul.f32 %v6959_v19, %v523_v53  ;;  %2790 = vmatmul.bf16.gmra.mxu0 %v6318_v50  ;;  %v646_v60 = vadd.f32 %v6967_v23, %v610_v51 }
  0xf2   : > { %v1021_v63 = vshll.u32 %v818_v55, 16  ;;  %v1406_v0 = vrot.slane %v1404_v54, 4  ;;  %v1409_v1 = vrot.slane %v1407_v57, 5  ;;  %v1413_v5 = vshll.u32 %v1271_v56, 16  ;;  %v1229_v18 = vld [vmem:[#allocation2 + $0x90] sm:$0xf] }
  0xf3   : > { %v892_v2 = vrot.slane %v890_v58, 7  ;;  %v631_v3 = vadd.f32 %v6967_v23, %v595_v59  ;;  %v678_v4 = vmax.f32 %v646_v60, 0.0  ;;  %v1020_v7 = vrot.slane %v1018_v62, 7  ;;  %v784_v55 = vld [vmem:[#allocation2 + $0xa4] sm:$0x1] }
  0xf4   : > { %v1410_v9 = vor.u32 %v1409_v1, %v1406_v0  ;;  %v1417_v11 = vshrl.u32 %v1271_v56, 16  ;;  %v1423_v15 = vshll.u32 %v1315_v61, 16  ;;  %v1415_v25 = vrot.slane %v1413_v5, 5  ;;  %v1233_v43 = vld [vmem:[#allocation2 + $0x98] sm:$0x1] }
  0xf5   : > { %v895_v16 = vor.u32 %v893_v47, %v892_v2  ;;  %v897_v13 = vrot.slane %v892_v2, 4  ;;  %v663_v17 = vmax.f32 %v631_v3, 0.0  ;;  %v819_v20 = vpack.c.bf16 %v678_v4, %v678_v4  ;;  %v1180_v56 = vld [vmem:[#allocation2 + $0x3c] sm:$0xf] }
  0xf6   : > { %v1023_v21 = vor.u32 %v1021_v63, %v1020_v7  ;;  %v1024_v22 = vrot.slane %v1020_v7, 4  ;;  %v1411_v24 = vrot.slane %v1410_v9, 4  ;;  %v563_v27 = vpop.f32.mrf.mxu2  ;;  %v1419_v37 = vrot.slane %v1417_v11, 4 }
  0xf7   : > { %v896_v28 = vsel %vm6999_vm11, %v888_v44, %v895_v16  ;;  %v1178_v29 = vsel %vm6892_vm2, %v897_v13, %v1177_v6  ;;  %v804_v30 = vpack.c.bf16 %v663_v17, %v663_v17  ;;  %v1026_v31 = vshrl.u32 %v819_v20, 16  ;;  %v1272_v63 = vld [vmem:[#allocation2 + $0x30] sm:$0xf] }
  0xf8   : > { %1176 = vst [vmem:[#allocation2 + $0x34] sm:$0xf] %v896_v28  ;;  %v1230_v33 = vsel %vm6984_vm9, %v1023_v21, %v1229_v18  ;;  %v525_v34 = vpop.f32.mrf.mxu0  ;;  %v1029_v35 = vshll.u32 %v819_v20, 16  ;;  %v1416_v36 = vsel %vm6942_vm7, %v1411_v24, %v1415_v25  ;;  %v1420_v44 = vor.u32 %v1419_v37, %v1415_v25 }
  0xf9   : > { %1179 = vst [vmem:[#allocation2 + $0x38] sm:$0x1] %v1178_v29  ;;  %v899_v39 = vshrl.u32 %v804_v30, 16  ;;  %v902_v40 = vshll.u32 %v804_v30, 16  ;;  %v596_v41 = vmul.f32 %v6959_v19, %v525_v34  ;;  %v1028_v14 = vrot.slane %v1026_v31, 7 }
  0xfa   : > { %1231 = vst [vmem:[#allocation2 + $0x90] sm:$0xf] %v1230_v33  ;;  %v1425_v45 = vrot.slane %v1423_v15, 5  ;;  %v1738_v46 = vunpack.c.l.b16 %v1416_v36  ;;  %v714_v49 = vsel %vm6892_vm2, 0, %v713_v26  ;;  %v1421_v54 = vrot.slane %v1420_v44, 4 }
  0xfb   : > { %v7120_v50 = vrot.slane %v899_v39, 7  ;;  %v632_v51 = vadd.f32 %v6967_v23, %v596_v41  ;;  %v1031_v52 = vor.u32 %v1029_v35, %v1028_v14  ;;  %v1033_v53 = vrot.slane %v1028_v14, 4  ;;  %715 = vst [vmem:[#allocation2 + $0x48] sm:$0x1] %v714_v49  ;;  %v1184_v31 = vld [vmem:[#allocation2 + $0x44] sm:$0x1] }
  0xfc   : > { %v611_v57 = vmul.f32 %v6959_v19, %v563_v27  ;;  %v735_v58 = vsel %vm6892_vm2, 0, %v734_v32  ;;  %v764_v47 = vsel %vm6913_vm4, 0, %v763_v38  ;;  %v1426_v1 = vsel %vm6942_vm7, %v1421_v54, %v1425_v45 }
  0xfd   : > { %v904_v59 = vor.u32 %v902_v40, %v7120_v50  ;;  %v905_v60 = vrot.slane %v7120_v50, 4  ;;  %v664_v61 = vmax.f32 %v632_v51, 0.0  ;;  %v1032_v62 = vsel %vm6999_vm11, %v1024_v22, %v1031_v52  ;;  %736 = vst [vmem:[#allocation2 + $0x9c] sm:$0x1] %v735_v58 }
  0xfe   : > { %1232 = vst [vmem:[#allocation2 + $0x94] sm:$0xf] %v1032_v62  ;;  %v1234_v0 = vsel %vm6892_vm2, %v1033_v53, %v1233_v43  ;;  %v647_v2 = vadd.f32 %v6967_v23, %v611_v57  ;;  %v565_v3 = vpop.f32.mrf.mxu2  ;;  %v785_v4 = vsel %vm6913_vm4, 0, %v784_v55  ;;  %v1739_v7 = vunpack.c.l.b16 %v1426_v1 }
  0xff   : > { %v1181_v5 = vsel %vm6984_vm9, %v904_v59, %v1180_v56  ;;  %v805_v6 = vpack.c.bf16 %v664_v61, %v664_v61  ;;  %1235 = vst [vmem:[#allocation2 + $0x98] sm:$0x1] %v1234_v0  ;;  %v6280_v9 = vld [vmem:[#allocation2 + $0x30] sm:$0xff]  ;;  %v612_v15 = vmul.f32 %v6959_v19, %v565_v3  ;;  %v1428_v18 = vshrl.u32 %v1272_v63, 16 }
 0x100   : > { %v6319_v11 = vld [vmem:[#allocation2 + $0x30] sm:$0xff]  ;;  %1182 = vst [vmem:[#allocation2 + $0x3c] sm:$0xf] %v1181_v5  ;;  %v528_v16 = vpop.f32.mrf.mxu0  ;;  %v679_v13 = vmax.f32 %v647_v2, 0.0  ;;  %v1767_v22 = vpack.c.b16 %v1739_v7, %v1738_v46  ;;  %2105 = vmatmul.bf16.gmra.mxu2 %v6280_v9  ;;  %v1431_v29 = vshll.u32 %v1272_v63, 16 }
 0x101   : > { %v1273_v17 = vld [vmem:[#allocation2 + $0x34] sm:$0xf]  ;;  %v907_v20 = vshrl.u32 %v805_v6, 16  ;;  %v910_v21 = vshll.u32 %v805_v6, 16  ;;  %v597_v24 = vmul.f32 %v6959_v19, %v528_v16  ;;  %2795 = vmatmul.bf16.gmra.mxu0 %v6319_v11  ;;  %765 = vst [vmem:[#allocation2 + $0x50] sm:$0x1] %v764_v47  ;;  %v648_v27 = vadd.f32 %v6967_v23, %v612_v15 }
 0x102   : > { %v820_v25 = vpack.c.bf16 %v679_v13, %v679_v13  ;;  %786 = vst [vmem:[#allocation2 + $0xa4] sm:$0x1] %v785_v4  ;;  %v1430_v28 = vrot.slane %v1428_v18, 4  ;;  %1867 = vmatmul.bf16.gmra.mxu1 %v1767_v22  ;;  %v1437_v32 = vshll.u32 %v1273_v17, 16  ;;  %v1441_v33 = vshrl.u32 %v1273_v17, 16 }
 0x103   : > { %v909_v30 = vrot.slane %v907_v20, 7  ;;  %v633_v26 = vadd.f32 %v6967_v23, %v597_v24  ;;  %v680_v36 = vmax.f32 %v648_v27, 0.0  ;;  %v1316_v37 = vld [vmem:[#allocation2 + $0x38] sm:$0x1]  ;;  %v1433_v38 = vrot.slane %v1431_v29, 5 }
 0x104   : > { %v1035_v34 = vshrl.u32 %v820_v25, 16  ;;  %v1038_v35 = vshll.u32 %v820_v25, 16  ;;  %v1439_v14 = vrot.slane %v1437_v32, 5  ;;  %v1443_v46 = vrot.slane %v1441_v33, 4  ;;  %v1236_v53 = vld [vmem:[#allocation2 + $0x9c] sm:$0xf] }
 0x105   : > { %v912_v39 = vor.u32 %v910_v21, %v909_v30  ;;  %v914_v40 = vrot.slane %v909_v30, 4  ;;  %v665_v41 = vmax.f32 %v633_v26, 0.0  ;;  %v821_v44 = vpack.c.bf16 %v680_v36, %v680_v36  ;;  %v716_v59 = vld [vmem:[#allocation2 + $0x54] sm:$0x1]  ;;  %v737_v5 = vld [vmem:[#allocation2 + $0xa8] sm:$0x1] }
 0x106   : > { %v1037_v43 = vrot.slane %v1035_v34, 7  ;;  %v1434_v45 = vor.u32 %v1433_v38, %v1430_v28  ;;  %v568_v49 = vpop.f32.mrf.mxu2  ;;  %v1447_v55 = vshll.u32 %v1316_v37, 16  ;;  %v1444_v47 = vor.u32 %v1443_v46, %v1439_v14  ;;  %v1187_v15 = vld [vmem:[#allocation2 + $0x48] sm:$0xf]  ;;  %v766_v24 = vld [vmem:[#allocation2 + $0x5c] sm:$0x1] }
 0x107   : > { %v913_v50 = vsel %vm6999_vm11, %v905_v60, %v912_v39  ;;  %v1185_v51 = vsel %vm6892_vm2, %v914_v40, %v1184_v31  ;;  %v806_v52 = vpack.c.bf16 %v665_v41, %v665_v41  ;;  %v1043_v58 = vshrl.u32 %v821_v44, 16  ;;  %v787_v31 = vld [vmem:[#allocation2 + $0xb0] sm:$0x1]  ;;  %v1274_v26 = vld [vmem:[#allocation2 + $0x3c] sm:$0xf] }
 0x108   : > { %1183 = vst [vmem:[#allocation2 + $0x40] sm:$0xf] %v913_v50  ;;  %v1040_v56 = vor.u32 %v1038_v35, %v1037_v43  ;;  %v1041_v54 = vrot.slane %v1037_v43, 4  ;;  %v530_v57 = vpop.f32.mrf.mxu0  ;;  %v1046_v0 = vshll.u32 %v821_v44, 16  ;;  %v1435_v3 = vrot.slane %v1434_v45, 4 }
 0x109   : > { %1186 = vst [vmem:[#allocation2 + $0x44] sm:$0x1] %v1185_v51  ;;  %v916_v61 = vshrl.u32 %v806_v52, 16  ;;  %v919_v62 = vshll.u32 %v806_v52, 16  ;;  %v598_v63 = vmul.f32 %v6959_v19, %v530_v57  ;;  %v1045_v1 = vrot.slane %v1043_v58, 7 }
 0x10a   : > { %v1237_v60 = vsel %vm6984_vm9, %v1040_v56, %v1236_v53  ;;  %v1240_v2 = vld [vmem:[#allocation2 + $0xa4] sm:$0x1]  ;;  %v1445_v4 = vrot.slane %v1444_v47, 4  ;;  %v1449_v9 = vrot.slane %v1447_v55, 5  ;;  %v717_v11 = vsel %vm6892_vm2, 0, %v716_v59 }
 0x10b   : > { %v7152_v6 = vrot.slane %v916_v61, 7  ;;  %1238 = vst [vmem:[#allocation2 + $0x9c] sm:$0xf] %v1237_v60  ;;  %v634_v7 = vadd.f32 %v6967_v23, %v598_v63  ;;  %v1048_v16 = vor.u32 %v1046_v0, %v1045_v1  ;;  %v1050_v13 = vrot.slane %v1045_v1, 4  ;;  %v1191_v56 = vld [vmem:[#allocation2 + $0x50] sm:$0x1] }
 0x10c   : > { %v1440_v17 = vsel %vm6942_vm7, %v1435_v3, %v1439_v14  ;;  %718 = vst [vmem:[#allocation2 + $0x54] sm:$0x1] %v717_v11  ;;  %v613_v18 = vmul.f32 %v6959_v19, %v568_v49  ;;  %v1450_v22 = vsel %vm6942_vm7, %v1445_v4, %v1449_v9  ;;  %v738_v37 = vsel %vm6892_vm2, 0, %v737_v5 }
 0x10d   : > { %v921_v20 = vor.u32 %v919_v62, %v7152_v6  ;;  %v666_v21 = vmax.f32 %v634_v7, 0.0  ;;  %v1049_v25 = vsel %vm6999_vm11, %v1041_v54, %v1048_v16  ;;  %v1241_v27 = vsel %vm6892_vm2, %v1050_v13, %v1240_v2  ;;  %739 = vst [vmem:[#allocation2 + $0xa8] sm:$0x1] %v738_v37 }
 0x10e   : > { %v1740_v28 = vunpack.c.l.b16 %v1440_v17  ;;  %v1741_v29 = vunpack.c.l.b16 %v1450_v22  ;;  %v570_v30 = vpop.f32.mrf.mxu2  ;;  %1239 = vst [vmem:[#allocation2 + $0xa0] sm:$0xf] %v1049_v25  ;;  %v649_v36 = vadd.f32 %v6967_v23, %v613_v18  ;;  %v922_v38 = vrot.slane %v7152_v6, 4 }
 0x10f   : > { %v1188_v32 = vsel %vm6984_vm9, %v921_v20, %v1187_v15  ;;  %v807_v33 = vpack.c.bf16 %v666_v21, %v666_v21  ;;  %v6281_v34 = vld [vmem:[#allocation2 + $0x3c] sm:$0xff]  ;;  %v767_v41 = vsel %vm6913_vm4, 0, %v766_v24  ;;  %v614_v14 = vmul.f32 %v6959_v19, %v570_v30  ;;  %1242 = vst [vmem:[#allocation2 + $0xa4] sm:$0x1] %v1241_v27 }
 0x110   : > { %v6320_v35 = vld [vmem:[#allocation2 + $0x3c] sm:$0xff]  ;;  %1189 = vst [vmem:[#allocation2 + $0x48] sm:$0xf] %v1188_v32  ;;  %v1768_v39 = vpack.c.b16 %v1741_v29, %v1740_v28  ;;  %v533_v40 = vpop.f32.mrf.mxu0  ;;  %2110 = vmatmul.bf16.gmra.mxu2 %v6281_v34  ;;  %v681_v46 = vmax.f32 %v649_v36, 0.0  ;;  %v788_v49 = vsel %vm6913_vm4, 0, %v787_v31  ;;  %v1452_v52 = vshrl.u32 %v1274_v26, 16 }
 0x111   : > { %v1275_v43 = vld [vmem:[#allocation2 + $0x40] sm:$0xf]  ;;  %v924_v44 = vshrl.u32 %v807_v33, 16  ;;  %v599_v45 = vmul.f32 %v6959_v19, %v533_v40  ;;  %2800 = vmatmul.bf16.gmra.mxu0 %v6320_v35  ;;  %v927_v50 = vshll.u32 %v807_v33, 16  ;;  %v650_v51 = vadd.f32 %v6967_v23, %v614_v14  ;;  %768 = vst [vmem:[#allocation2 + $0x5c] sm:$0x1] %v767_v41 }
 0x112   : > { %v1455_v53 = vshll.u32 %v1274_v26, 16  ;;  %1872 = vmatmul.bf16.gmra.mxu1 %v1768_v39  ;;  %v822_v57 = vpack.c.bf16 %v681_v46, %v681_v46  ;;  %v1461_v19 = vshll.u32 %v1275_v43, 16  ;;  %789 = vst [vmem:[#allocation2 + $0xb0] sm:$0x1] %v788_v49  ;;  %v1454_v47 = vrot.slane %v1452_v52, 4  ;;  %v6347_v27 = vld [vmem:[%s8681_s2 + $0x138] sm:$0xff] }
 0x113   : > { %v926_v55 = vrot.slane %v924_v44, 7  ;;  %v635_v54 = vadd.f32 %v6967_v23, %v599_v45  ;;  %v682_v58 = vmax.f32 %v650_v51, 0.0  ;;  %v1465_v61 = vshrl.u32 %v1275_v43, 16  ;;  %v1317_v11 = vld [vmem:[#allocation2 + $0x44] sm:$0x1]  ;;  %3454 = vmatpush.bf16.msrb.mxu1 %v6347_v27  ;;  %v6346_v40 = vld [vmem:[%s8681_s2 + $0x130] sm:$0xff] }
 0x114   : > { %v1457_v59 = vrot.slane %v1455_v53, 5  ;;  %v1052_v60 = vshrl.u32 %v822_v57, 16  ;;  %v1055_v1 = vshll.u32 %v822_v57, 16  ;;  %v1463_v4 = vrot.slane %v1461_v19, 5  ;;  %v719_v20 = vld [vmem:[#allocation2 + $0x60] sm:$0x1] }
 0x115   : > { %v929_v62 = vor.u32 %v927_v50, %v926_v55  ;;  %v931_v63 = vrot.slane %v926_v55, 4  ;;  %v667_v0 = vmax.f32 %v635_v54, 0.0  ;;  %v823_v2 = vpack.c.bf16 %v682_v58, %v682_v58  ;;  %v1194_v28 = vld [vmem:[#allocation2 + $0x54] sm:$0xf]  ;;  %v1243_v29 = vld [vmem:[#allocation2 + $0xa8] sm:$0xf] }
 0x116   : > { %v1458_v3 = vor.u32 %v1457_v59, %v1454_v47  ;;  %v573_v5 = vpop.f32.mrf.mxu2  ;;  %v1054_v9 = vrot.slane %v1052_v60, 7  ;;  %v1467_v18 = vrot.slane %v1465_v61, 4  ;;  %v7191_v30 = vld [vmem:[%s8684_s5] ss:$0 sm:$0xff]  ;;  %v740_v34 = vld [vmem:[#allocation2 + $0xb4] sm:$0x1] }
 0x117   : > { %v930_v23 = vsel %vm6999_vm11, %v922_v38, %v929_v62  ;;  %v1192_v6 = vsel %vm6892_vm2, %v931_v63, %v1191_v56  ;;  %v808_v7 = vpack.c.bf16 %v667_v0, %v667_v0  ;;  %v1060_v16 = vshrl.u32 %v823_v2, 16  ;;  %v7206_v41 = vld [vmem:[%s8685_s6] ss:$0 sm:$0xff]  ;;  %v769_v46 = vld [vmem:[#allocation2 + $0x68] sm:$0x1]  ;;  %3455 = vmatpush.bf16.msrb.mxu1 %v6346_v40 }
 0x118   : > { %1190 = vst [vmem:[#allocation2 + $0x4c] sm:$0xf] %v930_v23  ;;  %v535_v15 = vpop.f32.mrf.mxu0  ;;  %v1063_v13 = vshll.u32 %v823_v2, 16  ;;  %v1459_v17 = vrot.slane %v1458_v3, 4  ;;  %v1057_v24 = vor.u32 %v1055_v1, %v1054_v9  ;;  %v1058_v25 = vrot.slane %v1054_v9, 4  ;;  %v6345_v47 = vld [vmem:[%s8681_s2 + $0x128] sm:$0xff] }
 0x119   : > { %1193 = vst [vmem:[#allocation2 + $0x50] sm:$0x1] %v1192_v6  ;;  %v933_v21 = vshrl.u32 %v808_v7, 16  ;;  %v936_v22 = vshll.u32 %v808_v7, 16  ;;  %v600_v31 = vmul.f32 %v7191_v30, %v535_v15  ;;  %v1062_v26 = vrot.slane %v1060_v16, 7 }
 0x11a   : > { %v1464_v32 = vsel %vm6942_vm7, %v1459_v17, %v1463_v4  ;;  %v1468_v33 = vor.u32 %v1467_v18, %v1463_v4  ;;  %v1244_v36 = vsel %vm6984_vm9, %v1057_v24, %v1243_v29  ;;  %v1247_v37 = vld [vmem:[#allocation2 + $0xb0] sm:$0x1]  ;;  %v1471_v38 = vshll.u32 %v1317_v11, 16  ;;  %v1276_v53 = vld [vmem:[#allocation2 + $0x48] sm:$0xf] }
 0x11b   : > { %v7196_v35 = vrot.slane %v933_v21, 7  ;;  %v1742_v39 = vunpack.c.l.b16 %v1464_v32  ;;  %1245 = vst [vmem:[#allocation2 + $0xa8] sm:$0xf] %v1244_v36  ;;  %v636_v14 = vadd.f32 %v7206_v41, %v600_v31  ;;  %v1065_v43 = vor.u32 %v1063_v13, %v1062_v26  ;;  %v790_v58 = vld [vmem:[#allocation2 + $0xbc] sm:$0x1]  ;;  %3456 = vmatpush.bf16.msrb.mxu1 %v6345_v47 }
 0x11c   : > { %v1067_v44 = vrot.slane %v1062_v26, 4  ;;  %v1469_v45 = vrot.slane %v1468_v33, 4  ;;  %v1473_v51 = vrot.slane %v1471_v38, 5  ;;  %v720_v52 = vsel %vm6892_vm2, 0, %v719_v20  ;;  %v1198_v26 = vld [vmem:[#allocation2 + $0x5c] sm:$0x1] }
 0x11d   : > { %v938_v49 = vor.u32 %v936_v22, %v7196_v35  ;;  %v939_v50 = vrot.slane %v7196_v35, 4  ;;  %v668_v55 = vmax.f32 %v636_v14, 0.0  ;;  %v1066_v56 = vsel %vm6999_vm11, %v1058_v25, %v1065_v43  ;;  %721 = vst [vmem:[#allocation2 + $0x60] sm:$0x1] %v720_v52  ;;  %v6344_v25 = vld [vmem:[%s8681_s2 + $0x120] sm:$0xff] }
 0x11e   : > { %v1248_v54 = vsel %vm6892_vm2, %v1067_v44, %v1247_v37  ;;  %v615_v57 = vmul.f32 %v7191_v30, %v573_v5  ;;  %v575_v19 = vpop.f32.mrf.mxu2  ;;  %1246 = vst [vmem:[#allocation2 + $0xac] sm:$0xf] %v1066_v56  ;;  %v1474_v61 = vsel %vm6942_vm7, %v1469_v45, %v1473_v51  ;;  %v741_v0 = vsel %vm6892_vm2, 0, %v740_v34 }
 0x11f   : > { %v1195_v59 = vsel %vm6984_vm9, %v938_v49, %v1194_v28  ;;  %v6282_v62 = vld [vmem:[#allocation2 + $0x48] sm:$0xff]  ;;  %v770_v60 = vsel %vm6913_vm4, 0, %v769_v46  ;;  %v809_v1 = vpack.c.bf16 %v668_v55, %v668_v55  ;;  %v1743_v2 = vunpack.c.l.b16 %v1474_v61  ;;  %1249 = vst [vmem:[#allocation2 + $0xb0] sm:$0x1] %v1248_v54  ;;  %3457 = vmatpush.bf16.msrb.mxu1 %v6344_v25  ;;  %v6343_v49 = vld [vmem:[%s8681_s2 + $0x118] sm:$0xff] }
 0x120   : > { %v6321_v63 = vld [vmem:[#allocation2 + $0x48] sm:$0xff]  ;;  %1196 = vst [vmem:[#allocation2 + $0x54] sm:$0xf] %v1195_v59  ;;  %v538_v3 = vpop.f32.mrf.mxu0  ;;  %v651_v4 = vadd.f32 %v7206_v41, %v615_v57  ;;  %v616_v5 = vmul.f32 %v7191_v30, %v575_v19  ;;  %v1318_v6 = vld [vmem:[#allocation2 + $0x50] sm:$0x1]  ;;  %2115 = vmatmul.bf16.gmra.mxu2 %v6282_v62  ;;  %v791_v9 = vsel %vm6913_vm4, 0, %v790_v58 }
 0x121   : > { %v1277_v23 = vld [vmem:[#allocation2 + $0x4c] sm:$0xf]  ;;  %v601_v7 = vmul.f32 %v7191_v30, %v538_v3  ;;  %2805 = vmatmul.bf16.gmra.mxu0 %v6321_v63  ;;  %v1476_v11 = vshrl.u32 %v1276_v53, 16  ;;  %v1479_v15 = vshll.u32 %v1276_v53, 16  ;;  %v941_v16 = vshrl.u32 %v809_v1, 16  ;;  %v6342_v3 = vld [vmem:[%s8681_s2 + $0x110] sm:$0xff] }
 0x122   : > { %v944_v13 = vshll.u32 %v809_v1, 16  ;;  %v1769_v17 = vpack.c.b16 %v1743_v2, %v1742_v39  ;;  %v683_v18 = vmax.f32 %v651_v4, 0.0  ;;  %742 = vst [vmem:[#allocation2 + $0xb4] sm:$0x1] %v741_v0  ;;  %v652_v21 = vadd.f32 %v7206_v41, %v616_v5  ;;  %v743_v62 = vld [vmem:[#allocation2 + $0xc0] sm:$0x1] }
 0x123   : > { %v637_v20 = vadd.f32 %v7206_v41, %v601_v7  ;;  %771 = vst [vmem:[#allocation2 + $0x68] sm:$0x1] %v770_v60  ;;  %v1478_v22 = vrot.slane %v1476_v11, 4  ;;  %v1481_v24 = vrot.slane %v1479_v15, 5  ;;  %v943_v27 = vrot.slane %v941_v16, 7  ;;  %3458 = vmatpush.bf16.msrb.mxu1 %v6343_v49 }
 0x124   : > { %1877 = vmatmul.bf16.gmra.mxu1 %v1769_v17  ;;  %v824_v28 = vpack.c.bf16 %v683_v18, %v683_v18  ;;  %792 = vst [vmem:[#allocation2 + $0xbc] sm:$0x1] %v791_v9  ;;  %v1485_v29 = vshll.u32 %v1277_v23, 16  ;;  %v1489_v31 = vshrl.u32 %v1277_v23, 16  ;;  %v684_v33 = vmax.f32 %v652_v21, 0.0  ;;  %v6315_v17 = vld [vmem:[%s8681_s2 + $0xb8] sm:$0xff] }
 0x125   : > { %v669_v32 = vmax.f32 %v637_v20, 0.0  ;;  %v1482_v34 = vor.u32 %v1481_v24, %v1478_v22  ;;  %v1495_v36 = vshll.u32 %v1318_v6, 16  ;;  %v946_v37 = vor.u32 %v944_v13, %v943_v27  ;;  %v793_v2 = vld [vmem:[#allocation2 + $0xc8] sm:$0x1]  ;;  %v1201_v4 = vld [vmem:[#allocation2 + $0x60] sm:$0xf]  ;;  %2458 = vmatpush.bf16.msrb.mxu3 %v6315_v17 }
 0x126   : > { %v948_v38 = vrot.slane %v943_v27, 4  ;;  %v1069_v39 = vshrl.u32 %v824_v28, 16  ;;  %v1072_v40 = vshll.u32 %v824_v28, 16  ;;  %v578_v14 = vpop.f32.mrf.mxu2  ;;  %v825_v44 = vpack.c.bf16 %v684_v33, %v684_v33 }
 0x127   : > { %v810_v43 = vpack.c.bf16 %v669_v32, %v669_v32  ;;  %v1483_v45 = vrot.slane %v1482_v34, 4  ;;  %v1487_v46 = vrot.slane %v1485_v29, 5  ;;  %v947_v51 = vsel %vm6999_vm11, %v939_v50, %v946_v37  ;;  %3459 = vmatpush.bf16.msrb.mxu1 %v6342_v3 }
 0x128   : > { %v1199_v52 = vsel %vm6892_vm2, %v948_v38, %v1198_v26  ;;  %v1071_v53 = vrot.slane %v1069_v39, 7  ;;  %v540_v55 = vpop.f32.mrf.mxu0  ;;  %v1491_v56 = vrot.slane %v1489_v31, 4  ;;  %1197 = vst [vmem:[#allocation2 + $0x58] sm:$0xf] %v947_v51  ;;  %v1077_v61 = vshrl.u32 %v825_v44, 16  ;;  %v6341_v26 = vld [vmem:[%s8681_s2 + $0x108] sm:$0xff] }
 0x129   : > { %v950_v54 = vshrl.u32 %v810_v43, 16  ;;  %v953_v57 = vshll.u32 %v810_v43, 16  ;;  %v1250_v19 = vld [vmem:[#allocation2 + $0xb4] sm:$0xf]  ;;  %v602_v58 = vmul.f32 %v7191_v30, %v540_v55  ;;  %v1488_v47 = vsel %vm6942_vm7, %v1483_v45, %v1487_v46  ;;  %1200 = vst [vmem:[#allocation2 + $0x5c] sm:$0x1] %v1199_v52 }
 0x12a   : > { %v1074_v35 = vor.u32 %v1072_v40, %v1071_v53  ;;  %v1075_v59 = vrot.slane %v1071_v53, 4  ;;  %v1492_v50 = vor.u32 %v1491_v56, %v1487_v46  ;;  %v1080_v60 = vshll.u32 %v825_v44, 16  ;;  %v1278_v31 = vld [vmem:[#allocation2 + $0x54] sm:$0xf]  ;;  %v1205_v53 = vld [vmem:[#allocation2 + $0x68] sm:$0x1] }
 0x12b   : > { %v7251_v63 = vrot.slane %v950_v54, 7  ;;  %v638_v0 = vadd.f32 %v7206_v41, %v602_v58  ;;  %v1497_v1 = vrot.slane %v1495_v36, 5  ;;  %v1079_v23 = vrot.slane %v1077_v61, 7  ;;  %v1254_v6 = vld [vmem:[#allocation2 + $0xbc] sm:$0x1]  ;;  %3460 = vmatpush.bf16.msrb.mxu1 %v6341_v26 }
 0x12c   : > { %v1251_v5 = vsel %vm6984_vm9, %v1074_v35, %v1250_v19  ;;  %v1493_v7 = vrot.slane %v1492_v50, 4  ;;  %v1744_v9 = vunpack.c.l.b16 %v1488_v47  ;;  %v617_v13 = vmul.f32 %v7191_v30, %v578_v14 }
 0x12d   : > { %v955_v11 = vor.u32 %v953_v57, %v7251_v63  ;;  %v956_v15 = vrot.slane %v7251_v63, 4  ;;  %1252 = vst [vmem:[#allocation2 + $0xb4] sm:$0xf] %v1251_v5  ;;  %v670_v16 = vmax.f32 %v638_v0, 0.0  ;;  %v1082_v18 = vor.u32 %v1080_v60, %v1079_v23 }
 0x12e   : > { %v1084_v20 = vrot.slane %v1079_v23, 4  ;;  %v1498_v21 = vsel %vm6942_vm7, %v1493_v7, %v1497_v1  ;;  %v744_v22 = vsel %vm6892_vm2, 0, %v743_v62  ;;  %v580_v24 = vpop.f32.mrf.mxu2  ;;  %v653_v29 = vadd.f32 %v7206_v41, %v617_v13  ;;  %v1853_v7 = vpop.f32.mrf.mxu1 }
 0x12f   : > { %v1202_v25 = vsel %vm6984_vm9, %v955_v11, %v1201_v4  ;;  %v811_v27 = vpack.c.bf16 %v670_v16, %v670_v16  ;;  %v1745_v28 = vunpack.c.l.b16 %v1498_v21  ;;  %745 = vst [vmem:[#allocation2 + $0xc0] sm:$0x1] %v744_v22  ;;  %v1083_v32 = vsel %vm6999_vm11, %v1075_v59, %v1082_v18  ;;  %v6283_v34 = vld [vmem:[#allocation2 + $0x54] sm:$0xff]  ;;  %3461 = vmatpush.bf16.msrb.mxu1 %v6340_v42 }
 0x130   : > { %1203 = vst [vmem:[#allocation2 + $0x60] sm:$0xf] %v1202_v25  ;;  %v1255_v33 = vsel %vm6892_vm2, %v1084_v20, %v1254_v6  ;;  %v6322_v36 = vld [vmem:[#allocation2 + $0x54] sm:$0xff]  ;;  %v618_v37 = vmul.f32 %v7191_v30, %v580_v24  ;;  %v794_v38 = vsel %vm6913_vm4, 0, %v793_v2  ;;  %v685_v43 = vmax.f32 %v653_v29, 0.0  ;;  %2120 = vmatmul.bf16.gmra.mxu2 %v6283_v34 }
 0x131   : > { %v958_v39 = vshrl.u32 %v811_v27, 16  ;;  %v961_v40 = vshll.u32 %v811_v27, 16  ;;  %1253 = vst [vmem:[#allocation2 + $0xb8] sm:$0xf] %v1083_v32  ;;  %v1770_v14 = vpack.c.b16 %v1745_v28, %v1744_v9  ;;  %2810 = vmatmul.bf16.gmra.mxu0 %v6322_v36  ;;  %v1279_v45 = vld [vmem:[#allocation2 + $0x58] sm:$0xf] }
 0x132   : > { %1256 = vst [vmem:[#allocation2 + $0xbc] sm:$0x1] %v1255_v33  ;;  %v654_v44 = vadd.f32 %v7206_v41, %v618_v37  ;;  %v1319_v46 = vld [vmem:[#allocation2 + $0x5c] sm:$0x1]  ;;  %v826_v51 = vpack.c.bf16 %v685_v43, %v685_v43  ;;  %v1500_v30 = vshrl.u32 %v1278_v31, 16  ;;  %v1503_v52 = vshll.u32 %v1278_v31, 16 }
 0x133   : > { %v960_v49 = vrot.slane %v958_v39, 7  ;;  %795 = vst [vmem:[#allocation2 + $0xc8] sm:$0x1] %v794_v38  ;;  %v1509_v56 = vshll.u32 %v1279_v45, 16  ;;  %v1513_v54 = vshrl.u32 %v1279_v45, 16  ;;  %v1519_v57 = vshll.u32 %v1319_v46, 16 }
 0x134   : > { %1882 = vmatmul.bf16.gmra.mxu1 %v1770_v14  ;;  %v686_v55 = vmax.f32 %v654_v44, 0.0  ;;  %v1086_v58 = vshrl.u32 %v826_v51, 16  ;;  %v1089_v47 = vshll.u32 %v826_v51, 16  ;;  %v1502_v59 = vrot.slane %v1500_v30, 4  ;;  %v2893_v2 = vld [vmem:[#allocation2 + $0xc] sm:$0xf] }
 0x135   : > { %v963_v19 = vor.u32 %v961_v40, %v960_v49  ;;  %v965_v41 = vrot.slane %v960_v49, 4  ;;  %v1505_v61 = vrot.slane %v1503_v52, 5  ;;  %v1511_v50 = vrot.slane %v1509_v56, 5  ;;  %v7302_v39 = vld [vmem:[#allocation2 + $0x10] sm:$0xf] }
 0x136   : > { %v827_v35 = vpack.c.bf16 %v686_v55, %v686_v55  ;;  %v1088_v0 = vrot.slane %v1086_v58, 7  ;;  %v1515_v60 = vrot.slane %v1513_v54, 4  ;;  %v1257_v3 = vld [vmem:[#allocation2 + $0xc0] sm:$0xf]  ;;  %v2086_v6 = vpop.f32.mrf.mxu2  ;;  %v1521_v25 = vrot.slane %v1519_v57, 5  ;;  %v6314_v14 = vld [vmem:[%s8681_s2 + $0xb0] sm:$0xff] }
 0x137   : > { %v964_v62 = vsel %vm6999_vm11, %v956_v15, %v963_v19  ;;  %v1206_v63 = vsel %vm6892_vm2, %v965_v41, %v1205_v53  ;;  %v1280_v1 = vld [vmem:[#allocation2 + $0x60] sm:$0xf]  ;;  %v1506_v23 = vor.u32 %v1505_v61, %v1502_v59  ;;  %v7290_v15 = vadd.f32 %v2086_v6, %v1853_v7  ;;  %2459 = vmatpush.bf16.msrb.mxu3 %v6314_v14  ;;  %v7307_v52 = vld [vmem:[#allocation2 + $0x14] sm:$0x1]  ;;  %v1282_v41 = vld [vmem:[#allocation2 + $0x6c] sm:$0xf] }
 0x138   : > { %1204 = vst [vmem:[#allocation2 + $0x64] sm:$0xf] %v964_v62  ;;  %v1094_v4 = vshrl.u32 %v827_v35, 16  ;;  %v1097_v5 = vshll.u32 %v827_v35, 16  ;;  %v1091_v9 = vor.u32 %v1089_v47, %v1088_v0  ;;  %v1092_v11 = vrot.slane %v1088_v0, 4  ;;  %v6324_v14 = vld [vmem:[#allocation2 + $0x6c] sm:$0xff] }
 0x139   : > { %1207 = vst [vmem:[#allocation2 + $0x68] sm:$0x1] %v1206_v63  ;;  %v1516_v16 = vor.u32 %v1515_v60, %v1511_v50  ;;  %v1507_v17 = vrot.slane %v1506_v23, 4  ;;  %v1524_v18 = vshrl.u32 %v1280_v1, 16  ;;  %v1527_v20 = vshll.u32 %v1280_v1, 16 }
 0x13a   : > { %v1096_v13 = vrot.slane %v1094_v4, 7  ;;  %v1258_v21 = vsel %vm6984_vm9, %v1091_v9, %v1257_v3  ;;  %v1261_v22 = vld [vmem:[#allocation2 + $0xc8] sm:$0x1]  ;;  %v2942_v27 = vshrl.u32 %v2893_v2, 16  ;;  %v2945_v36 = vshll.u32 %v2893_v2, 16 }
 0x13b   : > { %v1517_v24 = vrot.slane %v1516_v16, 4  ;;  %1259 = vst [vmem:[#allocation2 + $0xc0] sm:$0xf] %v1258_v21  ;;  %v1512_v31 = vsel %vm6942_vm7, %v1507_v17, %v1511_v50  ;;  %v1526_v26 = vrot.slane %v1524_v18, 4  ;;  %v1529_v34 = vrot.slane %v1527_v20, 5 }
 0x13c   : > { %v1099_v28 = vor.u32 %v1097_v5, %v1096_v13  ;;  %v1101_v29 = vrot.slane %v1096_v13, 4  ;;  %v1746_v33 = vunpack.c.l.b16 %v1512_v31  ;;  %v2944_v40 = vrot.slane %v2942_v27, 4  ;;  %v1283_v59 = vld [vmem:[#allocation2 + $0x70] sm:$0xf]  ;;  %v7314_v5 = vld [vmem:[#allocation2 + $0x1c] sm:$0xf] }
 0x13d   : > { %v1522_v32 = vsel %vm6942_vm7, %v1517_v24, %v1521_v25  ;;  %v1530_v12 = vor.u32 %v1529_v34, %v1526_v26  ;;  %v2947_v42 = vrot.slane %v2945_v36, 5  ;;  %v2951_v53 = vshll.u32 %v7302_v39, 16  ;;  %v1321_v7 = vld [vmem:[#allocation2 + $0x74] sm:$0x1] }
 0x13e   : > { %v1100_v48 = vsel %vm6999_vm11, %v1092_v11, %v1099_v28  ;;  %v1262_v37 = vsel %vm6892_vm2, %v1101_v29, %v1261_v22  ;;  %v1747_v38 = vunpack.c.l.b16 %v1522_v32  ;;  %v2955_v55 = vshrl.u32 %v7302_v39, 16  ;;  %v7318_v20 = vpop.f32.mrf.mxu2  ;;  %v2896_v22 = vld [vmem:[#allocation2 + $0x18] sm:$0xf] }
 0x13f   : > { %1260 = vst [vmem:[#allocation2 + $0xc4] sm:$0xf] %v1100_v48  ;;  %v6284_v43 = vld [vmem:[#allocation2 + $0x60] sm:$0xff]  ;;  %v2953_v57 = vrot.slane %v2951_v53, 5  ;;  %v1531_v58 = vrot.slane %v1530_v12, 4  ;;  %v2961_v35 = vshll.u32 %v7307_v52, 16  ;;  %v2948_v50 = vor.u32 %v2947_v42, %v2944_v40 }
 0x140   : > { %v6323_v44 = vld [vmem:[#allocation2 + $0x60] sm:$0xff]  ;;  %1263 = vst [vmem:[#allocation2 + $0xc8] sm:$0x1] %v1262_v37  ;;  %v1771_v46 = vpack.c.b16 %v1747_v38, %v1746_v33  ;;  %v1320_v49 = vld [vmem:[#allocation2 + $0x68] sm:$0x1]  ;;  %2125 = vmatmul.bf16.gmra.mxu2 %v6284_v43  ;;  %v2957_v19 = vrot.slane %v2955_v55, 4  ;;  %v7335_v55 = vpop.f32.mrf.mxu1 }
 0x141   : > { %v1281_v45 = vld [vmem:[#allocation2 + $0x64] sm:$0xf]  ;;  %v1543_v10 = vshll.u32 %v1320_v49, 16  ;;  %2815 = vmatmul.bf16.gmra.mxu0 %v6323_v44  ;;  %v1548_v60 = vshrl.u32 %v1282_v41, 16  ;;  %v1551_v1 = vshll.u32 %v1282_v41, 16  ;;  %v1557_v3 = vshll.u32 %v1283_v59, 16 }
 0x142   : > { %v1533_v51 = vshll.u32 %v1281_v45, 16  ;;  %v1537_v30 = vshrl.u32 %v1281_v45, 16  ;;  %v2958_v62 = vor.u32 %v2957_v19, %v2953_v57  ;;  %v1561_v4 = vshrl.u32 %v1283_v59, 16  ;;  %8699 = vst [vmem:[#allocation6_spill] sm:$0xff] %v7318_v20  ;;  %v6285_v40 = vld [vmem:[#allocation2 + $0x6c] sm:$0xff] }
 0x143   : > { %v1545_v61 = vrot.slane %v1543_v10, 5  ;;  %v2963_v6 = vrot.slane %v2961_v35, 5  ;;  %v1550_v9 = vrot.slane %v1548_v60, 4  ;;  %v1553_v11 = vrot.slane %v1551_v1, 5  ;;  %v1284_v49 = vld [vmem:[#allocation2 + $0x78] sm:$0xf] }
 0x144   : > { %v1535_v56 = vrot.slane %v1533_v51, 5  ;;  %v1539_v54 = vrot.slane %v1537_v30, 4  ;;  %1887 = vmatmul.bf16.gmra.mxu1 %v1771_v46  ;;  %v2959_v2 = vrot.slane %v2958_v62, 4  ;;  %v1559_v17 = vrot.slane %v1557_v3, 5  ;;  %v1285_v12 = vld [vmem:[#allocation2 + $0x7c] sm:$0xf] }
 0x145   : > { %v1563_v18 = vrot.slane %v1561_v4, 4  ;;  %v2949_v21 = vrot.slane %v2948_v50, 4  ;;  %v1567_v27 = vshll.u32 %v1321_v7, 16  ;;  %v2975_v28 = vshll.u32 %v7314_v5, 16  ;;  %v7330_v51 = vld [vmem:[#allocation2 + $0x20] sm:$0x1] }
 0x146   : > { %v1540_v47 = vor.u32 %v1539_v54, %v1535_v56  ;;  %v1536_v63 = vsel %vm6942_vm7, %v1531_v58, %v1535_v56  ;;  %v2964_v25 = vsel %vm6942_vm7, %v2959_v2, %v2963_v6  ;;  %v1554_v29 = vor.u32 %v1553_v11, %v1550_v9  ;;  %v6313_v42 = vld [vmem:[%s8681_s2 + $0xa8] sm:$0xff]  ;;  %8701 = vst [vmem:[#allocation8_spill] sm:$0xff] %v7335_v55  ;;  %v1322_v6 = vld [vmem:[#allocation2 + $0x80] sm:$0x1]  ;;  %v2899_v9 = vld [vmem:[#allocation2 + $0x24] sm:$0xf] }
 0x147   : > { %v1748_v16 = vunpack.c.l.b16 %v1536_v63  ;;  %v1564_v31 = vor.u32 %v1563_v18, %v1559_v17  ;;  %v2979_v26 = vshrl.u32 %v7314_v5, 16  ;;  %v2954_v32 = vsel %vm6942_vm7, %v2949_v21, %v2953_v57  ;;  %2460 = vmatpush.bf16.msrb.mxu3 %v6313_v42  ;;  %v7345_v4 = vld [vmem:[#allocation2 + $0x28] sm:$0xf]  ;;  %v6482_v55 = vld [vmem:[#allocation2 + $0x64] sm:$0xf] }
 0x148   : > { %v1541_v0 = vrot.slane %v1540_v47, 4  ;;  %v2966_v33 = vshrl.u32 %v2896_v22, 16  ;;  %v2969_v34 = vshll.u32 %v2896_v22, 16  ;;  %v3343_v36 = vunpack.c.l.b16 %v2964_v25 }
 0x149   : > { %v7328_v37 = vrot.slane %v2975_v28, 5  ;;  %v2981_v38 = vrot.slane %v2979_v26, 4  ;;  %v1569_v43 = vrot.slane %v1567_v27, 5  ;;  %v3342_v44 = vunpack.c.l.b16 %v2954_v32 }
 0x14a   : > { %v1546_v23 = vsel %vm6942_vm7, %v1541_v0, %v1545_v61  ;;  %v1555_v45 = vrot.slane %v1554_v29, 4  ;;  %v1565_v46 = vrot.slane %v1564_v31, 4  ;;  %v2968_v30 = vrot.slane %v2966_v33, 4 }
 0x14b   : > { %v1749_v13 = vunpack.c.l.b16 %v1546_v23  ;;  %v2971_v10 = vrot.slane %v2969_v34, 5  ;;  %v3374_v53 = vpack.c.b16 %v3343_v36, %v3342_v44  ;;  %v2982_v56 = vor.u32 %v2981_v38, %v7328_v37  ;;  %v6286_v44 = vld [vmem:[#allocation2 + $0x78] sm:$0xff] }
 0x14c   : > { %v1572_v54 = vshrl.u32 %v1284_v49, 16  ;;  %v1575_v57 = vshll.u32 %v1284_v49, 16  ;;  %v1581_v19 = vshll.u32 %v1285_v12, 16  ;;  %v1585_v41 = vshrl.u32 %v1285_v12, 16 }
 0x14d   : > { %v1772_v24 = vpack.c.b16 %v1749_v13, %v1748_v16  ;;  %v1560_v47 = vsel %vm6942_vm7, %v1555_v45, %v1559_v17  ;;  %v1570_v35 = vsel %vm6942_vm7, %v1565_v46, %v1569_v43  ;;  %v2985_v59 = vshll.u32 %v7330_v51, 16  ;;  %v6325_v45 = vld [vmem:[#allocation2 + $0x78] sm:$0xff] }
 0x14e   : > { %v7326_v48 = vpop.f32.mrf.mxu0  ;;  %v2972_v61 = vor.u32 %v2971_v10, %v2968_v30  ;;  %v2983_v62 = vrot.slane %v2982_v56, 4  ;;  %v1574_v63 = vrot.slane %v1572_v54, 4  ;;  %v1577_v0 = vrot.slane %v1575_v57, 5  ;;  %v1286_v30 = vld [vmem:[#allocation2 + $0x84] sm:$0xf] }
 0x14f   : > { %1892 = vmatmul.bf16.vlgmr.msra.gmra.mxu3 %v1772_v24  ;;  %8700 = vst [vmem:[#allocation7_spill] sm:$0xff] %v7326_v48  ;;  %v1750_v60 = vunpack.c.l.b16 %v1560_v47  ;;  %v1751_v1 = vunpack.c.l.b16 %v1570_v35  ;;  %v1583_v2 = vrot.slane %v1581_v19, 5  ;;  %v1587_v3 = vrot.slane %v1585_v41, 4  ;;  %v1287_v10 = vld [vmem:[#allocation2 + $0x88] sm:$0xf]  ;;  %v6312_v54 = vld [vmem:[%s8681_s2 + $0xa0] sm:$0xff] }
 0x150   : > { %2130 = vmatmul.bf16.gmra.mxu2 %v6285_v40  ;;  %v2987_v23 = vrot.slane %v2985_v59, 5  ;;  %v2973_v7 = vrot.slane %v2972_v61, 4  ;;  %v1578_v16 = vor.u32 %v1577_v0, %v1574_v63  ;;  %v2999_v13 = vshll.u32 %v7345_v4, 16  ;;  %v3575_v57 = vld [vmem:[#allocation2 + $0xc] sm:$0xe]  ;;  %2461 = vmatpush.bf16.msrb.mxu3 %v6312_v54 }
 0x151   : > { %2820 = vmatmul.bf16.gmra.mxu0 %v6324_v14  ;;  %v3003_v17 = vshrl.u32 %v7345_v4, 16  ;;  %v1773_v18 = vpack.c.b16 %v1751_v1, %v1750_v60  ;;  %v1588_v21 = vor.u32 %v1587_v3, %v1583_v2  ;;  %v1591_v22 = vshll.u32 %v1322_v6, 16 }
 0x152   : > { %v2988_v11 = vsel %vm6942_vm7, %v2983_v62, %v2987_v23  ;;  %v2978_v27 = vsel %vm6942_vm7, %v2973_v7, %v7328_v37  ;;  %v2990_v28 = vshrl.u32 %v2899_v9, 16  ;;  %v2993_v29 = vshll.u32 %v2899_v9, 16  ;;  %v7361_v37 = vld [vmem:[#allocation2 + $0x2c] sm:$0x1]  ;;  %v2903_v9 = vld [vmem:[#allocation2 + $0x34] sm:$0xf] }
 0x153   : > { %v2091_v58 = vpop.f32.mrf.mxu2  ;;  %v3345_v26 = vunpack.c.l.b16 %v2988_v11  ;;  %v1579_v33 = vrot.slane %v1578_v16, 4  ;;  %v7358_v34 = vrot.slane %v2999_v13, 5  ;;  %v3005_v36 = vrot.slane %v3003_v17, 4  ;;  %v1323_v11 = vld [vmem:[#allocation2 + $0x8c] sm:$0x1] }
 0x154   : > { %3462 = vmatmul.bf16.vlgmr.msrb.gmra.mxu1 %v3374_v53  ;;  %v3641_v38 = vrot.slane %v7302_v39, 5  ;;  %v3344_v40 = vunpack.c.l.b16 %v2978_v27  ;;  %v1589_v14 = vrot.slane %v1588_v21, 4  ;;  %v1593_v43 = vrot.slane %v1591_v22, 5 }
 0x155   : > { %v2992_v46 = vrot.slane %v2990_v28, 4  ;;  %v2995_v49 = vrot.slane %v2993_v29, 5  ;;  %v1584_v42 = vsel %vm6942_vm7, %v1579_v33, %v1583_v2  ;;  %v3006_v39 = vor.u32 %v3005_v36, %v7358_v34 }
 0x156   : > { %v7343_v50 = vpop.f32.mrf.mxu0  ;;  %v3375_v12 = vpack.c.b16 %v3345_v26, %v3344_v40  ;;  %v1596_v53 = vshrl.u32 %v1286_v30, 16  ;;  %v1599_v56 = vshll.u32 %v1286_v30, 16  ;;  %v3643_v19 = vrot.slane %v3641_v38, 4  ;;  %v2902_v26 = vld [vmem:[#allocation2 + $0x30] sm:$0xf] }
 0x157   : > { %8702 = vst [vmem:[#allocation9_spill] sm:$0xff] %v7343_v50  ;;  %v1594_v41 = vsel %vm6942_vm7, %v1589_v14, %v1593_v43  ;;  %v1609_v47 = vshrl.u32 %v1287_v10, 16  ;;  %v3644_v35 = vrot.slane %v7307_v52, 5  ;;  %v3009_v62 = vshll.u32 %v7361_v37, 16 }
 0x158   : > { %v1752_v60 = vunpack.c.l.b16 %v1584_v42  ;;  %v2996_v1 = vor.u32 %v2995_v49, %v2992_v46  ;;  %v5974_v2 = vrot.slane %v3575_v57, 9  ;;  %v1753_v52 = vunpack.c.l.b16 %v1594_v41 }
 0x159   : > { %v3007_v23 = vrot.slane %v3006_v39, 4  ;;  %v1598_v6 = vrot.slane %v1596_v53, 4  ;;  %v1601_v7 = vrot.slane %v1599_v56, 5  ;;  %v1611_v13 = vrot.slane %v1609_v47, 4 }
 0x15a   : > { %v3642_v17 = vsel %vm7375_vm14, %v5974_v2, %v3641_v38  ;;  %v3011_v21 = vrot.slane %v3009_v62, 5  ;;  %v3023_v22 = vshll.u32 %v2903_v9, 16  ;;  %v2997_v27 = vrot.slane %v2996_v1, 4  ;;  %v1289_v1 = vld [vmem:[#allocation2 + $0x94] sm:$0xf] }
 0x15b   : > { %v2093_v25 = vpop.f32.mrf.mxu2  ;;  %v1602_v28 = vor.u32 %v1601_v7, %v1598_v6  ;;  %v1615_v29 = vshll.u32 %v1323_v11, 16  ;;  %v3027_v33 = vshrl.u32 %v2903_v9, 16  ;;  %v1774_v36 = vpack.c.b16 %v1753_v52, %v1752_v60  ;;  %v1288_v60 = vld [vmem:[#allocation2 + $0x90] sm:$0xf]  ;;  %v7409_v6 = vld [vmem:[#allocation2 + $0x38] sm:$0x1] }
 0x15c   : > { %v3012_v40 = vsel %vm6942_vm7, %v3007_v23, %v3011_v21  ;;  %v3002_v46 = vsel %vm6942_vm7, %v2997_v27, %v7358_v34  ;;  %v3014_v49 = vshrl.u32 %v2902_v26, 16  ;;  %v7398_v30 = vrot.slane %v3023_v22, 5  ;;  %v6287_v34 = vld [vmem:[#allocation2 + $0x84] sm:$0xff] }
 0x15d   : > { %v1858_v24 = vpop.f32.mrf.mxu1  ;;  %v1603_v39 = vrot.slane %v1602_v28, 4  ;;  %v1617_v53 = vrot.slane %v1615_v29, 5  ;;  %v3029_v56 = vrot.slane %v3027_v33, 4  ;;  %v3346_v47 = vunpack.c.l.b16 %v3002_v46 }
 0x15e   : > { %v7354_v31 = vadd.f32 %v2091_v58, %v1858_v24  ;;  %v7356_v32 = vpop.f32.mrf.mxu0  ;;  %v1605_v58 = vshll.u32 %v1287_v10, 16  ;;  %v3768_v24 = vunpack.c.l.b16 %v3642_v17  ;;  %v3347_v10 = vunpack.c.l.b16 %v3012_v40 }
 0x15f   : > { %1897 = vmatmul.bf16.gmra.mxu3 %v1773_v18  ;;  %8703 = vst [vmem:[#allocation10_spill] sm:$0xff] %v7356_v32  ;;  %v3645_v18 = vsel %vm7375_vm14, %v3643_v19, %v3644_v35  ;;  %v6326_v35 = vld [vmem:[#allocation2 + $0x84] sm:$0xff]  ;;  %v1620_v11 = vshrl.u32 %v1288_v60, 16  ;;  %v1623_v21 = vshll.u32 %v1288_v60, 16  ;;  %v1629_v22 = vshll.u32 %v1289_v1, 16 }
 0x160   : > { %2135 = vmatmul.bf16.gmra.mxu2 %v6286_v44  ;;  %v7383_v16 = vrot.slane %v1605_v58, 5  ;;  %v3576_v44 = vld [vmem:[#allocation2 + $0x18] sm:$0xe]  ;;  %v3376_v23 = vpack.c.b16 %v3347_v10, %v3346_v47  ;;  %v3033_v28 = vshll.u32 %v7409_v6, 16 }
 0x161   : > { %2825 = vmatmul.bf16.gmra.mxu0 %v6325_v45  ;;  %v3648_v45 = vrot.slane %v7314_v5, 5  ;;  %v5975_v19 = vrot.slane %v3576_v44, 9  ;;  %v3651_v5 = vrot.slane %v7330_v51, 5  ;;  %v3030_v51 = vor.u32 %v3029_v56, %v7398_v30  ;;  %v1324_v56 = vld [vmem:[#allocation2 + $0x98] sm:$0x1] }
 0x162   : > { %v1612_v14 = vor.u32 %v1611_v13, %v7383_v16  ;;  %v1608_v7 = vsel %vm6942_vm7, %v1603_v39, %v7383_v16  ;;  %v2906_v13 = vld [vmem:[#allocation2 + $0x40] sm:$0xf]  ;;  %v1622_v44 = vrot.slane %v1620_v11, 4 }
 0x163   : > { %v2096_v61 = vpop.f32.mrf.mxu2  ;;  %v3650_v41 = vrot.slane %v3648_v45, 4  ;;  %v3649_v2 = vsel %vm7375_vm14, %v5975_v19, %v3648_v45  ;;  %v3047_v16 = vshll.u32 %v2906_v13, 16  ;;  %v1754_v40 = vunpack.c.l.b16 %v1608_v7 }
 0x164   : > { %3467 = vmatmul.bf16.gmra.mxu1 %v3375_v12  ;;  %v3017_v12 = vshll.u32 %v2902_v26, 16  ;;  %v1613_v57 = vrot.slane %v1612_v14, 4  ;;  %v3031_v26 = vrot.slane %v3030_v51, 4  ;;  %v3051_v45 = vshrl.u32 %v2906_v13, 16 }
 0x165   : > { %v1860_v59 = vpop.f32.mrf.mxu1  ;;  %v3652_v52 = vsel %vm7375_vm14, %v3650_v41, %v3651_v5  ;;  %v7432_v5 = vrot.slane %v3047_v16, 5 }
 0x166   : > { %v7379_v0 = vadd.f32 %v2093_v25, %v1860_v59  ;;  %v7381_v3 = vpop.f32.mrf.mxu0  ;;  %v3769_v25 = vunpack.c.l.b16 %v3645_v18  ;;  %v3016_v59 = vrot.slane %v3014_v49, 4  ;;  %v3019_v62 = vrot.slane %v3017_v12, 5 }
 0x167   : > { %8706 = vst [vmem:[#allocation11_spill] sm:$0xff] %v7381_v3  ;;  %v1618_v9 = vsel %vm6942_vm7, %v1613_v57, %v1617_v53  ;;  %v3771_v17 = vunpack.c.l.b16 %v3652_v52  ;;  %v1625_v49 = vrot.slane %v1623_v21, 5  ;;  %v1631_v12 = vrot.slane %v1629_v22, 5  ;;  %v2907_v52 = vld [vmem:[#allocation2 + $0x44] sm:$0x1] }
 0x168   : > { %v7392_v43 = vpack.c.b16 %v3769_v25, %v3768_v24  ;;  %v1633_v24 = vshrl.u32 %v1289_v1, 16  ;;  %v3770_v25 = vunpack.c.l.b16 %v3649_v2  ;;  %v3020_v27 = vor.u32 %v3019_v62, %v3016_v59 }
 0x169   : > { %v1755_v14 = vunpack.c.l.b16 %v1618_v9  ;;  %v3035_v53 = vrot.slane %v3033_v28, 5  ;;  %v3053_v59 = vrot.slane %v3051_v45, 4  ;;  %v1291_v28 = vld [vmem:[#allocation2 + $0xa0] sm:$0xf] }
 0x16a   : > { %v7423_v33 = vpack.c.b16 %v3771_v17, %v3770_v25  ;;  %v1635_v10 = vrot.slane %v1633_v24, 4  ;;  %v3021_v39 = vrot.slane %v3020_v27, 4  ;;  %v3057_v24 = vshll.u32 %v2907_v52, 16  ;;  %v1290_v27 = vld [vmem:[#allocation2 + $0x9c] sm:$0xf] }
 0x16b   : > { %v2098_v38 = vpop.f32.mrf.mxu2  ;;  %v1775_v57 = vpack.c.b16 %v1755_v14, %v1754_v40  ;;  %v3036_v41 = vsel %vm6942_vm7, %v3031_v26, %v3035_v53  ;;  %v3054_v13 = vor.u32 %v3053_v59, %v7432_v5  ;;  %v1644_v26 = vshrl.u32 %v1290_v27, 16  ;;  %v6310_v14 = vld [vmem:[%s8681_s2 + $0x90] sm:$0xff]  ;;  %v2909_v53 = vld [vmem:[#allocation2 + $0x4c] sm:$0xf] }
 0x16c   : > { %v3026_v19 = vsel %vm6942_vm7, %v3021_v39, %v7398_v30  ;;  %v3349_v1 = vunpack.c.l.b16 %v3036_v41  ;;  %v6288_v30 = vld [vmem:[#allocation2 + $0x90] sm:$0xff]  ;;  %v1647_v16 = vshll.u32 %v1290_v27, 16  ;;  %v1657_v40 = vshrl.u32 %v1291_v28, 16 }
 0x16d   : > { %v1863_v54 = vpop.f32.mrf.mxu1  ;;  %v3059_v39 = vrot.slane %v3057_v24, 5 }
 0x16e   : > { %v7400_v42 = vpop.f32.mrf.mxu0  ;;  %v7403_v58 = vadd.f32 %v2096_v61, %v1863_v54  ;;  %v6311_v61 = vld [vmem:[%s8681_s2 + $0x98] sm:$0xff]  ;;  %v1649_v41 = vrot.slane %v1647_v16, 5  ;;  %v6354_v16 = vld [vmem:[%s8681_s2 + $0x170] sm:$0xff] }
 0x16f   : > { %1902 = vmatmul.bf16.gmra.mxu3 %v1774_v36  ;;  %8707 = vst [vmem:[#allocation12_spill] sm:$0xff] %v7400_v42  ;;  %v2905_v54 = vld [vmem:[#allocation2 + $0x3c] sm:$0xf] }
 0x170   : > { %2140 = vmatmul.bf16.gmra.mxu2 %v6287_v34  ;;  %2462 = vmatpush.bf16.msrb.mxu3 %v6311_v61  ;;  %v1636_v34 = vor.u32 %v1635_v10, %v1631_v12  ;;  %v3038_v62 = vshrl.u32 %v2905_v54, 16  ;;  %v3041_v60 = vshll.u32 %v2905_v54, 16  ;;  %v6327_v61 = vld [vmem:[#allocation2 + $0x90] sm:$0xff] }
 0x171   : > { %2830 = vmatmul.bf16.gmra.mxu0 %v6326_v35  ;;  %v1639_v35 = vshll.u32 %v1324_v56, 16  ;;  %v3577_v56 = vld [vmem:[#allocation2 + $0x24] sm:$0xe] }
 0x172   : > { %v1637_v9 = vrot.slane %v1636_v34, 4  ;;  %v3040_v21 = vrot.slane %v3038_v62, 4  ;;  %v3043_v22 = vrot.slane %v3041_v60, 5  ;;  %v1659_v34 = vrot.slane %v1657_v40, 4 }
 0x173   : > { %v2101_v18 = vpop.f32.mrf.mxu2  ;;  %v1641_v11 = vrot.slane %v1639_v35, 5 }
 0x174   : > { %3472 = vmatmul.bf16.gmra.mxu1 %v3376_v23  ;;  %v3348_v23 = vunpack.c.l.b16 %v3026_v19  ;;  %v3044_v10 = vor.u32 %v3043_v22, %v3040_v21  ;;  %2463 = vmatpush.bf16.msrb.mxu3 %v6310_v14  ;;  %v1646_v19 = vrot.slane %v1644_v26, 4 }
 0x175   : > { %v1865_v36 = vpop.f32.mrf.mxu1  ;;  %v1642_v45 = vsel %vm6942_vm7, %v1637_v9, %v1641_v11 }
 0x176   : > { %v7421_v29 = vpop.f32.mrf.mxu0  ;;  %v7425_v46 = vadd.f32 %v2098_v38, %v1865_v36  ;;  %v1626_v38 = vor.u32 %v1625_v49, %v1622_v44  ;;  %v3377_v25 = vpack.c.b16 %v3349_v1, %v3348_v23  ;;  %v1653_v36 = vshll.u32 %v1291_v28, 16 }
 0x177   : > { %8708 = vst [vmem:[#allocation13_spill] sm:$0xff] %v7421_v29  ;;  %v3055_v49 = vrot.slane %v3054_v13, 4  ;;  %v1757_v59 = vunpack.c.l.b16 %v1642_v45  ;;  %v3071_v1 = vshll.u32 %v2909_v53, 16  ;;  %v1650_v9 = vor.u32 %v1649_v41, %v1646_v19  ;;  %v6355_v13 = vld [vmem:[%s8681_s2 + $0x178] sm:$0xff] }
 0x178   : > { %v1627_v7 = vrot.slane %v1626_v38, 4  ;;  %v7448_v38 = vrot.slane %v1653_v36, 5  ;;  %3880 = vmatpush.bf16.msra.mxu2 %v6355_v13 }
 0x179   : > { %v3060_v60 = vsel %vm6942_vm7, %v3055_v49, %v3059_v39  ;;  %v7468_v40 = vrot.slane %v3071_v1, 5 }
 0x17a   : > { %v1660_v11 = vor.u32 %v1659_v34, %v7448_v38  ;;  %v3351_v27 = vunpack.c.l.b16 %v3060_v60 }
 0x17b   : > { %v2103_v47 = vpop.f32.mrf.mxu2 }
 0x17c   : > { %v1661_v45 = vrot.slane %v1660_v11, 4  ;;  %3881 = vmatpush.bf16.msra.mxu2 %v6354_v16 }
 0x17e   : > { %v7434_v2 = vpop.f32.mrf.mxu0 }
 0x17f   : > { %1907 = vmatmul.bf16.gmra.mxu3 %v1775_v57  ;;  %8709 = vst [vmem:[#allocation14_spill] sm:$0xff] %v7434_v2  ;;  %v1868_v51 = vpop.f32.mrf.mxu1  ;;  %v1325_v57 = vld [vmem:[#allocation2 + $0xa4] sm:$0x1] }
 0x180   : > { %v7437_v17 = vadd.f32 %v2101_v18, %v1868_v51  ;;  %2145 = vmatmul.bf16.gmra.mxu2 %v6288_v30  ;;  %v1632_v18 = vsel %vm6942_vm7, %v1627_v7, %v1631_v12  ;;  %v3655_v12 = vrot.slane %v7345_v4, 5  ;;  %v1663_v23 = vshll.u32 %v1325_v57, 16  ;;  %v2908_v51 = vld [vmem:[#allocation2 + $0x48] sm:$0xf]  ;;  %v6328_v57 = vld [vmem:[#allocation2 + $0x9c] sm:$0xff] }
 0x181   : > { %2835 = vmatmul.bf16.gmra.mxu0 %v6327_v61  ;;  %v1756_v35 = vunpack.c.l.b16 %v1632_v18  ;;  %v3075_v30 = vshrl.u32 %v2909_v53, 16  ;;  %v5976_v61 = vrot.slane %v3577_v56, 9  ;;  %v3045_v7 = vrot.slane %v3044_v10, 4  ;;  %v6289_v56 = vld [vmem:[#allocation2 + $0x9c] sm:$0xff] }
 0x182   : > { %v3657_v4 = vrot.slane %v3655_v12, 4  ;;  %v3062_v28 = vshrl.u32 %v2908_v51, 16  ;;  %v3065_v26 = vshll.u32 %v2908_v51, 16  ;;  %v1665_v36 = vrot.slane %v1663_v23, 5  ;;  %v1292_v23 = vld [vmem:[#allocation2 + $0xa8] sm:$0xf] }
 0x183   : > { %v2106_v44 = vpop.f32.mrf.mxu2  ;;  %v1776_v21 = vpack.c.b16 %v1757_v59, %v1756_v35  ;;  %v3656_v22 = vsel %vm7375_vm14, %v5976_v61, %v3655_v12  ;;  %v3077_v14 = vrot.slane %v3075_v30, 4  ;;  %v1651_v18 = vrot.slane %v1650_v9, 4  ;;  %v2910_v35 = vld [vmem:[#allocation2 + $0x50] sm:$0x1]  ;;  %v1293_v51 = vld [vmem:[#allocation2 + $0xac] sm:$0xf] }
 0x184   : > { %3477 = vmatmul.bf16.gmra.mxu1 %v3377_v25  ;;  %v3050_v25 = vsel %vm6942_vm7, %v3045_v7, %v7432_v5  ;;  %v3772_v49 = vunpack.c.l.b16 %v3656_v22  ;;  %v3064_v59 = vrot.slane %v3062_v28, 4  ;;  %v3067_v60 = vrot.slane %v3065_v26, 5 }
 0x185   : > { %v3350_v10 = vunpack.c.l.b16 %v3050_v25  ;;  %v1656_v12 = vsel %vm6942_vm7, %v1651_v18, %v7448_v38  ;;  %v3078_v1 = vor.u32 %v3077_v14, %v7468_v40  ;;  %v1668_v30 = vshrl.u32 %v1292_v23, 16  ;;  %v6309_v38 = vld [vmem:[%s8681_s2 + $0x88] sm:$0xff]  ;;  %v1326_v18 = vld [vmem:[#allocation2 + $0xb0] sm:$0x1] }
 0x186   : > { %v7446_v54 = vpop.f32.mrf.mxu0  ;;  %v1671_v61 = vshll.u32 %v1292_v23, 16  ;;  %v1677_v7 = vshll.u32 %v1293_v51, 16  ;;  %v1681_v9 = vshrl.u32 %v1293_v51, 16  ;;  %v3081_v13 = vshll.u32 %v2910_v35, 16  ;;  %2464 = vmatpush.bf16.msrb.mxu3 %v6309_v38 }
 0x187   : > { %8710 = vst [vmem:[#allocation15_spill] sm:$0xff] %v7446_v54  ;;  %v1870_v62 = vpop.f32.mrf.mxu1  ;;  %v3378_v34 = vpack.c.b16 %v3351_v27, %v3350_v10  ;;  %v3079_v25 = vrot.slane %v3078_v1, 4  ;;  %v1670_v27 = vrot.slane %v1668_v30, 4  ;;  %v6350_v1 = vld [vmem:[%s8681_s2 + $0x150] sm:$0xff] }
 0x188   : > { %v7453_v52 = vadd.f32 %v2103_v47, %v1870_v62  ;;  %v3658_v47 = vrot.slane %v7361_v37, 5  ;;  %v1666_v62 = vsel %vm6942_vm7, %v1661_v45, %v1665_v36  ;;  %v1673_v28 = vrot.slane %v1671_v61, 5  ;;  %v2912_v36 = vld [vmem:[#allocation2 + $0x58] sm:$0xf]  ;;  %v6386_v30 = vld [vmem:[%s8681_s2 + $0x1f0] sm:$0xff] }
 0x189   : > { %v1759_v22 = vunpack.c.l.b16 %v1666_v62  ;;  %v7493_v26 = vrot.slane %v1677_v7, 5  ;;  %v1683_v16 = vrot.slane %v1681_v9, 4  ;;  %v1687_v62 = vshll.u32 %v1326_v18, 16  ;;  %v6385_v18 = vld [vmem:[%s8681_s2 + $0x1e8] sm:$0xff] }
 0x18a   : > { %v3659_v37 = vsel %vm7375_vm14, %v3657_v4, %v3658_v47  ;;  %v6352_v4 = vld [vmem:[%s8681_s2 + $0x160] sm:$0xff]  ;;  %v3068_v47 = vor.u32 %v3067_v60, %v3064_v59  ;;  %v1674_v59 = vor.u32 %v1673_v28, %v1670_v27 }
 0x18b   : > { %v2108_v24 = vpop.f32.mrf.mxu2  ;;  %v3773_v5 = vunpack.c.l.b16 %v3659_v37  ;;  %v3083_v37 = vrot.slane %v3081_v13, 5 }
 0x18c   : > { %v1675_v13 = vrot.slane %v1674_v59, 4 }
 0x18d   : > { %v7474_v19 = vpack.c.b16 %v3773_v5, %v3772_v49  ;;  %v3069_v5 = vrot.slane %v3068_v47, 4  ;;  %v3084_v10 = vsel %vm6942_vm7, %v3079_v25, %v3083_v37  ;;  %v6329_v47 = vld [vmem:[#allocation2 + $0xa8] sm:$0xff] }
 0x18e   : > { %v7472_v39 = vpop.f32.mrf.mxu0  ;;  %v3353_v61 = vunpack.c.l.b16 %v3084_v10  ;;  %v6349_v37 = vld [vmem:[%s8681_s2 + $0x148] sm:$0xff] }
 0x18f   : > { %1912 = vmatmul.bf16.gmra.mxu3 %v1776_v21  ;;  %8711 = vst [vmem:[#allocation16_spill] sm:$0xff] %v7472_v39  ;;  %v1873_v53 = vpop.f32.mrf.mxu1  ;;  %v1758_v21 = vunpack.c.l.b16 %v1656_v12  ;;  %v1684_v12 = vor.u32 %v1683_v16, %v7493_v26 }
 0x190   : > { %v7476_v41 = vadd.f32 %v2106_v44, %v1873_v53  ;;  %2150 = vmatmul.bf16.gmra.mxu2 %v6289_v56  ;;  %v6353_v44 = vld [vmem:[%s8681_s2 + $0x168] sm:$0xff]  ;;  %v2911_v53 = vld [vmem:[#allocation2 + $0x54] sm:$0xf]  ;;  %v3095_v56 = vshll.u32 %v2912_v36, 16 }
 0x191   : > { %2840 = vmatmul.bf16.gmra.mxu0 %v6328_v57  ;;  %3882 = vmatpush.bf16.msra.mxu2 %v6353_v44  ;;  %v3099_v57 = vshrl.u32 %v2912_v36, 16  ;;  %v1777_v35 = vpack.c.b16 %v1759_v22, %v1758_v21  ;;  %v3074_v44 = vsel %vm6942_vm7, %v3069_v5, %v7468_v40  ;;  %v3086_v23 = vshrl.u32 %v2911_v53, 16  ;;  %v6290_v22 = vld [vmem:[#allocation2 + $0xa8] sm:$0xff]  ;;  %v2913_v40 = vld [vmem:[#allocation2 + $0x5c] sm:$0x1] }
 0x192   : > { %v3089_v51 = vshll.u32 %v2911_v53, 16  ;;  %v7519_v7 = vrot.slane %v3095_v56, 5  ;;  %v1685_v38 = vrot.slane %v1684_v12, 4  ;;  %v3352_v21 = vunpack.c.l.b16 %v3074_v44  ;;  %v1294_v5 = vld [vmem:[#allocation2 + $0xb4] sm:$0xf]  ;;  %v6384_v44 = vld [vmem:[%s8681_s2 + $0x1e0] sm:$0xff] }
 0x193   : > { %v2111_v11 = vpop.f32.mrf.mxu2  ;;  %v3101_v9 = vrot.slane %v3099_v57, 4  ;;  %v3088_v27 = vrot.slane %v3086_v23, 4  ;;  %v1295_v56 = vld [vmem:[#allocation2 + $0xb8] sm:$0xf]  ;;  %v1692_v57 = vshrl.u32 %v1294_v5, 16  ;;  %v3105_v59 = vshll.u32 %v2913_v40, 16 }
 0x194   : > { %3482 = vmatmul.bf16.gmra.mxu1 %v3378_v34  ;;  %v6351_v34 = vld [vmem:[%s8681_s2 + $0x158] sm:$0xff]  ;;  %v3091_v28 = vrot.slane %v3089_v51, 5  ;;  %v3379_v36 = vpack.c.b16 %v3353_v61, %v3352_v21  ;;  %v1701_v12 = vshll.u32 %v1295_v56, 16 }
 0x195   : > { %3883 = vmatpush.bf16.msra.mxu2 %v6352_v4  ;;  %v1689_v4 = vrot.slane %v1687_v62, 5  ;;  %v1705_v62 = vshrl.u32 %v1295_v56, 16  ;;  %v1694_v61 = vrot.slane %v1692_v57, 4  ;;  %v3107_v21 = vrot.slane %v3105_v59, 5  ;;  %v6382_v59 = vld [vmem:[%s8681_s2 + $0x1d0] sm:$0xff] }
 0x196   : > { %v7497_v49 = vpop.f32.mrf.mxu0 }
 0x197   : > { %v1875_v14 = vpop.f32.mrf.mxu1  ;;  %8712 = vst [vmem:[#allocation17_spill] sm:$0xff] %v7497_v49  ;;  %v1690_v53 = vsel %vm6942_vm7, %v1685_v38, %v1689_v4  ;;  %v1707_v38 = vrot.slane %v1705_v62, 4  ;;  %v2915_v4 = vld [vmem:[#allocation2 + $0x64] sm:$0xf] }
 0x198   : > { %v7495_v45 = vadd.f32 %v2108_v24, %v1875_v14  ;;  %v6387_v24 = vld [vmem:[%s8681_s2 + $0x1f8] sm:$0xff]  ;;  %v3102_v14 = vor.u32 %v3101_v9, %v7519_v7  ;;  %v1761_v51 = vunpack.c.l.b16 %v1690_v53 }
 0x199   : > { %3884 = vmatpush.bf16.msra.mxu2 %v6351_v34  ;;  %4877 = vmatpush.bf16.msra.mxu0 %v6387_v24  ;;  %v1695_v34 = vshll.u32 %v1294_v5, 16  ;;  %v6308_v24 = vld [vmem:[%s8681_s2 + $0x80] sm:$0xff] }
 0x19a   : > { %2465 = vmatpush.bf16.msrb.mxu3 %v6308_v24 }
 0x19b   : > { %v7508_v60 = vpop.f32.mrf.mxu2  ;;  %v1697_v9 = vrot.slane %v1695_v34, 5 }
 0x19d   : > { %3885 = vmatpush.bf16.msra.mxu2 %v6350_v1  ;;  %4878 = vmatpush.bf16.msra.mxu0 %v6386_v30  ;;  %v3092_v1 = vor.u32 %v3091_v28, %v3088_v27  ;;  %v3103_v30 = vrot.slane %v3102_v14, 4  ;;  %v2914_v28 = vld [vmem:[#allocation2 + $0x60] sm:$0xf]  ;;  %v3123_v14 = vshrl.u32 %v2915_v4, 16  ;;  %v1698_v5 = vor.u32 %v1697_v9, %v1694_v61  ;;  %v6330_v61 = vld [vmem:[#allocation2 + $0xb4] sm:$0xff] }
 0x19e   : > { %v7530_v10 = vpop.f32.mrf.mxu0  ;;  %v3110_v34 = vshrl.u32 %v2914_v28, 16  ;;  %v3113_v62 = vshll.u32 %v2914_v28, 16 }
 0x19f   : > { %1917 = vmatmul.bf16.gmra.mxu3 %v1777_v35  ;;  %8713 = vst [vmem:[#allocation18_spill] sm:$0xff] %v7530_v10  ;;  %v3108_v27 = vsel %vm6942_vm7, %v3103_v30, %v3107_v21  ;;  %v6291_v30 = vld [vmem:[#allocation2 + $0xb4] sm:$0xff] }
 0x1a0   : > { %2155 = vmatmul.bf16.gmra.mxu2 %v6290_v22  ;;  %v1327_v22 = vld [vmem:[#allocation2 + $0xbc] sm:$0x1] }
 0x1a1   : > { %v1878_v25 = vpop.f32.mrf.mxu1  ;;  %2845 = vmatmul.bf16.gmra.mxu0 %v6329_v47  ;;  %3886 = vmatpush.bf16.msra.mxu2 %v6349_v37  ;;  %v6383_v37 = vld [vmem:[%s8681_s2 + $0x1d8] sm:$0xff]  ;;  %v1711_v53 = vshll.u32 %v1327_v22, 16 }
 0x1a2   : > { %v7521_v16 = vadd.f32 %v2111_v11, %v1878_v25  ;;  %v1680_v11 = vsel %vm6942_vm7, %v1675_v13, %v7493_v26  ;;  %v6348_v26 = vld [vmem:[%s8681_s2 + $0x140] sm:$0xff]  ;;  %4879 = vmatpush.bf16.msra.mxu0 %v6385_v18  ;;  %v1703_v13 = vrot.slane %v1701_v12, 5  ;;  %v3093_v25 = vrot.slane %v3092_v1, 4 }
 0x1a3   : > { %v2116_v35 = vpop.f32.mrf.mxu2  ;;  %v1760_v23 = vunpack.c.l.b16 %v1680_v11  ;;  %v3355_v12 = vunpack.c.l.b16 %v3108_v27  ;;  %v1699_v1 = vrot.slane %v1698_v5, 4  ;;  %v6380_v5 = vld [vmem:[%s8681_s2 + $0x1c0] sm:$0xff] }
 0x1a4   : > { %3487 = vmatmul.bf16.gmra.mxu1 %v3379_v36  ;;  %v3119_v36 = vshll.u32 %v2915_v4, 16  ;;  %v1708_v11 = vor.u32 %v1707_v38, %v1703_v13  ;;  %v2916_v38 = vld [vmem:[#allocation2 + $0x68] sm:$0x1] }
 0x1a5   : > { %3887 = vmatpush.bf16.msra.mxu2 %v6348_v26  ;;  %v1778_v18 = vpack.c.b16 %v1761_v51, %v1760_v23  ;;  %v3125_v26 = vrot.slane %v3123_v14, 4  ;;  %v1713_v23 = vrot.slane %v1711_v53, 5  ;;  %v6381_v4 = vld [vmem:[%s8681_s2 + $0x1c8] sm:$0xff]  ;;  %v1704_v27 = vsel %vm6942_vm7, %v1699_v1, %v1703_v13  ;;  %v6379_v14 = vld [vmem:[%s8681_s2 + $0x1b8] sm:$0xff] }
 0x1a6   : > { %4880 = vmatpush.bf16.msra.mxu0 %v6384_v44  ;;  %v7554_v57 = vpop.f32.mrf.mxu0  ;;  %v7562_v24 = vrot.slane %v3119_v36, 5  ;;  %v1709_v44 = vrot.slane %v1708_v11, 4  ;;  %v3129_v36 = vshll.u32 %v2916_v38, 16  ;;  %v1762_v11 = vunpack.c.l.b16 %v1704_v27  ;;  %4195 = vmatpush.bf16.msra.mxu3 %v6379_v14  ;;  %v2917_v1 = vld [vmem:[#allocation2 + $0x6c] sm:$0xf] }
 0x1a7   : > { %8714 = vst [vmem:[#allocation19_spill] sm:$0xff] %v7554_v57  ;;  %v3137_v27 = vshll.u32 %v2917_v1, 16 }
 0x1a8   : > { %v1714_v28 = vsel %vm6942_vm7, %v1709_v44, %v1713_v23  ;;  %v7582_v44 = vld [vmem:[#allocation2 + $0x70] sm:$0xf] }
 0x1a9   : > { %v1880_v47 = vpop.f32.mrf.mxu1  ;;  %v1763_v53 = vunpack.c.l.b16 %v1714_v28  ;;  %v3143_v28 = vshll.u32 %v7582_v44, 16 }
 0x1aa   : > { %v7547_v40 = vadd.f32 %v7508_v60, %v1880_v47  ;;  %v3098_v60 = vsel %vm6942_vm7, %v3093_v25, %v7519_v7  ;;  %4881 = vmatpush.bf16.msra.mxu0 %v6383_v37  ;;  %v3112_v7 = vrot.slane %v3110_v34, 4  ;;  %v3115_v47 = vrot.slane %v3113_v62, 5  ;;  %v4317_v37 = vld [vmem:[#allocation2 + $0x1c] sm:$0xf] }
 0x1ab   : > { %v2118_v56 = vpop.f32.mrf.mxu2  ;;  %v3354_v51 = vunpack.c.l.b16 %v3098_v60  ;;  %v3126_v25 = vor.u32 %v3125_v26, %v7562_v24  ;;  %v4374_v62 = vshll.u32 %v4317_v37, 16  ;;  %v3131_v26 = vrot.slane %v3129_v36, 5 }
 0x1ac   : > { %v3116_v13 = vor.u32 %v3115_v47, %v3112_v7  ;;  %v4378_v23 = vshrl.u32 %v4317_v37, 16  ;;  %v1779_v7 = vpack.c.b16 %v1763_v53, %v1762_v11  ;;  %v2166_v47 = vld [vmem:[#allocation2] sm:$0xe]  ;;  %v3147_v36 = vshrl.u32 %v7582_v44, 16 }
 0x1ad   : > { %v3380_v22 = vpack.c.b16 %v3355_v12, %v3354_v51  ;;  %v3127_v60 = vrot.slane %v3126_v25, 4  ;;  %v3134_v25 = vshrl.u32 %v2917_v1, 16  ;;  %v7593_v37 = vrot.slane %v4374_v62, 5 }
 0x1ae   : > { %4882 = vmatpush.bf16.msra.mxu0 %v6382_v59  ;;  %v7580_v34 = vpop.f32.mrf.mxu0  ;;  %v5750_v53 = vrot.slane %v2166_v47, 9 }
 0x1af   : > { %1922 = vmatmul.bf16.gmra.mxu3 %v1778_v18  ;;  %8715 = vst [vmem:[#allocation20_spill] sm:$0xff] %v7580_v34  ;;  %v3136_v34 = vrot.slane %v3134_v25, 4 }
 0x1b0   : > { %2160 = vmatmul.bf16.gmra.mxu2 %v6291_v30  ;;  %v6461_v30 = vld [vmem:[#allocation2 + $0x4] sm:$0xf] }
 0x1b1   : > { %v1883_v9 = vpop.f32.mrf.mxu1  ;;  %2850 = vmatmul.bf16.gmra.mxu0 %v6330_v61  ;;  %v2219_v61 = vrot.slane %v6461_v30, 5  ;;  %v4318_v30 = vld [vmem:[#allocation2 + $0x20] sm:$0x1] }
 0x1b2   : > { %v7567_v21 = vadd.f32 %v2116_v35, %v1883_v9  ;;  %v4316_v35 = vld [vmem:[#allocation2 + $0x18] sm:$0xf]  ;;  %4883 = vmatpush.bf16.msra.mxu0 %v6381_v4  ;;  %v3117_v4 = vrot.slane %v3116_v13, 4  ;;  %v4384_v25 = vshll.u32 %v4318_v30, 16 }
 0x1b3   : > { %v2121_v18 = vpop.f32.mrf.mxu2  ;;  %v4365_v59 = vshrl.u32 %v4316_v35, 16  ;;  %v4368_v12 = vshll.u32 %v4316_v35, 16  ;;  %v6395_v9 = vld [vmem:[%s8681_s2 + $0x238] sm:$0xff]  ;;  %v2221_v13 = vrot.slane %v2219_v61, 4 }
 0x1b4   : > { %3492 = vmatmul.bf16.gmra.mxu1 %v3380_v22  ;;  %v3132_v22 = vsel %vm6942_vm7, %v3127_v60, %v3131_v26  ;;  %v3122_v11 = vsel %vm6942_vm7, %v3117_v4, %v7562_v24  ;;  %v6462_v60 = vld [vmem:[#allocation2 + $0x8] sm:$0x1]  ;;  %v2220_v4 = vsel %vm7375_vm14, %v5750_v53, %v2219_v61 }
 0x1b5   : > { %5303 = vmatpush.bf16.msra.mxu1 %v6395_v9  ;;  %v4367_v14 = vrot.slane %v4365_v59, 4  ;;  %v4370_v35 = vrot.slane %v4368_v12, 5  ;;  %v2222_v26 = vrot.slane %v6462_v60, 5  ;;  %v3357_v1 = vunpack.c.l.b16 %v3132_v22 }
 0x1b6   : > { %4884 = vmatpush.bf16.msra.mxu0 %v6380_v5  ;;  %v4380_v5 = vrot.slane %v4378_v23, 4  ;;  %v3139_v9 = vrot.slane %v3137_v27, 5  ;;  %v7598_v59 = vrot.slane %v3143_v28, 5  ;;  %v3149_v12 = vrot.slane %v3147_v36, 4  ;;  %v7600_v23 = vld [vmem:[#allocation2 + $0x74] sm:$0x1]  ;;  %v7603_v57 = vpop.f32.mrf.mxu0 }
 0x1b7   : > { %v3356_v62 = vunpack.c.l.b16 %v3122_v11  ;;  %8716 = vst [vmem:[#allocation21_spill] sm:$0xff] %v7603_v57  ;;  %v2223_v22 = vsel %vm7375_vm14, %v2221_v13, %v2222_v26  ;;  %v4371_v47 = vor.u32 %v4370_v35, %v4367_v14  ;;  %v4319_v36 = vld [vmem:[#allocation2 + $0x24] sm:$0xf]  ;;  %v3153_v60 = vshll.u32 %v7600_v23, 16  ;;  %v4320_v57 = vld [vmem:[#allocation2 + $0x28] sm:$0xf] }
 0x1b8   : > { %v3140_v11 = vor.u32 %v3139_v9, %v3136_v34  ;;  %v2346_v61 = vunpack.c.l.b16 %v2220_v4  ;;  %v2347_v53 = vunpack.c.l.b16 %v2223_v22  ;;  %v4386_v35 = vrot.slane %v4384_v25, 5  ;;  %v2920_v26 = vld [vmem:[#allocation2 + $0x78] sm:$0xf] }
 0x1b9   : > { %v1885_v51 = vpop.f32.mrf.mxu1  ;;  %v3381_v28 = vpack.c.b16 %v3357_v1, %v3356_v62  ;;  %v4372_v14 = vrot.slane %v4371_v47, 4  ;;  %v2921_v1 = vld [vmem:[#allocation2 + $0x7c] sm:$0xf]  ;;  %v4398_v30 = vshll.u32 %v4320_v57, 16  ;;  %v3155_v34 = vrot.slane %v3153_v60, 5 }
 0x1ba   : > { %v7587_v38 = vadd.f32 %v2118_v56, %v1885_v51  ;;  %v6331_v51 = vld [vmem:[#allocation2 + $0xc0] sm:$0xff]  ;;  %v4402_v9 = vshrl.u32 %v4320_v57, 16  ;;  %v3158_v22 = vshrl.u32 %v2920_v26, 16  ;;  %v3161_v47 = vshll.u32 %v2920_v26, 16 }
 0x1bb   : > { %v2123_v56 = vpop.f32.mrf.mxu2  ;;  %v3167_v25 = vshll.u32 %v2921_v1, 16 }
 0x1bc   : > { %v3160_v26 = vrot.slane %v3158_v22, 4 }
 0x1be   : > { %v7621_v57 = vpop.f32.mrf.mxu0 }
 0x1bf   : > { %1927 = vmatmul.bf16.gmra.mxu3 %v1779_v7  ;;  %v4381_v7 = vor.u32 %v4380_v5, %v7593_v37  ;;  %v3150_v5 = vor.u32 %v3149_v12, %v7598_v59  ;;  %v2378_v12 = vpack.c.b16 %v2347_v53, %v2346_v61  ;;  %8717 = vst [vmem:[#allocation22_spill] sm:$0xff] %v7621_v57  ;;  %v7628_v61 = vrot.slane %v4398_v30, 5 }
 0x1c0   : > { %3888 = vmatmul.bf16.vlgmr.msra.gmra.mxu2 %v7392_v43  ;;  %v3141_v43 = vrot.slane %v3140_v11, 4  ;;  %v4404_v53 = vrot.slane %v4402_v9, 4 }
 0x1c1   : > { %v1888_v24 = vpop.f32.mrf.mxu1  ;;  %2855 = vmatmul.bf16.gmra.mxu0 %v6331_v51  ;;  %v4382_v10 = vrot.slane %v4381_v7, 4  ;;  %v4392_v51 = vshll.u32 %v4319_v36, 16  ;;  %v3151_v62 = vrot.slane %v3150_v5, 4 }
 0x1c2   : > { %v7609_v27 = vadd.f32 %v2121_v18, %v1888_v24  ;;  %v4389_v18 = vshrl.u32 %v4319_v36, 16  ;;  %v4377_v24 = vsel %vm6942_vm7, %v4372_v14, %v7593_v37  ;;  %v6463_v36 = vld [vmem:[#allocation2 + $0x10] sm:$0xf]  ;;  %v3146_v37 = vsel %vm6942_vm7, %v3141_v43, %v7598_v59  ;;  %v2922_v59 = vld [vmem:[#allocation2 + $0x80] sm:$0x1] }
 0x1c3   : > { %v2126_v13 = vpop.f32.mrf.mxu2  ;;  %v4387_v7 = vsel %vm6942_vm7, %v4382_v10, %v4386_v35  ;;  %v2226_v11 = vrot.slane %v6463_v36, 5  ;;  %v4394_v60 = vrot.slane %v4392_v51, 5  ;;  %v3156_v10 = vsel %vm6942_vm7, %v3151_v62, %v3155_v34  ;;  %v2167_v35 = vld [vmem:[#allocation2 + $0xc] sm:$0xe] }
 0x1c4   : > { %3497 = vmatmul.bf16.gmra.mxu1 %v3381_v28  ;;  %v3171_v28 = vshrl.u32 %v2921_v1, 16  ;;  %v4391_v5 = vrot.slane %v4389_v18, 4  ;;  %v4766_v14 = vunpack.c.l.b16 %v4387_v7  ;;  %v3163_v1 = vrot.slane %v3161_v47, 5  ;;  %v6464_v7 = vld [vmem:[#allocation2 + $0x14] sm:$0x1] }
 0x1c5   : > { %v7630_v18 = vrot.slane %v3167_v25, 5  ;;  %v3358_v36 = vunpack.c.l.b16 %v3146_v37  ;;  %v3359_v57 = vunpack.c.l.b16 %v3156_v10  ;;  %v4765_v39 = vunpack.c.l.b16 %v4377_v24  ;;  %v4322_v24 = vld [vmem:[#allocation2 + $0x30] sm:$0xf]  ;;  %v4323_v10 = vld [vmem:[#allocation2 + $0x34] sm:$0xf] }
 0x1c6   : > { %v3173_v51 = vrot.slane %v3171_v28, 4  ;;  %v2228_v43 = vrot.slane %v2226_v11, 4  ;;  %v4395_v54 = vor.u32 %v4394_v60, %v4391_v5  ;;  %v4405_v30 = vor.u32 %v4404_v53, %v7628_v61 }
 0x1c7   : > { %v4797_v34 = vpack.c.b16 %v4766_v14, %v4765_v39  ;;  %v5751_v9 = vrot.slane %v2167_v35, 9  ;;  %v2229_v2 = vrot.slane %v6464_v7, 5  ;;  %v3164_v25 = vor.u32 %v3163_v1, %v3160_v26  ;;  %v6378_v14 = vld [vmem:[%s8681_s2 + $0x1b0] sm:$0xff]  ;;  %v7646_v1 = vpop.f32.mrf.mxu0 }
 0x1c8   : > { %v3174_v28 = vor.u32 %v3173_v51, %v7630_v18  ;;  %v3177_v37 = vshll.u32 %v2922_v59, 16  ;;  %v3382_v29 = vpack.c.b16 %v3359_v57, %v3358_v36  ;;  %v4396_v60 = vrot.slane %v4395_v54, 4  ;;  %8719 = vst [vmem:[#allocation24_spill] sm:$0xff] %v7646_v1  ;;  %4196 = vmatpush.bf16.msra.mxu3 %v6378_v14  ;;  %v6467_v1 = vld [vmem:[#allocation2 + $0x34] sm:$0xf] }
 0x1c9   : > { %v1890_v4 = vpop.f32.mrf.mxu1  ;;  %v2227_v39 = vsel %vm7375_vm14, %v5751_v9, %v2226_v11  ;;  %v2230_v5 = vsel %vm7375_vm14, %v2228_v43, %v2229_v2  ;;  %v4406_v53 = vrot.slane %v4405_v30, 4  ;;  %v4413_v35 = vshrl.u32 %v4322_v24, 16  ;;  %v2923_v43 = vld [vmem:[#allocation2 + $0x84] sm:$0xf]  ;;  %v2924_v30 = vld [vmem:[#allocation2 + $0x88] sm:$0xf] }
 0x1ca   : > { %v7619_v49 = vadd.f32 %v2123_v56, %v1890_v4  ;;  %v4321_v4 = vld [vmem:[#allocation2 + $0x2c] sm:$0x1]  ;;  %v4416_v26 = vshll.u32 %v4322_v24, 16  ;;  %v4422_v57 = vshll.u32 %v4323_v10, 16  ;;  %v3165_v51 = vrot.slane %v3164_v25, 4 }
 0x1cb   : > { %v2128_v56 = vpop.f32.mrf.mxu2  ;;  %v3175_v11 = vrot.slane %v3174_v28, 4  ;;  %v4426_v36 = vshrl.u32 %v4323_v10, 16  ;;  %v2348_v2 = vunpack.c.l.b16 %v2227_v39  ;;  %v2349_v54 = vunpack.c.l.b16 %v2230_v5  ;;  %v6465_v9 = vld [vmem:[#allocation2 + $0x1c] sm:$0xf]  ;;  %v6394_v5 = vld [vmem:[%s8681_s2 + $0x230] sm:$0xff] }
 0x1cc   : > { %v2233_v7 = vrot.slane %v6465_v9, 5  ;;  %v4418_v25 = vrot.slane %v4416_v26, 5  ;;  %v7655_v28 = vrot.slane %v4422_v57, 5  ;;  %v3195_v14 = vshrl.u32 %v2924_v30, 16  ;;  %v3578_v57 = vld [vmem:[#allocation2 + $0x30] sm:$0xe]  ;;  %5304 = vmatpush.bf16.msra.mxu1 %v6394_v5 }
 0x1cd   : > { %v4428_v39 = vrot.slane %v4426_v36, 4  ;;  %v5977_v32 = vrot.slane %v3578_v57, 9 }
 0x1ce   : > { %v2235_v9 = vrot.slane %v2233_v7, 4 }
 0x1cf   : > { %2466 = vmatmul.bf16.vlgmr.msrb.gmra.mxu3 %v2378_v12  ;;  %v4408_v12 = vshll.u32 %v4321_v4, 16  ;;  %v3179_v4 = vrot.slane %v3177_v37, 5 }
 0x1d0   : > { %3893 = vmatmul.bf16.gmra.mxu2 %v7423_v33 }
 0x1d1   : > { %v7633_v22 = vpop.f32.mrf.mxu1  ;;  %4885 = vmatmul.bf16.vlgmr.msra.gmra.mxu0 %v4797_v34  ;;  %v2168_v34 = vld [vmem:[#allocation2 + $0x18] sm:$0xe]  ;;  %v3180_v10 = vsel %vm6942_vm7, %v3175_v11, %v3179_v4  ;;  %v3662_v11 = vrot.slane %v6467_v1, 5  ;;  %v4324_v4 = vld [vmem:[#allocation2 + $0x38] sm:$0x1] }
 0x1d2   : > { %v1893_v62 = vpop.f32.mrf.mxu3  ;;  %8718 = vst [vmem:[#allocation23_spill] sm:$0xff] %v7633_v22  ;;  %v3361_v3 = vunpack.c.l.b16 %v3180_v10  ;;  %v6468_v10 = vld [vmem:[#allocation2 + $0x28] sm:$0xf]  ;;  %v2928_v22 = vld [vmem:[#allocation2 + $0x98] sm:$0x1] }
 0x1d3   : > { %v7635_v47 = vadd.f32 %v2126_v13, %v1893_v62  ;;  %v4410_v13 = vrot.slane %v4408_v12, 5  ;;  %v7648_v33 = vpop.f32.mrf.mxu2  ;;  %v4415_v12 = vrot.slane %v4413_v35, 4  ;;  %v2379_v35 = vpack.c.b16 %v2349_v54, %v2348_v2 }
 0x1d4   : > { %3502 = vmatmul.bf16.gmra.mxu1 %v3382_v29  ;;  %v4401_v29 = vsel %vm6942_vm7, %v4396_v60, %v7628_v61  ;;  %v3170_v61 = vsel %vm6942_vm7, %v3165_v51, %v7630_v18  ;;  %v3182_v60 = vshrl.u32 %v2923_v43, 16  ;;  %v6466_v18 = vld [vmem:[#allocation2 + $0x20] sm:$0x1] }
 0x1d5   : > { %v4411_v59 = vsel %vm6942_vm7, %v4406_v53, %v4410_v13  ;;  %v3185_v53 = vshll.u32 %v2923_v43, 16  ;;  %v3191_v13 = vshll.u32 %v2924_v30, 16  ;;  %v2236_v51 = vrot.slane %v6466_v18, 5  ;;  %v2925_v18 = vld [vmem:[#allocation2 + $0x8c] sm:$0x1] }
 0x1d6   : > { %v4768_v26 = vunpack.c.l.b16 %v4411_v59  ;;  %v3360_v42 = vunpack.c.l.b16 %v3170_v61  ;;  %v4419_v43 = vor.u32 %v4418_v25, %v4415_v12  ;;  %v4429_v30 = vor.u32 %v4428_v39, %v7655_v28 }
 0x1d7   : > { %v3184_v2 = vrot.slane %v3182_v60, 4  ;;  %v3187_v54 = vrot.slane %v3185_v53, 5  ;;  %v7672_v59 = vrot.slane %v3191_v13, 5  ;;  %v2237_v12 = vsel %vm7375_vm14, %v2235_v9, %v2236_v51 }
 0x1d8   : > { %v3664_v25 = vrot.slane %v3662_v11, 4  ;;  %v3665_v61 = vrot.slane %v7409_v6, 5  ;;  %v2240_v39 = vrot.slane %v6468_v10, 5  ;;  %v4420_v13 = vrot.slane %v4419_v43, 4 }
 0x1d9   : > { %v7657_v37 = vpop.f32.mrf.mxu1  ;;  %v3201_v57 = vshll.u32 %v2925_v18, 16  ;;  %v2351_v9 = vunpack.c.l.b16 %v2237_v12 }
 0x1da   : > { %v1895_v62 = vpop.f32.mrf.mxu3  ;;  %8720 = vst [vmem:[#allocation25_spill] sm:$0xff] %v7657_v37  ;;  %v4432_v37 = vshll.u32 %v4324_v4, 16 }
 0x1db   : > { %v7659_v24 = vadd.f32 %v2128_v56, %v1895_v62  ;;  %v5752_v56 = vrot.slane %v2168_v34, 9  ;;  %v4767_v62 = vunpack.c.l.b16 %v4401_v29  ;;  %v7669_v36 = vpop.f32.mrf.mxu2  ;;  %v3197_v34 = vrot.slane %v3195_v14, 4  ;;  %v7674_v29 = vpop.f32.mrf.mxu0 }
 0x1dc   : > { %8721 = vst [vmem:[#allocation26_spill] sm:$0xff] %v7674_v29  ;;  %v4430_v14 = vrot.slane %v4429_v30, 4  ;;  %v4434_v51 = vrot.slane %v4432_v37, 5  ;;  %v4325_v37 = vld [vmem:[#allocation2 + $0x3c] sm:$0xf] }
 0x1dd   : > { %v4798_v5 = vpack.c.b16 %v4768_v26, %v4767_v62  ;;  %v2234_v1 = vsel %vm7375_vm14, %v5752_v56, %v2233_v7  ;;  %v7688_v7 = vsel %vm7375_vm14, %v5977_v32, %v3662_v11  ;;  %v3383_v26 = vpack.c.b16 %v3361_v3, %v3360_v42  ;;  %v2169_v62 = vld [vmem:[#allocation2 + $0x24] sm:$0xe]  ;;  %v4326_v30 = vld [vmem:[#allocation2 + $0x40] sm:$0xf] }
 0x1de   : > { %v3188_v56 = vor.u32 %v3187_v54, %v3184_v2  ;;  %v3198_v6 = vor.u32 %v3197_v34, %v7672_v59  ;;  %v4425_v32 = vsel %vm6942_vm7, %v4420_v13, %v7655_v28  ;;  %v2242_v3 = vrot.slane %v2240_v39, 4 }
 0x1df   : > { %2471 = vmatmul.bf16.gmra.mxu3 %v2379_v35  ;;  %v3774_v11 = vunpack.c.l.b16 %v7688_v7  ;;  %v4435_v4 = vsel %vm6942_vm7, %v4430_v14, %v4434_v51  ;;  %v5753_v43 = vrot.slane %v2169_v62, 9  ;;  %v3203_v34 = vrot.slane %v3201_v57, 5  ;;  %v2927_v14 = vld [vmem:[#allocation2 + $0x94] sm:$0xf] }
 0x1e0   : > { %3898 = vmatmul.bf16.gmra.mxu2 %v7474_v19  ;;  %v2350_v19 = vunpack.c.l.b16 %v2234_v1  ;;  %v3189_v2 = vrot.slane %v3188_v56, 4  ;;  %v3199_v54 = vrot.slane %v3198_v6, 4  ;;  %v4770_v7 = vunpack.c.l.b16 %v4435_v4 }
 0x1e1   : > { %v7681_v60 = vpop.f32.mrf.mxu1  ;;  %4890 = vmatmul.bf16.gmra.mxu0 %v4798_v5  ;;  %v6469_v5 = vld [vmem:[#allocation2 + $0x2c] sm:$0x1]  ;;  %v7707_v1 = vsel %vm7375_vm14, %v5753_v43, %v2240_v39  ;;  %v4450_v56 = vshrl.u32 %v4326_v30, 16  ;;  %v4440_v39 = vshll.u32 %v4325_v37, 16  ;;  %v3215_v43 = vshll.u32 %v2927_v14, 16 }
 0x1e2   : > { %v1898_v35 = vpop.f32.mrf.mxu3  ;;  %8722 = vst [vmem:[#allocation27_spill] sm:$0xff] %v7681_v60  ;;  %v2243_v18 = vrot.slane %v6469_v5, 5  ;;  %v2380_v12 = vpack.c.b16 %v2351_v9, %v2350_v19  ;;  %v4437_v9 = vshrl.u32 %v4325_v37, 16  ;;  %v3697_v19 = vrot.slane %v7582_v44, 5 }
 0x1e3   : > { %v7684_v53 = vadd.f32 %v7648_v33, %v1898_v35  ;;  %v7694_v33 = vsel %vm7375_vm14, %v3664_v25, %v3665_v61  ;;  %v7699_v42 = vpop.f32.mrf.mxu2  ;;  %v3583_v35 = vld [vmem:[#allocation2 + $0x6c] sm:$0xe]  ;;  %v4769_v25 = vunpack.c.l.b16 %v4425_v32  ;;  %v2926_v61 = vld [vmem:[#allocation2 + $0x90] sm:$0xf]  ;;  %v7713_v6 = vpop.f32.mrf.mxu0  ;;  %v3204_v32 = vsel %vm6942_vm7, %v3199_v54, %v3203_v34 }
 0x1e4   : > { %3507 = vmatmul.bf16.gmra.mxu1 %v3383_v26  ;;  %v3775_v28 = vunpack.c.l.b16 %v7694_v33  ;;  %v7711_v13 = vsel %vm7375_vm14, %v2242_v3, %v2243_v18  ;;  %v4446_v26 = vshll.u32 %v4326_v30, 16  ;;  %8723 = vst [vmem:[#allocation28_spill] sm:$0xff] %v7713_v6  ;;  %v5982_v51 = vrot.slane %v3583_v35, 9 }
 0x1e5   : > { %v3194_v33 = vsel %vm6942_vm7, %v3189_v2, %v7672_v59  ;;  %v3206_v3 = vshrl.u32 %v2926_v61, 16  ;;  %v3209_v4 = vshll.u32 %v2926_v61, 16  ;;  %v3219_v30 = vshrl.u32 %v2927_v14, 16  ;;  %v3579_v59 = vld [vmem:[#allocation2 + $0x3c] sm:$0xe] }
 0x1e6   : > { %v3700_v5 = vrot.slane %v7600_v23, 5  ;;  %v4452_v18 = vrot.slane %v4450_v56, 4  ;;  %v3698_v37 = vsel %vm7375_vm14, %v5982_v51, %v3697_v19  ;;  %v3699_v35 = vrot.slane %v3697_v19, 4  ;;  %v6470_v2 = vld [vmem:[#allocation2 + $0x40] sm:$0xf] }
 0x1e7   : > { %v3669_v54 = vrot.slane %v6470_v2, 5  ;;  %v4439_v34 = vrot.slane %v4437_v9, 4  ;;  %v4442_v44 = vrot.slane %v4440_v39, 5  ;;  %v3784_v61 = vunpack.c.l.b16 %v3698_v37  ;;  %v4327_v19 = vld [vmem:[#allocation2 + $0x44] sm:$0x1] }
 0x1e8   : > { %v3362_v6 = vunpack.c.l.b16 %v3194_v33  ;;  %v3363_v14 = vunpack.c.l.b16 %v3204_v32  ;;  %v3208_v29 = vrot.slane %v3206_v3, 4  ;;  %v3701_v23 = vsel %vm7375_vm14, %v3699_v35, %v3700_v5  ;;  %v4328_v37 = vld [vmem:[#allocation2 + $0x48] sm:$0xf]  ;;  %v2929_v35 = vld [vmem:[#allocation2 + $0x9c] sm:$0xf] }
 0x1e9   : > { %v7715_v57 = vpop.f32.mrf.mxu1  ;;  %v7735_v56 = vrot.slane %v3215_v43, 5  ;;  %v3221_v51 = vrot.slane %v3219_v30, 4  ;;  %v4799_v50 = vpack.c.b16 %v4770_v7, %v4769_v25  ;;  %v5978_v2 = vrot.slane %v3579_v59, 9 }
 0x1ea   : > { %v1900_v10 = vpop.f32.mrf.mxu3  ;;  %8724 = vst [vmem:[#allocation29_spill] sm:$0xff] %v7715_v57  ;;  %v3785_v57 = vunpack.c.l.b16 %v3701_v23  ;;  %v2353_v32 = vunpack.c.l.b16 %v7711_v13  ;;  %v3671_v3 = vrot.slane %v3669_v54, 4  ;;  %v3384_v43 = vpack.c.b16 %v3363_v14, %v3362_v6  ;;  %v6377_v6 = vld [vmem:[%s8681_s2 + $0x1a8] sm:$0xff]  ;;  %v2930_v14 = vld [vmem:[#allocation2 + $0xa0] sm:$0xf] }
 0x1eb   : > { %v7718_v62 = vadd.f32 %v7669_v36, %v1900_v10  ;;  %v7727_v36 = vrot.slane %v4446_v26, 5  ;;  %v7731_v10 = vpop.f32.mrf.mxu2  ;;  %v3211_v26 = vrot.slane %v3209_v4, 5  ;;  %v4456_v25 = vshll.u32 %v4327_v19, 16  ;;  %v7747_v7 = vpop.f32.mrf.mxu0  ;;  %4197 = vmatpush.bf16.msra.mxu3 %v6377_v6  ;;  %v2170_v6 = vld [vmem:[#allocation2 + $0x30] sm:$0xe] }
 0x1ec   : > { %v7744_v4 = vpack.c.b16 %v3785_v57, %v3784_v61  ;;  %8726 = vst [vmem:[#allocation31_spill] sm:$0xff] %v7747_v7  ;;  %v3222_v5 = vor.u32 %v3221_v51, %v7735_v56  ;;  %v3670_v57 = vsel %vm7375_vm14, %v5978_v2, %v3669_v54  ;;  %v4461_v23 = vshrl.u32 %v4328_v37, 16 }
 0x1ed   : > { %v4453_v9 = vor.u32 %v4452_v18, %v7727_v36  ;;  %v3212_v30 = vor.u32 %v3211_v26, %v3208_v29  ;;  %v3225_v18 = vshll.u32 %v2928_v22, 16  ;;  %v4329_v22 = vld [vmem:[#allocation2 + $0x4c] sm:$0xf]  ;;  %v3230_v2 = vshrl.u32 %v2929_v35, 16 }
 0x1ee   : > { %v3223_v51 = vrot.slane %v3222_v5, 4  ;;  %v3776_v5 = vunpack.c.l.b16 %v3670_v57 }
 0x1ef   : > { %2476 = vmatmul.bf16.gmra.mxu3 %v2380_v12  ;;  %v3803_v12 = vpack.c.b16 %v3775_v28, %v3774_v11  ;;  %v2352_v11 = vunpack.c.l.b16 %v7707_v1  ;;  %v4443_v28 = vor.u32 %v4442_v44, %v4439_v34  ;;  %v4454_v13 = vrot.slane %v4453_v9, 4  ;;  %v6472_v44 = vld [vmem:[#allocation2 + $0x34] sm:$0xf] }
 0x1f0   : > { %v4458_v34 = vrot.slane %v4456_v25, 5  ;;  %v2247_v61 = vrot.slane %v6472_v44, 5  ;;  %v3213_v26 = vrot.slane %v3212_v30, 4  ;;  %v3227_v19 = vrot.slane %v3225_v18, 5  ;;  %v6393_v30 = vld [vmem:[%s8681_s2 + $0x228] sm:$0xff] }
 0x1f1   : > { %v7738_v39 = vpop.f32.mrf.mxu1  ;;  %3903 = vmatmul.bf16.gmra.mxu2 %v3803_v12  ;;  %4895 = vmatmul.bf16.gmra.mxu0 %v4799_v50  ;;  %v2381_v1 = vpack.c.b16 %v2353_v32, %v2352_v11  ;;  %v4444_v59 = vrot.slane %v4443_v28, 4  ;;  %v4464_v12 = vshll.u32 %v4328_v37, 16  ;;  %v4470_v32 = vshll.u32 %v4329_v22, 16 }
 0x1f2   : > { %v1903_v60 = vpop.f32.mrf.mxu3  ;;  %8725 = vst [vmem:[#allocation30_spill] sm:$0xff] %v7738_v39  ;;  %v4459_v54 = vsel %vm6942_vm7, %v4454_v13, %v4458_v34  ;;  %v3233_v28 = vshll.u32 %v2929_v35, 16  ;;  %v3239_v25 = vshll.u32 %v2930_v14, 16  ;;  %v2249_v37 = vrot.slane %v2247_v61, 4  ;;  %v6473_v35 = vld [vmem:[#allocation2 + $0x38] sm:$0x1]  ;;  %5305 = vmatpush.bf16.msra.mxu1 %v6393_v30 }
 0x1f3   : > { %v7741_v33 = vadd.f32 %v7699_v42, %v1903_v60  ;;  %v6471_v60 = vld [vmem:[#allocation2 + $0x44] sm:$0x1]  ;;  %v7753_v50 = vpop.f32.mrf.mxu2  ;;  %v3218_v13 = vsel %vm6942_vm7, %v3213_v26, %v7735_v56  ;;  %v4463_v34 = vrot.slane %v4461_v23, 4  ;;  %v4772_v44 = vunpack.c.l.b16 %v4459_v54 }
 0x1f4   : > { %v3672_v42 = vrot.slane %v6471_v60, 5  ;;  %3512 = vmatmul.bf16.gmra.mxu1 %v3384_v43  ;;  %v3243_v60 = vshrl.u32 %v2930_v14, 16  ;;  %v4466_v57 = vrot.slane %v4464_v12, 5  ;;  %v3235_v56 = vrot.slane %v3233_v28, 5  ;;  %v2931_v30 = vld [vmem:[#allocation2 + $0xa4] sm:$0x1] }
 0x1f5   : > { %v7783_v26 = vrot.slane %v3239_v25, 5  ;;  %v5754_v23 = vrot.slane %v2170_v6, 9 }
 0x1f6   : > { %v3673_v29 = vsel %vm7375_vm14, %v3671_v3, %v3672_v42  ;;  %v4474_v3 = vshrl.u32 %v4329_v22, 16  ;;  %v4449_v42 = vsel %vm6942_vm7, %v4444_v59, %v7727_v36  ;;  %v2250_v22 = vrot.slane %v6473_v35, 5 }
 0x1f7   : > { %v3777_v18 = vunpack.c.l.b16 %v3673_v29  ;;  %v7777_v29 = vrot.slane %v4470_v32, 5  ;;  %v3232_v59 = vrot.slane %v3230_v2, 4  ;;  %v4771_v35 = vunpack.c.l.b16 %v4449_v42  ;;  %v6474_v32 = vld [vmem:[#allocation2 + $0x4c] sm:$0xf] }
 0x1f8   : > { %v4476_v14 = vrot.slane %v4474_v3, 4  ;;  %v2251_v12 = vsel %vm7375_vm14, %v2249_v37, %v2250_v22  ;;  %v3676_v3 = vrot.slane %v6474_v32, 5  ;;  %v4467_v2 = vor.u32 %v4466_v57, %v4463_v34  ;;  %v3580_v37 = vld [vmem:[#allocation2 + $0x48] sm:$0xe] }
 0x1f9   : > { %v7761_v43 = vpop.f32.mrf.mxu1  ;;  %v3804_v54 = vpack.c.b16 %v3777_v18, %v3776_v5  ;;  %v4800_v39 = vpack.c.b16 %v4772_v44, %v4771_v35  ;;  %v3236_v5 = vor.u32 %v3235_v56, %v3232_v59  ;;  %v3249_v42 = vshll.u32 %v2931_v30, 16  ;;  %v6475_v44 = vld [vmem:[#allocation2 + $0x50] sm:$0x1]  ;;  %v4331_v35 = vld [vmem:[#allocation2 + $0x54] sm:$0xf] }
 0x1fa   : > { %v1905_v9 = vpop.f32.mrf.mxu3  ;;  %8727 = vst [vmem:[#allocation32_spill] sm:$0xff] %v7761_v43  ;;  %v4477_v28 = vor.u32 %v4476_v14, %v7777_v29  ;;  %v3678_v22 = vrot.slane %v3676_v3, 4  ;;  %v5979_v34 = vrot.slane %v3580_v37, 9  ;;  %v3679_v57 = vrot.slane %v6475_v44, 5 }
 0x1fb   : > { %v7764_v11 = vadd.f32 %v7731_v10, %v1905_v9  ;;  %v3228_v10 = vsel %vm6942_vm7, %v3223_v51, %v3227_v19  ;;  %v7779_v9 = vpop.f32.mrf.mxu0  ;;  %v7781_v36 = vpop.f32.mrf.mxu2  ;;  %v3245_v51 = vrot.slane %v3243_v60, 4  ;;  %v3364_v19 = vunpack.c.l.b16 %v3218_v13 }
 0x1fc   : > { %8728 = vst [vmem:[#allocation33_spill] sm:$0xff] %v7779_v9  ;;  %v3365_v7 = vunpack.c.l.b16 %v3228_v10  ;;  %v4330_v9 = vld [vmem:[#allocation2 + $0x50] sm:$0x1]  ;;  %v2355_v10 = vunpack.c.l.b16 %v2251_v12  ;;  %v4478_v14 = vrot.slane %v4477_v28, 4  ;;  %v3251_v56 = vrot.slane %v3249_v42, 5 }
 0x1fd   : > { %v3246_v18 = vor.u32 %v3245_v51, %v7783_v26  ;;  %v4480_v6 = vshll.u32 %v4330_v9, 16  ;;  %v4468_v51 = vrot.slane %v4467_v2, 4  ;;  %v3680_v9 = vsel %vm7375_vm14, %v3678_v22, %v3679_v57  ;;  %v6476_v12 = vld [vmem:[#allocation2 + $0x40] sm:$0xf]  ;;  %v2933_v28 = vld [vmem:[#allocation2 + $0xac] sm:$0xf] }
 0x1fe   : > { %v3385_v13 = vpack.c.b16 %v3365_v7, %v3364_v19  ;;  %v2254_v32 = vrot.slane %v6476_v12, 5  ;;  %v4485_v42 = vshrl.u32 %v4331_v35, 16  ;;  %v4488_v37 = vshll.u32 %v4331_v35, 16 }
 0x1ff   : > { %2481 = vmatmul.bf16.gmra.mxu3 %v2381_v1  ;;  %v2248_v1 = vsel %vm7375_vm14, %v5754_v23, %v2247_v61  ;;  %v3247_v59 = vrot.slane %v3246_v18, 4  ;;  %v4332_v23 = vld [vmem:[#allocation2 + $0x58] sm:$0xf]  ;;  %v4482_v7 = vrot.slane %v4480_v6, 5  ;;  %v2171_v18 = vld [vmem:[#allocation2 + $0x3c] sm:$0xe]  ;;  %v3779_v35 = vunpack.c.l.b16 %v3680_v9 }
 0x200   : > { %v2354_v61 = vunpack.c.l.b16 %v2248_v1  ;;  %v2932_v1 = vld [vmem:[#allocation2 + $0xa8] sm:$0xf]  ;;  %v4498_v22 = vshrl.u32 %v4332_v23, 16  ;;  %v3263_v44 = vshll.u32 %v2933_v28, 16  ;;  %v3267_v57 = vshrl.u32 %v2933_v28, 16 }
 0x201   : > { %v7790_v25 = vpop.f32.mrf.mxu1  ;;  %3908 = vmatmul.bf16.gmra.mxu2 %v3804_v54  ;;  %4900 = vmatmul.bf16.gmra.mxu0 %v4800_v39  ;;  %v3677_v39 = vsel %vm7375_vm14, %v5979_v34, %v3676_v3  ;;  %v4473_v54 = vsel %vm6942_vm7, %v4468_v51, %v7777_v29  ;;  %v3252_v6 = vsel %vm6942_vm7, %v3247_v59, %v3251_v56  ;;  %v3257_v34 = vshll.u32 %v2932_v1, 16  ;;  %v6477_v9 = vld [vmem:[#allocation2 + $0x44] sm:$0x1]  ;;  %v2934_v28 = vld [vmem:[#allocation2 + $0xb0] sm:$0x1] }
 0x202   : > { %v1908_v43 = vpop.f32.mrf.mxu3  ;;  %8729 = vst [vmem:[#allocation34_spill] sm:$0xff] %v7790_v25  ;;  %v2382_v30 = vpack.c.b16 %v2355_v10, %v2354_v61  ;;  %v3254_v61 = vshrl.u32 %v2932_v1, 16  ;;  %v4773_v51 = vunpack.c.l.b16 %v4473_v54  ;;  %v4500_v59 = vrot.slane %v4498_v22, 4 }
 0x203   : > { %v7793_v60 = vadd.f32 %v7753_v50, %v1908_v43  ;;  %v2146_v50 = vpop.f32.mrf.mxu2  ;;  %v3237_v43 = vrot.slane %v3236_v5, 4  ;;  %v7796_v19 = vpop.f32.mrf.mxu0  ;;  %v4483_v5 = vsel %vm6942_vm7, %v4478_v14, %v4482_v7  ;;  %v3778_v14 = vunpack.c.l.b16 %v3677_v39 }
 0x204   : > { %3517 = vmatmul.bf16.gmra.mxu1 %v3385_v13  ;;  %8730 = vst [vmem:[#allocation35_spill] sm:$0xff] %v7796_v19  ;;  %v4494_v13 = vshll.u32 %v4332_v23, 16  ;;  %v5755_v7 = vrot.slane %v2171_v18, 9  ;;  %v4774_v12 = vunpack.c.l.b16 %v4483_v5  ;;  %v2256_v19 = vrot.slane %v2254_v32, 4 }
 0x205   : > { %v3242_v29 = vsel %vm6942_vm7, %v3237_v43, %v7783_v26  ;;  %v3367_v43 = vunpack.c.l.b16 %v3252_v6  ;;  %v3256_v56 = vrot.slane %v3254_v61, 4  ;;  %v3259_v23 = vrot.slane %v3257_v34, 5  ;;  %v4333_v6 = vld [vmem:[#allocation2 + $0x5c] sm:$0x1]  ;;  %v3581_v34 = vld [vmem:[#allocation2 + $0x54] sm:$0xe] }
 0x206   : > { %v3366_v26 = vunpack.c.l.b16 %v3242_v29  ;;  %v7819_v25 = vrot.slane %v4494_v13, 5  ;;  %v7821_v1 = vrot.slane %v3263_v44, 5  ;;  %v3269_v39 = vrot.slane %v3267_v57, 4 }
 0x207   : > { %v2257_v54 = vrot.slane %v6477_v9, 5  ;;  %v3805_v18 = vpack.c.b16 %v3779_v35, %v3778_v14 }
 0x208   : > { %v4501_v57 = vor.u32 %v4500_v59, %v7819_v25  ;;  %v3386_v14 = vpack.c.b16 %v3367_v43, %v3366_v26  ;;  %v3270_v35 = vor.u32 %v3269_v39, %v7821_v1 }
 0x209   : > { %v7807_v3 = vpop.f32.mrf.mxu1  ;;  %v2258_v61 = vsel %vm7375_vm14, %v2256_v19, %v2257_v54  ;;  %v7835_v54 = vld [vmem:[#allocation2 + $0x48] sm:$0xe] }
 0x20a   : > { %v1910_v2 = vpop.f32.mrf.mxu3  ;;  %8731 = vst [vmem:[#allocation36_spill] sm:$0xff] %v7807_v3  ;;  %v4502_v59 = vrot.slane %v4501_v57, 4 }
 0x20b   : > { %v7810_v10 = vadd.f32 %v7781_v36, %v1910_v2  ;;  %v4487_v36 = vrot.slane %v4485_v42, 4  ;;  %v4490_v2 = vrot.slane %v4488_v37, 5  ;;  %v7817_v3 = vpop.f32.mrf.mxu2  ;;  %v4801_v42 = vpack.c.b16 %v4774_v12, %v4773_v51  ;;  %v7825_v13 = vpop.f32.mrf.mxu0 }
 0x20c   : > { %v2255_v37 = vsel %vm7375_vm14, %v5755_v7, %v2254_v32  ;;  %8732 = vst [vmem:[#allocation37_spill] sm:$0xff] %v7825_v13  ;;  %v3260_v32 = vor.u32 %v3259_v23, %v3256_v56  ;;  %v3273_v51 = vshll.u32 %v2934_v28, 16  ;;  %v4335_v7 = vld [vmem:[#allocation2 + $0x64] sm:$0xf]  ;;  %v4504_v12 = vshll.u32 %v4333_v6, 16 }
 0x20d   : > { %v4491_v44 = vor.u32 %v4490_v2, %v4487_v36  ;;  %v6376_v36 = vld [vmem:[%s8681_s2 + $0x1a0] sm:$0xff]  ;;  %v6479_v2 = vld [vmem:[#allocation2 + $0x5c] sm:$0x1]  ;;  %v4518_v56 = vshll.u32 %v4335_v7, 16  ;;  %v3271_v28 = vrot.slane %v3270_v35, 4 }
 0x20e   : > { %v3686_v26 = vrot.slane %v6479_v2, 5  ;;  %v3261_v39 = vrot.slane %v3260_v32, 4  ;;  %4198 = vmatpush.bf16.msra.mxu3 %v6376_v36  ;;  %v4506_v6 = vrot.slane %v4504_v12, 5  ;;  %v2935_v32 = vld [vmem:[#allocation2 + $0xb4] sm:$0xf] }
 0x20f   : > { %2486 = vmatmul.bf16.gmra.mxu3 %v2382_v30  ;;  %v6478_v30 = vld [vmem:[#allocation2 + $0x58] sm:$0xf]  ;;  %v4492_v43 = vrot.slane %v4491_v44, 4 }
 0x210   : > { %v3683_v29 = vrot.slane %v6478_v30, 5  ;;  %v5980_v30 = vrot.slane %v3581_v34, 9  ;;  %v6480_v34 = vld [vmem:[#allocation2 + $0x4c] sm:$0xf]  ;;  %v2936_v35 = vld [vmem:[#allocation2 + $0xb8] sm:$0xf] }
 0x211   : > { %v7832_v9 = vpop.f32.mrf.mxu1  ;;  %3913 = vmatmul.bf16.gmra.mxu2 %v3805_v18  ;;  %4905 = vmatmul.bf16.gmra.mxu0 %v4801_v42  ;;  %v3275_v18 = vrot.slane %v3273_v51, 5  ;;  %v4334_v42 = vld [vmem:[#allocation2 + $0x60] sm:$0xf]  ;;  %v4497_v57 = vsel %vm6942_vm7, %v4492_v43, %v7819_v25  ;;  %v3287_v36 = vshll.u32 %v2936_v35, 16 }
 0x212   : > { %v1913_v5 = vpop.f32.mrf.mxu3  ;;  %8734 = vst [vmem:[#allocation39_spill] sm:$0xff] %v7832_v9  ;;  %v3685_v19 = vrot.slane %v3683_v29, 4  ;;  %v3684_v2 = vsel %vm7375_vm14, %v5980_v30, %v3683_v29  ;;  %v4509_v12 = vshrl.u32 %v4334_v42, 16  ;;  %v6392_v29 = vld [vmem:[%s8681_s2 + $0x220] sm:$0xff]  ;;  %v7861_v30 = vrot.slane %v4518_v56, 5 }
 0x213   : > { %v7827_v22 = vadd.f32 %v2146_v50, %v1913_v5  ;;  %v2356_v50 = vunpack.c.l.b16 %v2255_v37  ;;  %v2357_v5 = vunpack.c.l.b16 %v2258_v61  ;;  %v2151_v23 = vpop.f32.mrf.mxu2  ;;  %v4522_v37 = vshrl.u32 %v4335_v7, 16  ;;  %5306 = vmatpush.bf16.msra.mxu1 %v6392_v29  ;;  %v4336_v56 = vld [vmem:[#allocation2 + $0x68] sm:$0x1] }
 0x214   : > { %3522 = vmatmul.bf16.gmra.mxu1 %v3386_v14  ;;  %v5756_v61 = vrot.slane %v7835_v54, 9  ;;  %v2261_v14 = vrot.slane %v6480_v34, 5  ;;  %v3687_v44 = vsel %vm7375_vm14, %v3685_v19, %v3686_v26  ;;  %v4507_v7 = vsel %vm6942_vm7, %v4502_v59, %v4506_v6 }
 0x215   : > { %8733 = vst [vmem:[#allocation38_spill] sm:$0xff] %v7827_v22  ;;  %v2383_v9 = vpack.c.b16 %v2357_v5, %v2356_v50  ;;  %v4512_v50 = vshll.u32 %v4334_v42, 16  ;;  %v3266_v5 = vsel %vm6942_vm7, %v3261_v39, %v7821_v1  ;;  %v3276_v25 = vsel %vm6942_vm7, %v3271_v28, %v3275_v18  ;;  %v6481_v39 = vld [vmem:[#allocation2 + $0x50] sm:$0x1] }
 0x216   : > { %v3278_v19 = vshrl.u32 %v2935_v32, 16  ;;  %v3281_v54 = vshll.u32 %v2935_v32, 16  ;;  %v3291_v26 = vshrl.u32 %v2936_v35, 16  ;;  %v3780_v59 = vunpack.c.l.b16 %v3684_v2 }
 0x217   : > { %v3781_v42 = vunpack.c.l.b16 %v3687_v44  ;;  %v4776_v6 = vunpack.c.l.b16 %v4507_v7  ;;  %v2263_v34 = vrot.slane %v2261_v14, 4  ;;  %v4775_v1 = vunpack.c.l.b16 %v4497_v57 }
 0x218   : > { %v2264_v28 = vrot.slane %v6481_v39, 5  ;;  %v4511_v18 = vrot.slane %v4509_v12, 4  ;;  %v3368_v20 = vunpack.c.l.b16 %v3266_v5  ;;  %v3690_v32 = vrot.slane %v6482_v55, 5 }
 0x219   : > { %v7865_v43 = vpop.f32.mrf.mxu1  ;;  %v3280_v29 = vrot.slane %v3278_v19, 4  ;;  %v3283_v48 = vrot.slane %v3281_v54, 5  ;;  %v3293_v2 = vrot.slane %v3291_v26, 4  ;;  %v4802_v57 = vpack.c.b16 %v4776_v6, %v4775_v1  ;;  %v2938_v1 = vld [vmem:[#allocation2 + $0xc0] sm:$0xf] }
 0x21a   : > { %v1915_v13 = vpop.f32.mrf.mxu3  ;;  %8737 = vst [vmem:[#allocation42_spill] sm:$0xff] %v7865_v43  ;;  %v7868_v43 = vrot.slane %v3287_v36, 5  ;;  %v4528_v39 = vshll.u32 %v4336_v56, 16  ;;  %v2262_v12 = vsel %vm7375_vm14, %v5756_v61, %v2261_v14  ;;  %v2265_v55 = vsel %vm7375_vm14, %v2263_v34, %v2264_v28  ;;  %v6391_v61 = vld [vmem:[%s8681_s2 + $0x218] sm:$0xff]  ;;  %v4337_v14 = vld [vmem:[#allocation2 + $0x6c] sm:$0xf] }
 0x21b   : > { %v7849_v51 = vadd.f32 %v7817_v3, %v1915_v13  ;;  %v4524_v3 = vrot.slane %v4522_v37, 4  ;;  %v7863_v13 = vpop.f32.mrf.mxu0  ;;  %v4514_v37 = vrot.slane %v4512_v50, 5  ;;  %v2153_v44 = vpop.f32.mrf.mxu2  ;;  %v3582_v50 = vld [vmem:[#allocation2 + $0x60] sm:$0xe]  ;;  %v3284_v54 = vor.u32 %v3283_v48, %v3280_v29  ;;  %v4338_v28 = vld [vmem:[#allocation2 + $0x70] sm:$0xf]  ;;  %5307 = vmatpush.bf16.msra.mxu1 %v6391_v61 }
 0x21c   : > { %8736 = vst [vmem:[#allocation41_spill] sm:$0xff] %v7863_v13  ;;  %v3369_v13 = vunpack.c.l.b16 %v3276_v25  ;;  %v3692_v25 = vrot.slane %v3690_v32, 4  ;;  %v3294_v36 = vor.u32 %v3293_v2, %v7868_v43  ;;  %v4530_v6 = vrot.slane %v4528_v39, 5 }
 0x21d   : > { %8735 = vst [vmem:[#allocation40_spill] sm:$0xff] %v7849_v51  ;;  %v4525_v35 = vor.u32 %v4524_v3, %v7861_v30  ;;  %v2937_v51 = vld [vmem:[#allocation2 + $0xbc] sm:$0x1]  ;;  %v4515_v3 = vor.u32 %v4514_v37, %v4511_v18  ;;  %v2359_v34 = vunpack.c.l.b16 %v2265_v55  ;;  %v3285_v29 = vrot.slane %v3284_v54, 4 }
 0x21e   : > { %v3387_v5 = vpack.c.b16 %v3369_v13, %v3368_v20  ;;  %v3297_v26 = vshll.u32 %v2937_v51, 16  ;;  %v2358_v13 = vunpack.c.l.b16 %v2262_v12  ;;  %v3295_v2 = vrot.slane %v3294_v36, 4 }
 0x21f   : > { %2491 = vmatmul.bf16.gmra.mxu3 %v2383_v9  ;;  %v3806_v9 = vpack.c.b16 %v3781_v42, %v3780_v59  ;;  %v4526_v19 = vrot.slane %v4525_v35, 4  ;;  %v6483_v59 = vld [vmem:[#allocation2 + $0x68] sm:$0x1]  ;;  %v4516_v18 = vrot.slane %v4515_v3, 4  ;;  %v2939_v35 = vld [vmem:[#allocation2 + $0xc4] sm:$0xf] }
 0x220   : > { %v3693_v42 = vrot.slane %v6483_v59, 5  ;;  %v3302_v39 = vshrl.u32 %v2938_v1, 16  ;;  %v4536_v12 = vshll.u32 %v4337_v14, 16  ;;  %v4542_v55 = vshll.u32 %v4338_v28, 16  ;;  %v6390_v3 = vld [vmem:[%s8681_s2 + $0x210] sm:$0xff] }
 0x221   : > { %3918 = vmatmul.bf16.gmra.mxu2 %v3806_v9  ;;  %4910 = vmatmul.bf16.gmra.mxu0 %v4802_v57  ;;  %v7882_v48 = vpop.f32.mrf.mxu1  ;;  %v4531_v37 = vsel %vm6942_vm7, %v4526_v19, %v4530_v6  ;;  %v4533_v9 = vshrl.u32 %v4337_v14, 16  ;;  %v2384_v59 = vpack.c.b16 %v2359_v34, %v2358_v13  ;;  %v3290_v6 = vsel %vm6942_vm7, %v3285_v29, %v7868_v43  ;;  %v6389_v13 = vld [vmem:[%s8681_s2 + $0x208] sm:$0xff] }
 0x222   : > { %v1918_v7 = vpop.f32.mrf.mxu3  ;;  %8739 = vst [vmem:[#allocation44_spill] sm:$0xff] %v7882_v48  ;;  %v3694_v56 = vsel %vm7375_vm14, %v3692_v25, %v3693_v42  ;;  %v3315_v25 = vshrl.u32 %v2939_v35, 16  ;;  %v4521_v61 = vsel %vm6942_vm7, %v4516_v18, %v7861_v30  ;;  %v4778_v14 = vunpack.c.l.b16 %v4531_v37  ;;  %5308 = vmatpush.bf16.msra.mxu1 %v6390_v3  ;;  %v2940_v18 = vld [vmem:[#allocation2 + $0xc8] sm:$0x1] }
 0x223   : > { %v7870_v22 = vadd.f32 %v2151_v23, %v1918_v7  ;;  %v5981_v23 = vrot.slane %v3582_v50, 9  ;;  %v7880_v20 = vpop.f32.mrf.mxu0  ;;  %v3299_v7 = vrot.slane %v3297_v26, 5  ;;  %v4546_v50 = vshrl.u32 %v4338_v28, 16  ;;  %v2156_v19 = vpop.f32.mrf.mxu2  ;;  %v6484_v26 = vld [vmem:[#allocation2 + $0x58] sm:$0xf] }
 0x224   : > { %3527 = vmatmul.bf16.gmra.mxu1 %v3387_v5  ;;  %8738 = vst [vmem:[#allocation43_spill] sm:$0xff] %v7880_v20  ;;  %v3783_v36 = vunpack.c.l.b16 %v3694_v56  ;;  %v2268_v42 = vrot.slane %v6484_v26, 5  ;;  %v4535_v34 = vrot.slane %v4533_v9, 4  ;;  %v7906_v28 = vrot.slane %v4542_v55, 5  ;;  %v2173_v26 = vld [vmem:[#allocation2 + $0x54] sm:$0xe] }
 0x225   : > { %v3691_v51 = vsel %vm7375_vm14, %v5981_v23, %v3690_v32  ;;  %v3305_v32 = vshll.u32 %v2938_v1, 16  ;;  %v3311_v23 = vshll.u32 %v2939_v35, 16  ;;  %v4538_v1 = vrot.slane %v4536_v12, 5  ;;  %v6485_v9 = vld [vmem:[#allocation2 + $0x5c] sm:$0x1] }
 0x226   : > { %v3782_v54 = vunpack.c.l.b16 %v3691_v51  ;;  %v4548_v51 = vrot.slane %v4546_v50, 4  ;;  %v3304_v43 = vrot.slane %v3302_v39, 4  ;;  %v3317_v29 = vrot.slane %v3315_v25, 4  ;;  %5309 = vmatpush.bf16.msra.mxu1 %v6389_v13 }
 0x227   : > { %v3307_v56 = vrot.slane %v3305_v32, 5  ;;  %v3313_v35 = vrot.slane %v3311_v23, 5  ;;  %v4777_v30 = vunpack.c.l.b16 %v4521_v61  ;;  %v2270_v20 = vrot.slane %v2268_v42, 4 }
 0x228   : > { %v3807_v3 = vpack.c.b16 %v3783_v36, %v3782_v54  ;;  %v2271_v12 = vrot.slane %v6485_v9, 5  ;;  %v4539_v32 = vor.u32 %v4538_v1, %v4535_v34  ;;  %v4549_v23 = vor.u32 %v4548_v51, %v7906_v28  ;;  %v6388_v54 = vld [vmem:[%s8681_s2 + $0x200] sm:$0xff]  ;;  %v6375_v36 = vld [vmem:[%s8681_s2 + $0x198] sm:$0xff] }
 0x229   : > { %v7910_v55 = vpop.f32.mrf.mxu1  ;;  %v4803_v39 = vpack.c.b16 %v4778_v14, %v4777_v30  ;;  %v3321_v61 = vshll.u32 %v2940_v18, 16  ;;  %v5757_v14 = vrot.slane %v2173_v26, 9  ;;  %4199 = vmatpush.bf16.msra.mxu3 %v6375_v36 }
 0x22a   : > { %v1920_v57 = vpop.f32.mrf.mxu3  ;;  %8741 = vst [vmem:[#allocation46_spill] sm:$0xff] %v7910_v55  ;;  %v2272_v34 = vsel %vm7375_vm14, %v2270_v20, %v2271_v12  ;;  %5310 = vmatpush.bf16.msra.mxu1 %v6388_v54  ;;  %v4540_v51 = vrot.slane %v4539_v32, 4  ;;  %v4550_v30 = vrot.slane %v4549_v23, 4  ;;  %v7940_v23 = vld [vmem:[#allocation2 + $0x7c] sm:$0xf] }
 0x22b   : > { %v7890_v5 = vadd.f32 %v2153_v44, %v1920_v57  ;;  %v3300_v44 = vsel %vm6942_vm7, %v3295_v2, %v3299_v7  ;;  %v4339_v2 = vld [vmem:[#allocation2 + $0x74] sm:$0x1]  ;;  %v3370_v7 = vunpack.c.l.b16 %v3290_v6  ;;  %v7908_v37 = vpop.f32.mrf.mxu0  ;;  %v3308_v6 = vor.u32 %v3307_v56, %v3304_v43 }
 0x22c   : > { %v3371_v57 = vunpack.c.l.b16 %v3300_v44  ;;  %8740 = vst [vmem:[#allocation45_spill] sm:$0xff] %v7908_v37  ;;  %v4552_v25 = vshll.u32 %v4339_v2, 16  ;;  %v3318_v44 = vor.u32 %v3317_v29, %v3313_v35  ;;  %v2269_v1 = vsel %vm7375_vm14, %v5757_v14, %v2268_v42 }
 0x22d   : > { %v3309_v56 = vrot.slane %v3308_v6, 4  ;;  %v3323_v2 = vrot.slane %v3321_v61, 5  ;;  %v2360_v18 = vunpack.c.l.b16 %v2269_v1  ;;  %v4545_v20 = vsel %vm6942_vm7, %v4540_v51, %v7906_v28 }
 0x22e   : > { %v3388_v13 = vpack.c.b16 %v3371_v57, %v3370_v7  ;;  %v4554_v43 = vrot.slane %v4552_v25, 5  ;;  %v3319_v29 = vrot.slane %v3318_v44, 4  ;;  %v2361_v7 = vunpack.c.l.b16 %v2272_v34  ;;  %v6486_v25 = vld [vmem:[#allocation2 + $0x64] sm:$0xf] }
 0x22f   : > { %2496 = vmatmul.bf16.gmra.mxu3 %v2384_v59  ;;  %v3314_v42 = vsel %vm6942_vm7, %v3309_v56, %v3313_v35  ;;  %v2275_v6 = vrot.slane %v6486_v25, 5  ;;  %v4566_v61 = vshll.u32 %v7940_v23, 16  ;;  %v4570_v35 = vshrl.u32 %v7940_v23, 16  ;;  %v6488_v25 = vld [vmem:[#allocation2 + $0x7c] sm:$0xf] }
 0x230   : > { %v3324_v9 = vsel %vm6942_vm7, %v3319_v29, %v3323_v2  ;;  %v4555_v12 = vsel %vm6942_vm7, %v4550_v30, %v4554_v43  ;;  %v2385_v32 = vpack.c.b16 %v2361_v7, %v2360_v18  ;;  %v3372_v54 = vunpack.c.l.b16 %v3314_v42  ;;  %v7944_v43 = vld [vmem:[#allocation2 + $0x80] sm:$0x1]  ;;  %v2174_v29 = vld [vmem:[#allocation2 + $0x60] sm:$0xe]  ;;  %v6487_v18 = vld [vmem:[#allocation2 + $0x68] sm:$0x1] }
 0x231   : > { %3923 = vmatmul.bf16.gmra.mxu2 %v3807_v3  ;;  %4915 = vmatmul.bf16.gmra.mxu0 %v4803_v39  ;;  %v7938_v39 = vpop.f32.mrf.mxu1  ;;  %v3373_v36 = vunpack.c.l.b16 %v3324_v9  ;;  %v4780_v14 = vunpack.c.l.b16 %v4555_v12  ;;  %v4568_v1 = vrot.slane %v4566_v61, 5  ;;  %v4572_v56 = vrot.slane %v4570_v35, 4  ;;  %v6489_v61 = vld [vmem:[#allocation2 + $0x1c] sm:$0xf] }
 0x232   : > { %v1923_v50 = vpop.f32.mrf.mxu3  ;;  %8743 = vst [vmem:[#allocation48_spill] sm:$0xff] %v7938_v39  ;;  %v2277_v2 = vrot.slane %v2275_v6, 4  ;;  %v3704_v42 = vrot.slane %v6488_v25, 5  ;;  %v5064_v35 = vrot.slane %v6489_v61, 5 }
 0x233   : > { %v7913_v59 = vadd.f32 %v2156_v19, %v1923_v50  ;;  %v2158_v19 = vpop.f32.mrf.mxu2  ;;  %v7928_v3 = vpop.f32.mrf.mxu0  ;;  %v4340_v50 = vld [vmem:[#allocation2 + $0x78] sm:$0xf]  ;;  %v3389_v30 = vpack.c.b16 %v3373_v36, %v3372_v54 }
 0x234   : > { %3532 = vmatmul.bf16.gmra.mxu1 %v3388_v13  ;;  %8742 = vst [vmem:[#allocation47_spill] sm:$0xff] %v7928_v3  ;;  %v4557_v28 = vshrl.u32 %v4340_v50, 16  ;;  %v4560_v44 = vshll.u32 %v4340_v50, 16  ;;  %v4779_v13 = vunpack.c.l.b16 %v4545_v20  ;;  %v2278_v50 = vrot.slane %v6487_v18, 5  ;;  %v3584_v20 = vld [vmem:[#allocation2 + $0x78] sm:$0xe] }
 0x235   : > { %v5066_v25 = vrot.slane %v5064_v35, 4 }
 0x236   : > { %v4559_v34 = vrot.slane %v4557_v28, 4  ;;  %v4576_v28 = vshll.u32 %v7944_v43, 16  ;;  %v2279_v36 = vsel %vm7375_vm14, %v2277_v2, %v2278_v50  ;;  %v6491_v50 = vld [vmem:[#allocation2 + $0x20] sm:$0x1] }
 0x237   : > { %v2363_v18 = vunpack.c.l.b16 %v2279_v36  ;;  %v5067_v37 = vrot.slane %v6491_v50, 5  ;;  %v7982_v50 = vld [vmem:[#allocation2 + $0x8c] sm:$0x1] }
 0x23a   : > { %v1925_v57 = vpop.f32.mrf.mxu3 }
 0x23b   : > { %v7930_v26 = vadd.f32 %v2158_v19, %v1925_v57  ;;  %v4562_v19 = vrot.slane %v4560_v44, 5  ;;  %v2161_v51 = vpop.f32.mrf.mxu2  ;;  %v4804_v57 = vpack.c.b16 %v4780_v14, %v4779_v13  ;;  %v5758_v44 = vrot.slane %v2174_v29, 9  ;;  %v7950_v54 = vpop.f32.mrf.mxu0 }
 0x23c   : > { %8744 = vst [vmem:[#allocation49_spill] sm:$0xff] %v7950_v54  ;;  %v7954_v13 = vpop.f32.mrf.mxu1 }
 0x23d   : > { %v4563_v12 = vor.u32 %v4562_v19, %v4559_v34  ;;  %8745 = vst [vmem:[#allocation50_spill] sm:$0xff] %v7954_v13  ;;  %v2276_v14 = vsel %vm7375_vm14, %v5758_v44, %v2275_v6  ;;  %v5983_v34 = vrot.slane %v3584_v20, 9  ;;  %v6490_v19 = vld [vmem:[#allocation2 + $0x80] sm:$0x1] }
 0x23e   : > { %v2362_v3 = vunpack.c.l.b16 %v2276_v14  ;;  %v5068_v14 = vsel %vm7375_vm14, %v5066_v25, %v5067_v37 }
 0x23f   : > { %2501 = vmatmul.bf16.gmra.mxu3 %v2385_v32  ;;  %v4573_v32 = vor.u32 %v4572_v56, %v4568_v1  ;;  %v4998_v56 = vld [vmem:[#allocation2 + $0x18] sm:$0xe] }
 0x240   : > { %v6198_v2 = vrot.slane %v4998_v56, 9  ;;  %v2386_v44 = vpack.c.b16 %v2363_v18, %v2362_v3 }
 0x241   : > { %3928 = vmatmul.bf16.gmra.mxu2 %v7744_v4  ;;  %4920 = vmatmul.bf16.gmra.mxu0 %v4804_v57  ;;  %v3706_v4 = vrot.slane %v3704_v42, 4  ;;  %v4574_v29 = vrot.slane %v4573_v32, 4  ;;  %v4578_v57 = vrot.slane %v4576_v28, 5  ;;  %v4343_v28 = vld [vmem:[#allocation2 + $0x84] sm:$0xf] }
 0x242   : > { %v1928_v7 = vpop.f32.mrf.mxu3  ;;  %v5065_v36 = vsel %vm7375_vm14, %v6198_v2, %v5064_v35  ;;  %v5192_v2 = vunpack.c.l.b16 %v5068_v14  ;;  %v3585_v14 = vld [vmem:[#allocation2 + $0x84] sm:$0xe] }
 0x243   : > { %v7946_v9 = vadd.f32 %v2161_v51, %v1928_v7  ;;  %v3707_v51 = vrot.slane %v6490_v19, 5  ;;  %v4564_v7 = vrot.slane %v4563_v12, 4  ;;  %v2163_v61 = vpop.f32.mrf.mxu2  ;;  %v4579_v32 = vsel %vm6942_vm7, %v4574_v29, %v4578_v57  ;;  %v2175_v57 = vld [vmem:[#allocation2 + $0x6c] sm:$0xe]  ;;  %v7976_v18 = vpop.f32.mrf.mxu0 }
 0x244   : > { %3537 = vmatmul.bf16.gmra.mxu1 %v3389_v30  ;;  %v3705_v30 = vsel %vm7375_vm14, %v5983_v34, %v3704_v42  ;;  %v7972_v42 = vld [vmem:[#allocation2 + $0x88] sm:$0xf]  ;;  %v6492_v34 = vld [vmem:[#allocation2 + $0x70] sm:$0xf]  ;;  %v4782_v3 = vunpack.c.l.b16 %v4579_v32  ;;  %8747 = vst [vmem:[#allocation52_spill] sm:$0xff] %v7976_v18  ;;  %v5759_v13 = vrot.slane %v2175_v57, 9 }
 0x245   : > { %v3708_v20 = vsel %vm7375_vm14, %v3706_v4, %v3707_v51  ;;  %v4569_v12 = vsel %vm6942_vm7, %v4564_v7, %v4568_v1  ;;  %v2282_v19 = vrot.slane %v6492_v34, 5  ;;  %v4584_v51 = vshll.u32 %v4343_v28, 16  ;;  %v4999_v18 = vld [vmem:[#allocation2 + $0x24] sm:$0xe]  ;;  %v6374_v57 = vld [vmem:[%s8681_s2 + $0x190] sm:$0xff] }
 0x246   : > { %v4590_v56 = vshll.u32 %v7972_v42, 16  ;;  %v4594_v1 = vshrl.u32 %v7972_v42, 16  ;;  %v3786_v4 = vunpack.c.l.b16 %v3705_v30  ;;  %v3787_v7 = vunpack.c.l.b16 %v3708_v20  ;;  %v6493_v20 = vld [vmem:[#allocation2 + $0x74] sm:$0x1]  ;;  %4200 = vmatpush.bf16.msra.mxu3 %v6374_v57 }
 0x247   : > { %v4781_v29 = vunpack.c.l.b16 %v4569_v12  ;;  %v4586_v37 = vrot.slane %v4584_v51, 5  ;;  %v5191_v34 = vunpack.c.l.b16 %v5065_v36  ;;  %v2284_v30 = vrot.slane %v2282_v19, 4  ;;  %v6495_v51 = vld [vmem:[#allocation2 + $0x88] sm:$0xf] }
 0x248   : > { %v7978_v25 = vrot.slane %v4590_v56, 5  ;;  %v2285_v12 = vrot.slane %v6493_v20, 5  ;;  %v3809_v39 = vpack.c.b16 %v3787_v7, %v3786_v4  ;;  %v3711_v56 = vrot.slane %v6495_v51, 5  ;;  %v6496_v20 = vld [vmem:[#allocation2 + $0x8c] sm:$0x1] }
 0x249   : > { %v4805_v55 = vpack.c.b16 %v4782_v3, %v4781_v29  ;;  %v4600_v36 = vshll.u32 %v7982_v50, 16  ;;  %v5223_v4 = vpack.c.b16 %v5192_v2, %v5191_v34  ;;  %v2283_v7 = vsel %vm7375_vm14, %v5759_v13, %v2282_v19 }
 0x24a   : > { %v1930_v54 = vpop.f32.mrf.mxu3  ;;  %v6199_v29 = vrot.slane %v4999_v18, 9  ;;  %v5120_v3 = vrot.slane %v7940_v23, 5  ;;  %v2364_v51 = vunpack.c.l.b16 %v2283_v7 }
 0x24b   : > { %v7960_v6 = vadd.f32 %v2163_v61, %v1930_v54  ;;  %v4581_v54 = vshrl.u32 %v4343_v28, 16  ;;  %v7980_v61 = vpop.f32.mrf.mxu1  ;;  %v4596_v28 = vrot.slane %v4594_v1, 4  ;;  %v7998_v18 = vpop.f32.mrf.mxu0 }
 0x24c   : > { %8748 = vst [vmem:[#allocation53_spill] sm:$0xff] %v7980_v61  ;;  %v5122_v19 = vrot.slane %v5120_v3, 4 }
 0x24d   : > { %8746 = vst [vmem:[#allocation51_spill] sm:$0xff] %v7960_v6  ;;  %v4583_v35 = vrot.slane %v4581_v54, 4  ;;  %v4597_v1 = vor.u32 %v4596_v28, %v7978_v25  ;;  %v3713_v28 = vrot.slane %v3711_v56, 4 }
 0x24e   : > { %8750 = vst [vmem:[#allocation55_spill] sm:$0xff] %v7998_v18 }
 0x24f   : > { %2506 = vmatmul.bf16.gmra.mxu3 %v2386_v44  ;;  %v6494_v44 = vld [vmem:[#allocation2 + $0x28] sm:$0xf]  ;;  %v4587_v61 = vor.u32 %v4586_v37, %v4583_v35  ;;  %v5984_v37 = vrot.slane %v3585_v14, 9 }
 0x250   : > { %v5071_v54 = vrot.slane %v6494_v44, 5  ;;  %v5006_v44 = vld [vmem:[#allocation2 + $0x78] sm:$0xe] }
 0x251   : > { %3933 = vmatmul.bf16.gmra.mxu2 %v3809_v39  ;;  %4925 = vmatmul.bf16.gmra.mxu0 %v4805_v55  ;;  %v4588_v2 = vrot.slane %v4587_v61, 4  ;;  %v4598_v39 = vrot.slane %v4597_v1, 4  ;;  %v4602_v55 = vrot.slane %v4600_v36, 5  ;;  %v6206_v34 = vrot.slane %v5006_v44, 9 }
 0x252   : > { %v2467_v32 = vpop.f32.mrf.mxu3  ;;  %v5073_v35 = vrot.slane %v5071_v54, 4  ;;  %v5072_v61 = vsel %vm7375_vm14, %v6199_v29, %v5071_v54  ;;  %v3712_v1 = vsel %vm7375_vm14, %v5984_v37, %v3711_v56  ;;  %v4346_v54 = vld [vmem:[#allocation2 + $0x90] sm:$0xf] }
 0x253   : > { %v7985_v48 = vadd.f32 %v2467_v32, %v7290_v15  ;;  %v2286_v15 = vsel %vm7375_vm14, %v2284_v30, %v2285_v12  ;;  %v3714_v32 = vrot.slane %v6496_v20, 5  ;;  %v5123_v30 = vrot.slane %v7944_v43, 5  ;;  %v6497_v12 = vld [vmem:[#allocation2 + $0x2c] sm:$0x1]  ;;  %v8002_v57 = vpop.f32.mrf.mxu1  ;;  %v8021_v20 = vld [vmem:[#allocation2 + $0x94] sm:$0xf] }
 0x254   : > { %5311 = vmatmul.bf16.vlgmr.msra.gmra.mxu1 %v5223_v4  ;;  %v2365_v13 = vunpack.c.l.b16 %v2286_v15  ;;  %v5074_v23 = vrot.slane %v6497_v12, 5  ;;  %v5121_v14 = vsel %vm7375_vm14, %v6206_v34, %v5120_v3  ;;  %8751 = vst [vmem:[#allocation56_spill] sm:$0xff] %v8002_v57  ;;  %v4593_v15 = vsel %vm6942_vm7, %v4588_v2, %v7978_v25  ;;  %v2176_v25 = vld [vmem:[#allocation2 + $0x78] sm:$0xe] }
 0x255   : > { %8749 = vst [vmem:[#allocation54_spill] sm:$0xff] %v7985_v48  ;;  %v5124_v43 = vsel %vm7375_vm14, %v5122_v19, %v5123_v30  ;;  %v3715_v7 = vsel %vm7375_vm14, %v3713_v28, %v3714_v32  ;;  %v4603_v3 = vsel %vm6942_vm7, %v4598_v39, %v4602_v55  ;;  %v4605_v56 = vshrl.u32 %v4346_v54, 16  ;;  %v6498_v19 = vld [vmem:[#allocation2 + $0x7c] sm:$0xf]  ;;  %v8031_v48 = vpop.f32.mrf.mxu0 }
 0x256   : > { %v5075_v36 = vsel %vm7375_vm14, %v5073_v35, %v5074_v23  ;;  %v2387_v29 = vpack.c.b16 %v2365_v13, %v2364_v51  ;;  %v5207_v37 = vunpack.c.l.b16 %v5121_v14  ;;  %v5208_v44 = vunpack.c.l.b16 %v5124_v43  ;;  %v8027_v14 = vld [vmem:[#allocation2 + $0x98] sm:$0x1]  ;;  %8753 = vst [vmem:[#allocation58_spill] sm:$0xff] %v8031_v48 }
 0x257   : > { %v3788_v34 = vunpack.c.l.b16 %v3712_v1  ;;  %v2289_v35 = vrot.slane %v6498_v19, 5  ;;  %v4608_v30 = vshll.u32 %v4346_v54, 16  ;;  %v4614_v28 = vshll.u32 %v8021_v20, 16 }
 0x258   : > { %v3789_v32 = vunpack.c.l.b16 %v3715_v7  ;;  %v4783_v12 = vunpack.c.l.b16 %v4593_v15  ;;  %v4784_v23 = vunpack.c.l.b16 %v4603_v3  ;;  %v4618_v2 = vshrl.u32 %v8021_v20, 16  ;;  %v6499_v7 = vld [vmem:[#allocation2 + $0x80] sm:$0x1]  ;;  %v5000_v3 = vld [vmem:[#allocation2 + $0x30] sm:$0xe] }
 0x259   : > { %v4607_v39 = vrot.slane %v4605_v56, 4  ;;  %v4610_v55 = vrot.slane %v4608_v30, 5  ;;  %v8025_v51 = vrot.slane %v4614_v28, 5  ;;  %v5194_v13 = vunpack.c.l.b16 %v5075_v36  ;;  %v6501_v30 = vld [vmem:[#allocation2 + $0x94] sm:$0xf] }
 0x25a   : > { %v8004_v4 = vpop.f32.mrf.mxu3  ;;  %v4620_v1 = vrot.slane %v4618_v2, 4  ;;  %v8029_v43 = vpack.c.b16 %v5208_v44, %v5207_v37  ;;  %v5193_v54 = vunpack.c.l.b16 %v5072_v61  ;;  %v5760_v19 = vrot.slane %v2176_v25, 9  ;;  %v3586_v37 = vld [vmem:[#allocation2 + $0x90] sm:$0xe] }
 0x25b   : > { %8752 = vst [vmem:[#allocation57_spill] sm:$0xff] %v8004_v4  ;;  %v2291_v18 = vrot.slane %v2289_v35, 4  ;;  %v2292_v15 = vrot.slane %v6499_v7, 5  ;;  %v3810_v4 = vpack.c.b16 %v3789_v32, %v3788_v34  ;;  %v4806_v6 = vpack.c.b16 %v4784_v23, %v4783_v12  ;;  %v8038_v2 = vpop.f32.mrf.mxu1 }
 0x25c   : > { %v3718_v28 = vrot.slane %v6501_v30, 5  ;;  %v4611_v44 = vor.u32 %v4610_v55, %v4607_v39  ;;  %v4621_v61 = vor.u32 %v4620_v1, %v8025_v51  ;;  %v4624_v25 = vshll.u32 %v8027_v14, 16  ;;  %8755 = vst [vmem:[#allocation60_spill] sm:$0xff] %v8038_v2 }
 0x25d   : > { %v5224_v7 = vpack.c.b16 %v5194_v13, %v5193_v54  ;;  %v6200_v34 = vrot.slane %v5000_v3, 9  ;;  %v2290_v32 = vsel %vm7375_vm14, %v5760_v19, %v2289_v35  ;;  %v2293_v12 = vsel %vm7375_vm14, %v2291_v18, %v2292_v15  ;;  %v5007_v13 = vld [vmem:[#allocation2 + $0x84] sm:$0xe] }
 0x25e   : > { %v5127_v23 = vrot.slane %v7972_v42, 5  ;;  %v5985_v55 = vrot.slane %v3586_v37, 9  ;;  %v3720_v1 = vrot.slane %v3718_v28, 4  ;;  %v4626_v54 = vrot.slane %v4624_v25, 5 }
 0x25f   : > { %2511 = vmatmul.bf16.gmra.mxu3 %v2387_v29  ;;  %v6500_v29 = vld [vmem:[#allocation2 + $0x34] sm:$0xf]  ;;  %v6207_v3 = vrot.slane %v5007_v13, 9  ;;  %v2366_v48 = vunpack.c.l.b16 %v2290_v32  ;;  %v2367_v35 = vunpack.c.l.b16 %v2293_v12  ;;  %v5130_v18 = vrot.slane %v7982_v50, 5 }
 0x260   : > { %v5078_v56 = vrot.slane %v6500_v29, 5  ;;  %v6503_v29 = vld [vmem:[#allocation2 + $0x98] sm:$0x1]  ;;  %v5129_v19 = vrot.slane %v5127_v23, 4 }
 0x261   : > { %3938 = vmatmul.bf16.gmra.mxu2 %v3810_v4  ;;  %4930 = vmatmul.bf16.gmra.mxu0 %v4806_v6  ;;  %v3721_v30 = vrot.slane %v6503_v29, 5  ;;  %v4612_v4 = vrot.slane %v4611_v44, 4  ;;  %v4622_v6 = vrot.slane %v4621_v61, 4  ;;  %v5128_v15 = vsel %vm7375_vm14, %v6207_v3, %v5127_v23 }
 0x262   : > { %v2472_v57 = vpop.f32.mrf.mxu3  ;;  %v5080_v39 = vrot.slane %v5078_v56, 4  ;;  %v5079_v37 = vsel %vm7375_vm14, %v6200_v34, %v5078_v56  ;;  %v3719_v44 = vsel %vm7375_vm14, %v5985_v55, %v3718_v28  ;;  %v5131_v61 = vsel %vm7375_vm14, %v5129_v19, %v5130_v18  ;;  %v4349_v34 = vld [vmem:[#allocation2 + $0x9c] sm:$0xf] }
 0x263   : > { %v8034_v36 = vadd.f32 %v2472_v57, %v7354_v31  ;;  %v6502_v31 = vld [vmem:[#allocation2 + $0x38] sm:$0x1]  ;;  %v3722_v50 = vsel %vm7375_vm14, %v3720_v1, %v3721_v30  ;;  %v4617_v32 = vsel %vm6942_vm7, %v4612_v4, %v8025_v51  ;;  %v4627_v56 = vsel %vm6942_vm7, %v4622_v6, %v4626_v54  ;;  %v6504_v1 = vld [vmem:[#allocation2 + $0x88] sm:$0xf]  ;;  %v8073_v13 = vpop.f32.mrf.mxu1  ;;  %v2177_v54 = vld [vmem:[#allocation2 + $0x84] sm:$0xe] }
 0x264   : > { %v5081_v57 = vrot.slane %v6502_v31, 5  ;;  %5316 = vmatmul.bf16.gmra.mxu1 %v5224_v7  ;;  %v2388_v12 = vpack.c.b16 %v2367_v35, %v2366_v48  ;;  %v8066_v31 = vld [vmem:[#allocation2 + $0xa0] sm:$0xf]  ;;  %v4629_v28 = vshrl.u32 %v4349_v34, 16  ;;  %v5210_v23 = vunpack.c.l.b16 %v5131_v61  ;;  %8758 = vst [vmem:[#allocation63_spill] sm:$0xff] %v8073_v13 }
 0x265   : > { %8754 = vst [vmem:[#allocation59_spill] sm:$0xff] %v8034_v36  ;;  %v3790_v55 = vunpack.c.l.b16 %v3719_v44  ;;  %v2296_v29 = vrot.slane %v6504_v1, 5  ;;  %v4632_v30 = vshll.u32 %v4349_v34, 16  ;;  %v4638_v51 = vshll.u32 %v8066_v31, 16  ;;  %v3587_v36 = vld [vmem:[#allocation2 + $0x9c] sm:$0xe] }
 0x266   : > { %v5082_v7 = vsel %vm7375_vm14, %v5080_v39, %v5081_v57  ;;  %v5209_v57 = vunpack.c.l.b16 %v5128_v15  ;;  %v8068_v39 = vpop.f32.mrf.mxu0  ;;  %v3791_v4 = vunpack.c.l.b16 %v3722_v50  ;;  %v4785_v6 = vunpack.c.l.b16 %v4617_v32  ;;  %v6505_v50 = vld [vmem:[#allocation2 + $0x8c] sm:$0x1] }
 0x267   : > { %8757 = vst [vmem:[#allocation62_spill] sm:$0xff] %v8068_v39  ;;  %v4786_v48 = vunpack.c.l.b16 %v4627_v56  ;;  %v4642_v3 = vshrl.u32 %v8066_v31, 16  ;;  %v4631_v35 = vrot.slane %v4629_v28, 4  ;;  %v4634_v19 = vrot.slane %v4632_v30, 5  ;;  %v5001_v56 = vld [vmem:[#allocation2 + $0x3c] sm:$0xe] }
 0x268   : > { %v8076_v18 = vrot.slane %v4638_v51, 5  ;;  %v5196_v15 = vunpack.c.l.b16 %v5082_v7  ;;  %v8080_v61 = vpack.c.b16 %v5210_v23, %v5209_v57  ;;  %v5195_v34 = vunpack.c.l.b16 %v5079_v37  ;;  %v6507_v30 = vld [vmem:[#allocation2 + $0xa0] sm:$0xf]  ;;  %v6373_v23 = vld [vmem:[%s8681_s2 + $0x188] sm:$0xff] }
 0x269   : > { %v4644_v44 = vrot.slane %v4642_v3, 4  ;;  %v5761_v1 = vrot.slane %v2177_v54, 9  ;;  %v2298_v39 = vrot.slane %v2296_v29, 4  ;;  %v2299_v32 = vrot.slane %v6505_v50, 5  ;;  %4201 = vmatpush.bf16.msra.mxu3 %v6373_v23  ;;  %v6509_v50 = vld [vmem:[#allocation2 + $0xa4] sm:$0x1] }
 0x26a   : > { %v2474_v42 = vpop.f32.mrf.mxu3  ;;  %v3811_v2 = vpack.c.b16 %v3791_v4, %v3790_v55  ;;  %v3725_v51 = vrot.slane %v6507_v30, 5  ;;  %v4635_v3 = vor.u32 %v4634_v19, %v4631_v35  ;;  %v5225_v54 = vpack.c.b16 %v5196_v15, %v5195_v34 }
 0x26b   : > { %v8057_v25 = vadd.f32 %v2474_v42, %v7379_v0  ;;  %v8070_v0 = vpop.f32.mrf.mxu2  ;;  %v8078_v42 = vld [vmem:[#allocation2 + $0xa4] sm:$0x1]  ;;  %v4645_v57 = vor.u32 %v4644_v44, %v8076_v18  ;;  %v6201_v55 = vrot.slane %v5001_v56, 9  ;;  %v2297_v4 = vsel %vm7375_vm14, %v5761_v1, %v2296_v29 }
 0x26c   : > { %v4648_v37 = vshll.u32 %v8078_v42, 16  ;;  %v5986_v19 = vrot.slane %v3587_v36, 9  ;;  %v3727_v44 = vrot.slane %v3725_v51, 4  ;;  %v3728_v15 = vrot.slane %v6509_v50, 5 }
 0x26d   : > { %8756 = vst [vmem:[#allocation61_spill] sm:$0xff] %v8057_v25  ;;  %v4807_v25 = vpack.c.b16 %v4786_v48, %v4785_v6  ;;  %v5134_v48 = vrot.slane %v8021_v20, 5  ;;  %v4636_v29 = vrot.slane %v4635_v3, 4  ;;  %v4646_v1 = vrot.slane %v4645_v57, 4 }
 0x26e   : > { %v4650_v56 = vrot.slane %v4648_v37, 5  ;;  %v5137_v23 = vrot.slane %v8027_v14, 5  ;;  %v3726_v57 = vsel %vm7375_vm14, %v5986_v19, %v3725_v51  ;;  %v3729_v14 = vsel %vm7375_vm14, %v3727_v44, %v3728_v15 }
 0x26f   : > { %2516 = vmatmul.bf16.gmra.mxu3 %v2388_v12  ;;  %v6506_v12 = vld [vmem:[#allocation2 + $0x40] sm:$0xf]  ;;  %v5136_v20 = vrot.slane %v5134_v48, 4  ;;  %v3792_v50 = vunpack.c.l.b16 %v3726_v57  ;;  %v3793_v15 = vunpack.c.l.b16 %v3729_v14 }
 0x270   : > { %v5085_v28 = vrot.slane %v6506_v12, 5  ;;  %v2368_v12 = vunpack.c.l.b16 %v2297_v4 }
 0x271   : > { %3943 = vmatmul.bf16.gmra.mxu2 %v3811_v2  ;;  %4935 = vmatmul.bf16.gmra.mxu0 %v4807_v25  ;;  %v5008_v2 = vld [vmem:[#allocation2 + $0x90] sm:$0xe]  ;;  %v8095_v25 = vpop.f32.mrf.mxu0  ;;  %v5138_v37 = vsel %vm7375_vm14, %v5136_v20, %v5137_v23 }
 0x272   : > { %v2477_v13 = vpop.f32.mrf.mxu3  ;;  %v5087_v35 = vrot.slane %v5085_v28, 4  ;;  %8760 = vst [vmem:[#allocation65_spill] sm:$0xff] %v8095_v25  ;;  %v5212_v19 = vunpack.c.l.b16 %v5138_v37 }
 0x273   : > { %v8083_v7 = vadd.f32 %v2477_v13, %v7403_v58  ;;  %v2300_v58 = vsel %vm7375_vm14, %v2298_v39, %v2299_v32  ;;  %v6508_v13 = vld [vmem:[#allocation2 + $0x44] sm:$0x1]  ;;  %v8097_v34 = vpop.f32.mrf.mxu2  ;;  %v6208_v39 = vrot.slane %v5008_v2, 9  ;;  %v8099_v32 = vpop.f32.mrf.mxu1 }
 0x274   : > { %v5088_v6 = vrot.slane %v6508_v13, 5  ;;  %5321 = vmatmul.bf16.gmra.mxu1 %v5225_v54  ;;  %8761 = vst [vmem:[#allocation66_spill] sm:$0xff] %v8099_v32  ;;  %v2369_v30 = vunpack.c.l.b16 %v2300_v58  ;;  %v5086_v13 = vsel %vm7375_vm14, %v6201_v55, %v5085_v28  ;;  %v4641_v58 = vsel %vm6942_vm7, %v4636_v29, %v8076_v18  ;;  %v4352_v55 = vld [vmem:[#allocation2 + $0xa8] sm:$0xf]  ;;  %v2178_v18 = vld [vmem:[#allocation2 + $0x90] sm:$0xe] }
 0x275   : > { %8759 = vst [vmem:[#allocation64_spill] sm:$0xff] %v8083_v7  ;;  %v5135_v36 = vsel %vm7375_vm14, %v6208_v39, %v5134_v48  ;;  %v4651_v28 = vsel %vm6942_vm7, %v4646_v1, %v4650_v56  ;;  %v8122_v48 = vld [vmem:[#allocation2 + $0xac] sm:$0xf]  ;;  %v4653_v51 = vshrl.u32 %v4352_v55, 16  ;;  %v4656_v39 = vshll.u32 %v4352_v55, 16 }
 0x276   : > { %v5089_v3 = vsel %vm7375_vm14, %v5087_v35, %v5088_v6  ;;  %v2389_v6 = vpack.c.b16 %v2369_v30, %v2368_v12  ;;  %v5211_v35 = vunpack.c.l.b16 %v5135_v36  ;;  %v4662_v44 = vshll.u32 %v8122_v48, 16  ;;  %v8128_v36 = vld [vmem:[#allocation2 + $0xb0] sm:$0x1]  ;;  %v6512_v32 = vld [vmem:[#allocation2 + $0x4c] sm:$0xf] }
 0x277   : > { %v4787_v20 = vunpack.c.l.b16 %v4641_v58  ;;  %v4788_v23 = vunpack.c.l.b16 %v4651_v28  ;;  %v4666_v29 = vshrl.u32 %v8122_v48, 16  ;;  %v4655_v1 = vrot.slane %v4653_v51, 4  ;;  %v3588_v7 = vld [vmem:[#allocation2 + $0xa8] sm:$0xe] }
 0x278   : > { %v4658_v56 = vrot.slane %v4656_v39, 5  ;;  %v8126_v12 = vrot.slane %v4662_v44, 5  ;;  %v5198_v30 = vunpack.c.l.b16 %v5089_v3  ;;  %v8130_v57 = vpack.c.b16 %v5212_v19, %v5211_v35 }
 0x279   : > { %v8132_v37 = vpop.f32.mrf.mxu0  ;;  %v5197_v14 = vunpack.c.l.b16 %v5086_v13  ;;  %v5762_v58 = vrot.slane %v2178_v18, 9  ;;  %v3812_v44 = vpack.c.b16 %v3793_v15, %v3792_v50  ;;  %v4808_v3 = vpack.c.b16 %v4788_v23, %v4787_v20  ;;  %v6514_v15 = vld [vmem:[#allocation2 + $0x50] sm:$0x1] }
 0x27a   : > { %v2479_v54 = vpop.f32.mrf.mxu3  ;;  %v4672_v18 = vshll.u32 %v8128_v36, 16  ;;  %v5095_v20 = vrot.slane %v6514_v15, 5 }
 0x27b   : > { %v8113_v4 = vadd.f32 %v2479_v54, %v7425_v46  ;;  %v6510_v46 = vld [vmem:[#allocation2 + $0x94] sm:$0xf]  ;;  %v4668_v54 = vrot.slane %v4666_v29, 4  ;;  %v8134_v55 = vpop.f32.mrf.mxu2  ;;  %v8136_v51 = vpop.f32.mrf.mxu1  ;;  %v6513_v29 = vld [vmem:[#allocation2 + $0xac] sm:$0xf] }
 0x27c   : > { %v2303_v2 = vrot.slane %v6510_v46, 5  ;;  %8763 = vst [vmem:[#allocation68_spill] sm:$0xff] %v8134_v55  ;;  %v6511_v46 = vld [vmem:[#allocation2 + $0x98] sm:$0x1]  ;;  %v3732_v35 = vrot.slane %v6513_v29, 5  ;;  %v4659_v55 = vor.u32 %v4658_v56, %v4655_v1  ;;  %v5987_v1 = vrot.slane %v3588_v7, 9 }
 0x27d   : > { %8762 = vst [vmem:[#allocation67_spill] sm:$0xff] %v8113_v4  ;;  %v2306_v25 = vrot.slane %v6511_v46, 5  ;;  %v5092_v4 = vrot.slane %v6512_v32, 5  ;;  %v4669_v13 = vor.u32 %v4668_v54, %v8126_v12  ;;  %v5226_v46 = vpack.c.b16 %v5198_v30, %v5197_v14  ;;  %v6515_v54 = vld [vmem:[#allocation2 + $0xb0] sm:$0x1] }
 0x27e   : > { %v2305_v28 = vrot.slane %v2303_v2, 4  ;;  %8764 = vst [vmem:[#allocation69_spill] sm:$0xff] %v8136_v51  ;;  %v2304_v50 = vsel %vm7375_vm14, %v5762_v58, %v2303_v2  ;;  %v3734_v56 = vrot.slane %v3732_v35, 4  ;;  %v5009_v30 = vld [vmem:[#allocation2 + $0x9c] sm:$0xe]  ;;  %v4660_v14 = vrot.slane %v4659_v55, 4 }
 0x27f   : > { %2521 = vmatmul.bf16.gmra.mxu3 %v2389_v6  ;;  %v5002_v6 = vld [vmem:[#allocation2 + $0x48] sm:$0xe]  ;;  %v5094_v23 = vrot.slane %v5092_v4, 4  ;;  %v2370_v29 = vunpack.c.l.b16 %v2304_v50  ;;  %v3733_v55 = vsel %vm7375_vm14, %v5987_v1, %v3732_v35  ;;  %v4355_v35 = vld [vmem:[#allocation2 + $0xb4] sm:$0xf] }
 0x280   : > { %v6202_v51 = vrot.slane %v5002_v6, 9  ;;  %v2307_v32 = vsel %vm7375_vm14, %v2305_v28, %v2306_v25  ;;  %v4674_v6 = vrot.slane %v4672_v18, 5  ;;  %v5144_v25 = vrot.slane %v8078_v42, 5 }
 0x281   : > { %3948 = vmatmul.bf16.gmra.mxu2 %v3812_v44  ;;  %4940 = vmatmul.bf16.gmra.mxu0 %v4808_v3  ;;  %v4670_v44 = vrot.slane %v4669_v13, 4  ;;  %v6209_v3 = vrot.slane %v5009_v30, 9  ;;  %v2371_v2 = vunpack.c.l.b16 %v2307_v32  ;;  %v8159_v18 = vpop.f32.mrf.mxu0  ;;  %v6516_v30 = vld [vmem:[#allocation2 + $0xa0] sm:$0xf] }
 0x282   : > { %v2482_v39 = vpop.f32.mrf.mxu3  ;;  %v5093_v7 = vsel %vm7375_vm14, %v6202_v51, %v5092_v4  ;;  %8766 = vst [vmem:[#allocation71_spill] sm:$0xff] %v8159_v18  ;;  %v4665_v4 = vsel %vm6942_vm7, %v4660_v14, %v8126_v12  ;;  %v3589_v18 = vld [vmem:[#allocation2 + $0xb4] sm:$0xe] }
 0x283   : > { %v8139_v19 = vadd.f32 %v2482_v39, %v7437_v17  ;;  %v5141_v17 = vrot.slane %v8066_v31, 5  ;;  %v3735_v39 = vrot.slane %v6515_v54, 5  ;;  %v8161_v50 = vpop.f32.mrf.mxu2  ;;  %v4675_v51 = vsel %vm6942_vm7, %v4670_v44, %v4674_v6  ;;  %v8173_v15 = vpop.f32.mrf.mxu1 }
 0x284   : > { %5326 = vmatmul.bf16.gmra.mxu1 %v5226_v46  ;;  %v5096_v46 = vsel %vm7375_vm14, %v5094_v23, %v5095_v20  ;;  %8767 = vst [vmem:[#allocation72_spill] sm:$0xff] %v8161_v50  ;;  %v2390_v20 = vpack.c.b16 %v2371_v2, %v2370_v29  ;;  %v4677_v23 = vshrl.u32 %v4355_v35, 16  ;;  %v3794_v54 = vunpack.c.l.b16 %v3733_v55  ;;  %v5003_v50 = vld [vmem:[#allocation2 + $0x54] sm:$0xe] }
 0x285   : > { %8765 = vst [vmem:[#allocation70_spill] sm:$0xff] %v8139_v19  ;;  %v5143_v58 = vrot.slane %v5141_v17, 4  ;;  %v5142_v28 = vsel %vm7375_vm14, %v6209_v3, %v5141_v17  ;;  %v3736_v32 = vsel %vm7375_vm14, %v3734_v56, %v3735_v39  ;;  %v8175_v17 = vld [vmem:[#allocation2 + $0xb8] sm:$0xf]  ;;  %v2310_v3 = vrot.slane %v6516_v30, 5 }
 0x286   : > { %8769 = vst [vmem:[#allocation74_spill] sm:$0xff] %v8173_v15  ;;  %v5213_v1 = vunpack.c.l.b16 %v5142_v28  ;;  %v4680_v56 = vshll.u32 %v4355_v35, 16  ;;  %v4686_v39 = vshll.u32 %v8175_v17, 16  ;;  %v4789_v12 = vunpack.c.l.b16 %v4665_v4  ;;  %v8181_v28 = vld [vmem:[#allocation2 + $0xbc] sm:$0x1] }
 0x287   : > { %v5145_v13 = vsel %vm7375_vm14, %v5143_v58, %v5144_v25  ;;  %v3795_v58 = vunpack.c.l.b16 %v3736_v32  ;;  %v4790_v14 = vunpack.c.l.b16 %v4675_v51  ;;  %v2179_v25 = vld [vmem:[#allocation2 + $0x9c] sm:$0xe]  ;;  %v4690_v44 = vshrl.u32 %v8175_v17, 16  ;;  %v6517_v32 = vld [vmem:[#allocation2 + $0xa4] sm:$0x1] }
 0x288   : > { %v4679_v6 = vrot.slane %v4677_v23, 4  ;;  %v4682_v29 = vrot.slane %v4680_v56, 5  ;;  %v8179_v2 = vrot.slane %v4686_v39, 5  ;;  %v5199_v35 = vunpack.c.l.b16 %v5093_v7  ;;  %v6519_v56 = vld [vmem:[#allocation2 + $0xb8] sm:$0xf] }
 0x289   : > { %v4692_v55 = vrot.slane %v4690_v44, 4  ;;  %v5763_v30 = vrot.slane %v2179_v25, 9  ;;  %v2312_v15 = vrot.slane %v2310_v3, 4  ;;  %v2313_v4 = vrot.slane %v6517_v32, 5  ;;  %v5010_v32 = vld [vmem:[#allocation2 + $0xa8] sm:$0xe] }
 0x28a   : > { %v2484_v31 = vpop.f32.mrf.mxu3  ;;  %v4809_v19 = vpack.c.b16 %v4790_v14, %v4789_v12  ;;  %v3739_v39 = vrot.slane %v6519_v56, 5  ;;  %v4683_v44 = vor.u32 %v4682_v29, %v4679_v6  ;;  %v4696_v7 = vshll.u32 %v8181_v28, 16 }
 0x28b   : > { %v8164_v42 = vadd.f32 %v2484_v31, %v7453_v52  ;;  %v5214_v52 = vunpack.c.l.b16 %v5145_v13  ;;  %v5200_v31 = vunpack.c.l.b16 %v5096_v46  ;;  %v8195_v12 = vpop.f32.mrf.mxu2  ;;  %v2314_v14 = vsel %vm7375_vm14, %v2312_v15, %v2313_v4  ;;  %v8202_v29 = vpop.f32.mrf.mxu1  ;;  %v6521_v4 = vld [vmem:[#allocation2 + $0x5c] sm:$0x1] }
 0x28c   : > { %8771 = vst [vmem:[#allocation76_spill] sm:$0xff] %v8195_v12  ;;  %v6203_v25 = vrot.slane %v5003_v50, 9  ;;  %v5148_v6 = vrot.slane %v8122_v48, 5  ;;  %v4698_v56 = vrot.slane %v4696_v7, 5  ;;  %v5151_v50 = vrot.slane %v8128_v36, 5 }
 0x28d   : > { %8768 = vst [vmem:[#allocation73_spill] sm:$0xff] %v8164_v42  ;;  %v8183_v13 = vpack.c.b16 %v5214_v52, %v5213_v1  ;;  %v3813_v42 = vpack.c.b16 %v3795_v58, %v3794_v54  ;;  %v4693_v1 = vor.u32 %v4692_v55, %v8179_v2  ;;  %v6372_v52 = vld [vmem:[%s8681_s2 + $0x180] sm:$0xff]  ;;  %v5227_v54 = vpack.c.b16 %v5200_v31, %v5199_v35  ;;  %v8193_v58 = vpop.f32.mrf.mxu0  ;;  %v6520_v55 = vld [vmem:[#allocation2 + $0xbc] sm:$0x1] }
 0x28e   : > { %4202 = vmatpush.bf16.msra.mxu3 %v6372_v52  ;;  %8772 = vst [vmem:[#allocation77_spill] sm:$0xff] %v8202_v29  ;;  %v3742_v35 = vrot.slane %v6520_v55, 5  ;;  %v5150_v15 = vrot.slane %v5148_v6, 4  ;;  %v5102_v48 = vrot.slane %v6521_v4, 5  ;;  %v6522_v4 = vld [vmem:[#allocation2 + $0xac] sm:$0xf] }
 0x28f   : > { %2526 = vmatmul.bf16.gmra.mxu3 %v2390_v20  ;;  %v6518_v20 = vld [vmem:[#allocation2 + $0x58] sm:$0xf] }
 0x290   : > { %v5099_v23 = vrot.slane %v6518_v20, 5  ;;  %v4694_v20 = vrot.slane %v4693_v1, 4  ;;  %v5152_v7 = vsel %vm7375_vm14, %v5150_v15, %v5151_v50  ;;  %v2180_v50 = vld [vmem:[#allocation2 + $0xa8] sm:$0xe] }
 0x291   : > { %3953 = vmatmul.bf16.gmra.mxu2 %v3813_v42  ;;  %4945 = vmatmul.bf16.gmra.mxu0 %v4809_v19  ;;  %v5988_v42 = vrot.slane %v3589_v18, 9  ;;  %v3741_v19 = vrot.slane %v3739_v39, 4  ;;  %v5216_v55 = vunpack.c.l.b16 %v5152_v7 }
 0x292   : > { %v2487_v51 = vpop.f32.mrf.mxu3  ;;  %v5101_v31 = vrot.slane %v5099_v23, 4  ;;  %v5100_v18 = vsel %vm7375_vm14, %v6203_v25, %v5099_v23  ;;  %v4699_v23 = vsel %vm6942_vm7, %v4694_v20, %v4698_v56 }
 0x293   : > { %v8186_v46 = vadd.f32 %v2487_v51, %v7476_v41  ;;  %v2311_v41 = vsel %vm7375_vm14, %v5763_v30, %v2310_v3  ;;  %v4684_v51 = vrot.slane %v4683_v44, 4  ;;  %v6210_v3 = vrot.slane %v5010_v32, 9 }
 0x294   : > { %5331 = vmatmul.bf16.gmra.mxu1 %v5227_v54  ;;  %v2372_v30 = vunpack.c.l.b16 %v2311_v41  ;;  %v3740_v44 = vsel %vm7375_vm14, %v5988_v42, %v3739_v39  ;;  %v3743_v1 = vsel %vm7375_vm14, %v3741_v19, %v3742_v35  ;;  %v5103_v41 = vsel %vm7375_vm14, %v5101_v31, %v5102_v48  ;;  %v4358_v39 = vld [vmem:[#allocation2 + $0xc0] sm:$0xf] }
 0x295   : > { %8770 = vst [vmem:[#allocation75_spill] sm:$0xff] %v8186_v46  ;;  %v2373_v46 = vunpack.c.l.b16 %v2314_v14  ;;  %v5149_v52 = vsel %vm7375_vm14, %v6210_v3, %v5148_v6  ;;  %v4689_v14 = vsel %vm6942_vm7, %v4684_v51, %v8179_v2  ;;  %v8225_v6 = vld [vmem:[#allocation2 + $0xc4] sm:$0xf]  ;;  %v4701_v42 = vshrl.u32 %v4358_v39, 16  ;;  %v8229_v20 = vpop.f32.mrf.mxu0 }
 0x296   : > { %v5215_v19 = vunpack.c.l.b16 %v5149_v52  ;;  %v3796_v35 = vunpack.c.l.b16 %v3740_v44  ;;  %v4704_v32 = vshll.u32 %v4358_v39, 16  ;;  %v4710_v3 = vshll.u32 %v8225_v6, 16  ;;  %v8235_v52 = vpop.f32.mrf.mxu1  ;;  %v8237_v44 = vld [vmem:[#allocation2 + $0xc8] sm:$0x1] }
 0x297   : > { %v2391_v25 = vpack.c.b16 %v2373_v46, %v2372_v30  ;;  %v4791_v31 = vunpack.c.l.b16 %v4689_v14  ;;  %v4792_v15 = vunpack.c.l.b16 %v4699_v23  ;;  %v2317_v2 = vrot.slane %v6522_v4, 5  ;;  %v8231_v46 = vpop.f32.mrf.mxu2  ;;  %8775 = vst [vmem:[#allocation80_spill] sm:$0xff] %v8235_v52  ;;  %v3590_v52 = vld [vmem:[#allocation2 + $0xc0] sm:$0xe] }
 0x298   : > { %v4714_v51 = vshrl.u32 %v8225_v6, 16  ;;  %8774 = vst [vmem:[#allocation79_spill] sm:$0xff] %v8231_v46  ;;  %v4703_v56 = vrot.slane %v4701_v42, 4  ;;  %v4706_v30 = vrot.slane %v4704_v32, 5  ;;  %v8233_v48 = vrot.slane %v4710_v3, 5 }
 0x299   : > { %v8239_v7 = vpack.c.b16 %v5216_v55, %v5215_v19  ;;  %v5201_v14 = vunpack.c.l.b16 %v5100_v18  ;;  %v5764_v39 = vrot.slane %v2180_v50, 9  ;;  %v4810_v29 = vpack.c.b16 %v4792_v15, %v4791_v31  ;;  %v6523_v46 = vld [vmem:[#allocation2 + $0xb0] sm:$0x1]  ;;  %v6524_v42 = vld [vmem:[#allocation2 + $0xc4] sm:$0xf] }
 0x29a   : > { %v2489_v54 = vpop.f32.mrf.mxu3  ;;  %v3746_v32 = vrot.slane %v6524_v42, 5  ;;  %v4720_v19 = vshll.u32 %v8237_v44, 16  ;;  %v6525_v18 = vld [vmem:[#allocation2 + $0x64] sm:$0xf]  ;;  %v5155_v31 = vrot.slane %v8175_v17, 5  ;;  %v5989_v15 = vrot.slane %v3590_v52, 9 }
 0x29b   : > { %v8216_v36 = vadd.f32 %v2489_v54, %v7495_v45  ;;  %v3797_v45 = vunpack.c.l.b16 %v3743_v1  ;;  %v5202_v54 = vunpack.c.l.b16 %v5103_v41  ;;  %v4716_v1 = vrot.slane %v4714_v51, 4  ;;  %v6526_v51 = vld [vmem:[#allocation2 + $0xc8] sm:$0x1] }
 0x29c   : > { %v4707_v41 = vor.u32 %v4706_v30, %v4703_v56  ;;  %v3748_v50 = vrot.slane %v3746_v32, 4  ;;  %v5011_v56 = vld [vmem:[#allocation2 + $0xb4] sm:$0xe]  ;;  %v6527_v52 = vld [vmem:[#allocation2 + $0x68] sm:$0x1] }
 0x29d   : > { %8773 = vst [vmem:[#allocation78_spill] sm:$0xff] %v8216_v36  ;;  %v3814_v23 = vpack.c.b16 %v3797_v45, %v3796_v35  ;;  %v2319_v36 = vrot.slane %v2317_v2, 4  ;;  %v4717_v12 = vor.u32 %v4716_v1, %v8233_v48  ;;  %v5228_v55 = vpack.c.b16 %v5202_v54, %v5201_v14 }
 0x29e   : > { %v5106_v35 = vrot.slane %v6525_v18, 5  ;;  %v2318_v45 = vsel %vm7375_vm14, %v5764_v39, %v2317_v2  ;;  %v4708_v30 = vrot.slane %v4707_v41, 4  ;;  %v4722_v1 = vrot.slane %v4720_v19, 5  ;;  %v8252_v2 = vpop.f32.mrf.mxu0  ;;  %v8258_v41 = vpop.f32.mrf.mxu1 }
 0x29f   : > { %2531 = vmatmul.bf16.gmra.mxu3 %v2391_v25  ;;  %v2320_v25 = vrot.slane %v6523_v46, 5  ;;  %v3749_v46 = vrot.slane %v6526_v51, 5  ;;  %v4718_v54 = vrot.slane %v4717_v12, 4  ;;  %v8254_v17 = vpop.f32.mrf.mxu2  ;;  %v2374_v39 = vunpack.c.l.b16 %v2318_v45 }
 0x2a0   : > { %v5108_v14 = vrot.slane %v5106_v35, 4  ;;  %v3747_v19 = vsel %vm7375_vm14, %v5989_v15, %v3746_v32 }
 0x2a1   : > { %3958 = vmatmul.bf16.gmra.mxu2 %v3814_v23  ;;  %4950 = vmatmul.bf16.gmra.mxu0 %v4810_v29  ;;  %v6211_v29 = vrot.slane %v5011_v56, 9  ;;  %v5157_v23 = vrot.slane %v5155_v31, 4  ;;  %v4723_v51 = vsel %vm6942_vm7, %v4718_v54, %v4722_v1 }
 0x2a2   : > { %v2492_v4 = vpop.f32.mrf.mxu3 }
 0x2a3   : > { %v8242_v3 = vadd.f32 %v2492_v4, %v7521_v16  ;;  %v2321_v16 = vsel %vm7375_vm14, %v2319_v36, %v2320_v25  ;;  %v5158_v4 = vrot.slane %v8181_v28, 5  ;;  %v5004_v36 = vld [vmem:[#allocation2 + $0x60] sm:$0xe]  ;;  %v5109_v25 = vrot.slane %v6527_v52, 5 }
 0x2a4   : > { %5336 = vmatmul.bf16.gmra.mxu1 %v5228_v55  ;;  %v2375_v42 = vunpack.c.l.b16 %v2321_v16  ;;  %v5156_v55 = vsel %vm7375_vm14, %v6211_v29, %v5155_v31  ;;  %v3750_v28 = vsel %vm7375_vm14, %v3748_v50, %v3749_v46  ;;  %v4713_v31 = vsel %vm6942_vm7, %v4708_v30, %v8233_v48  ;;  %v2181_v30 = vld [vmem:[#allocation2 + $0xb4] sm:$0xe] }
 0x2a5   : > { %v5159_v18 = vsel %vm7375_vm14, %v5157_v23, %v5158_v4  ;;  %v5217_v45 = vunpack.c.l.b16 %v5156_v55  ;;  %v6204_v29 = vrot.slane %v5004_v36, 9  ;;  %v5110_v32 = vsel %vm7375_vm14, %v5108_v14, %v5109_v25  ;;  %v6528_v55 = vld [vmem:[#allocation2 + $0xb8] sm:$0xf] }
 0x2a6   : > { %v5218_v56 = vunpack.c.l.b16 %v5159_v18  ;;  %v2392_v15 = vpack.c.b16 %v2375_v42, %v2374_v39  ;;  %v3798_v50 = vunpack.c.l.b16 %v3747_v19  ;;  %v3799_v46 = vunpack.c.l.b16 %v3750_v28  ;;  %v6529_v42 = vld [vmem:[#allocation2 + $0xbc] sm:$0x1]  ;;  %v8280_v19 = vpop.f32.mrf.mxu0 }
 0x2a7   : > { %v4793_v4 = vunpack.c.l.b16 %v4713_v31  ;;  %v4794_v52 = vunpack.c.l.b16 %v4723_v51  ;;  %v2324_v48 = vrot.slane %v6528_v55, 5  ;;  %v5204_v54 = vunpack.c.l.b16 %v5110_v32  ;;  %v5005_v51 = vld [vmem:[#allocation2 + $0x6c] sm:$0xe] }
 0x2a8   : > { %v8276_v23 = vpack.c.b16 %v5218_v56, %v5217_v45  ;;  %v3815_v36 = vpack.c.b16 %v3799_v46, %v3798_v50  ;;  %v5765_v14 = vrot.slane %v2181_v30, 9  ;;  %v2327_v25 = vrot.slane %v6529_v42, 5  ;;  %v8287_v45 = vpop.f32.mrf.mxu1  ;;  %v6530_v56 = vld [vmem:[#allocation2 + $0x70] sm:$0xf] }
 0x2a9   : > { %v4811_v18 = vpack.c.b16 %v4794_v52, %v4793_v4  ;;  %v2326_v39 = vrot.slane %v2324_v48, 4  ;;  %v6205_v50 = vrot.slane %v5005_v51, 9  ;;  %v6531_v4 = vld [vmem:[#allocation2 + $0x74] sm:$0x1]  ;;  %v6356_v51 = vld [vmem:[#allocation2 + $0x18] sm:$0xff] }
 0x2aa   : > { %v2494_v12 = vpop.f32.mrf.mxu3  ;;  %v2325_v32 = vsel %vm7375_vm14, %v5765_v14, %v2324_v48  ;;  %v5116_v52 = vrot.slane %v6531_v4, 5 }
 0x2ab   : > { %v8267_v16 = vadd.f32 %v2494_v12, %v7547_v40  ;;  %v5107_v40 = vsel %vm7375_vm14, %v6204_v29, %v5106_v35  ;;  %v8285_v35 = vpop.f32.mrf.mxu2  ;;  %v5113_v29 = vrot.slane %v6530_v56, 5 }
 0x2ac   : > { %v5203_v1 = vunpack.c.l.b16 %v5107_v40 }
 0x2ad   : > { %v5115_v40 = vrot.slane %v5113_v29, 4 }
 0x2ae   : > { %v5229_v31 = vpack.c.b16 %v5204_v54, %v5203_v1  ;;  %v5114_v1 = vsel %vm7375_vm14, %v6205_v50, %v5113_v29 }
 0x2af   : > { %2536 = vmatmul.bf16.gmra.mxu3 %v2392_v15  ;;  %v2328_v15 = vsel %vm7375_vm14, %v2326_v39, %v2327_v25  ;;  %v5117_v48 = vsel %vm7375_vm14, %v5115_v40, %v5116_v52 }
 0x2b0   : > { %v2377_v46 = vunpack.c.l.b16 %v2328_v15 }
 0x2b1   : > { %3963 = vmatmul.bf16.gmra.mxu2 %v3815_v36  ;;  %4955 = vmatmul.bf16.gmra.mxu0 %v4811_v18  ;;  %v8300_v36 = vpop.f32.mrf.mxu1  ;;  %v5206_v18 = vunpack.c.l.b16 %v5117_v48 }
 0x2b2   : > { %v2497_v12 = vpop.f32.mrf.mxu3 }
 0x2b3   : > { %v8283_v28 = vadd.f32 %v2497_v12, %v7567_v21  ;;  %v2376_v21 = vunpack.c.l.b16 %v2325_v32  ;;  %v5205_v12 = vunpack.c.l.b16 %v5114_v1 }
 0x2b4   : > { %5341 = vmatmul.bf16.gmra.mxu1 %v5229_v31 }
 0x2b5   : > { %v2393_v54 = vpack.c.b16 %v2377_v46, %v2376_v21  ;;  %v5230_v42 = vpack.c.b16 %v5206_v18, %v5205_v12  ;;  %v6357_v21 = vld [vmem:[#allocation2 + $0x24] sm:$0xff] }
 0x2ba   : > { %v2499_v55 = vpop.f32.mrf.mxu3 }
 0x2bb   : > { %v8294_v30 = vadd.f32 %v2499_v55, %v7587_v38  ;;  %v8305_v38 = vpop.f32.mrf.mxu1 }
 0x2bf   : > { %2541 = vmatmul.bf16.gmra.mxu3 %v2393_v54 }
 0x2c2   : > { %v2502_v14 = vpop.f32.mrf.mxu3 }
 0x2c3   : > { %v8303_v39 = vadd.f32 %v2502_v14, %v7609_v27  ;;  %v8310_v56 = vpop.f32.mrf.mxu1 }
 0x2c4   : > { %5346 = vmatmul.bf16.gmra.mxu1 %v5230_v42 }
 0x2ca   : > { %v2504_v25 = vpop.f32.mrf.mxu3 }
 0x2cb   : > { %v8308_v31 = vadd.f32 %v2504_v25, %v7619_v49  ;;  %v8319_v50 = vpop.f32.mrf.mxu1 }
 0x2cf   : > { %4203 = vmatmul.bf16.vlgmr.msra.gmra.mxu3 %v6356_v51 }
 0x2d2   : > { %v2507_v29 = vpop.f32.mrf.mxu3 }
 0x2d3   : > { %v8313_v32 = vadd.f32 %v2507_v29, %v7635_v47  ;;  %v8324_v40 = vpop.f32.mrf.mxu1  ;;  %v8780_v29 = vld [vmem:[#allocation40_spill] sm:$0xff] }
 0x2d4   : > { %5351 = vmatmul.bf16.gmra.mxu1 %v8029_v43  ;;  %8776 = vst [vmem:[#allocation81_spill] sm:$0xff] %v8324_v40  ;;  %v6358_v43 = vld [vmem:[#allocation2 + $0x30] sm:$0xff] }
 0x2da   : > { %v2509_v27 = vpop.f32.mrf.mxu3 }
 0x2db   : > { %v8317_v15 = vadd.f32 %v2509_v27, %v7659_v24  ;;  %v8330_v24 = vpop.f32.mrf.mxu1 }
 0x2dc   : > { %8777 = vst [vmem:[#allocation82_spill] sm:$0xff] %v8330_v24 }
 0x2df   : > { %4208 = vmatmul.bf16.gmra.mxu3 %v6357_v21 }
 0x2e2   : > { %v2512_v49 = vpop.f32.mrf.mxu3 }
 0x2e3   : > { %v8322_v46 = vadd.f32 %v2512_v49, %v7684_v53  ;;  %v8336_v53 = vpop.f32.mrf.mxu1 }
 0x2e4   : > { %5356 = vmatmul.bf16.gmra.mxu1 %v8080_v61  ;;  %8778 = vst [vmem:[#allocation83_spill] sm:$0xff] %v8336_v53  ;;  %v6359_v61 = vld [vmem:[#allocation2 + $0x3c] sm:$0xff] }
 0x2ea   : > { %v2514_v47 = vpop.f32.mrf.mxu3 }
 0x2eb   : > { %v8328_v4 = vadd.f32 %v2514_v47, %v7718_v62  ;;  %v5312_v12 = vpop.f32.mrf.mxu1  ;;  %v5162_v47 = vrot.slane %v8225_v6, 5 }
 0x2ef   : > { %4213 = vmatmul.bf16.gmra.mxu3 %v6358_v43  ;;  %v5012_v43 = vld [vmem:[#allocation2 + $0xc0] sm:$0xe] }
 0x2f2   : > { %v2517_v52 = vpop.f32.mrf.mxu3 }
 0x2f3   : > { %v8333_v55 = vadd.f32 %v2517_v52, %v7741_v33  ;;  %v8348_v14 = vpop.f32.mrf.mxu1  ;;  %v5164_v52 = vrot.slane %v5162_v47, 4 }
 0x2f4   : > { %5361 = vmatmul.bf16.gmra.mxu1 %v8130_v57  ;;  %v6360_v57 = vld [vmem:[#allocation2 + $0x48] sm:$0xff] }
 0x2fa   : > { %v2519_v54 = vpop.f32.mrf.mxu3 }
 0x2fb   : > { %v8339_v1 = vadd.f32 %v2519_v54, %v7764_v11  ;;  %v8779_v11 = vld [vmem:[#allocation38_spill] sm:$0xff]  ;;  %v8354_v51 = vpop.f32.mrf.mxu1  ;;  %v5165_v54 = vrot.slane %v8237_v44, 5 }
 0x2fd   : > { %v5166_v6 = vsel %vm7375_vm14, %v5164_v52, %v5165_v54  ;;  %v8783_v52 = vld [vmem:[#allocation7_spill] sm:$0xff] }
 0x2ff   : > { %4218 = vmatmul.bf16.gmra.mxu3 %v6359_v61 }
 0x302   : > { %v2522_v62 = vpop.f32.mrf.mxu3 }
 0x303   : > { %v8342_v48 = vadd.f32 %v2522_v62, %v7793_v60 }
 0x304   : > { %5366 = vmatmul.bf16.gmra.mxu1 %v8183_v13  ;;  %v6361_v13 = vld [vmem:[#allocation2 + $0x54] sm:$0xff] }
 0x30a   : > { %v2524_v18 = vpop.f32.mrf.mxu3 }
 0x30b   : > { %v8346_v33 = vadd.f32 %v2524_v18, %v7810_v10  ;;  %v8359_v10 = vpop.f32.mrf.mxu1 }
 0x30f   : > { %4223 = vmatmul.bf16.gmra.mxu3 %v6360_v57  ;;  %v6362_v57 = vld [vmem:[#allocation2 + $0x60] sm:$0xff] }
 0x312   : > { %v2527_v42 = vpop.f32.mrf.mxu3 }
 0x313   : > { %v8351_v25 = vadd.f32 %v2527_v42, %v8779_v11  ;;  %v8370_v18 = vpop.f32.mrf.mxu1  ;;  %v5220_v42 = vunpack.c.l.b16 %v5166_v6  ;;  %v8786_v6 = vld [vmem:[#allocation51_spill] sm:$0xff] }
 0x314   : > { %5371 = vmatmul.bf16.gmra.mxu1 %v8239_v7  ;;  %v6212_v7 = vrot.slane %v5012_v43, 9 }
 0x31a   : > { %v2529_v60 = vpop.f32.mrf.mxu3 }
 0x31b   : > { %v8357_v27 = vadd.f32 %v2529_v60, %v8780_v29  ;;  %v8379_v29 = vpop.f32.mrf.mxu1 }
 0x31f   : > { %4228 = vmatmul.bf16.gmra.mxu3 %v6361_v13 }
 0x322   : > { %v2532_v21 = vpop.f32.mrf.mxu3 }
 0x323   : > { %v8362_v49 = vadd.f32 %v2532_v21, %v7870_v22  ;;  %v5163_v22 = vsel %vm7375_vm14, %v6212_v7, %v5162_v47  ;;  %v6363_v21 = vld [vmem:[#allocation2 + $0x6c] sm:$0xff]  ;;  %v8782_v7 = vld [vmem:[#allocation54_spill] sm:$0xff] }
 0x324   : > { %5376 = vmatmul.bf16.gmra.mxu1 %v8276_v23  ;;  %v5219_v23 = vunpack.c.l.b16 %v5163_v22  ;;  %v2861_v54 = vadd.f32 %v8783_v52, %v8782_v7  ;;  %v8398_v52 = vpop.f32.mrf.mxu0 }
 0x326   : > { %v5237_v44 = vpack.c.b16 %v5220_v42, %v5219_v23  ;;  %v8788_v42 = vld [vmem:[#allocation57_spill] sm:$0xff] }
 0x32a   : > { %v2534_v61 = vpop.f32.mrf.mxu3 }
 0x32b   : > { %v8368_v62 = vadd.f32 %v2534_v61, %v7890_v5 }
 0x32f   : > { %4233 = vmatmul.bf16.gmra.mxu3 %v6362_v57  ;;  %v8785_v57 = vld [vmem:[#allocation6_spill] sm:$0xff] }
 0x332   : > { %v2537_v11 = vpop.f32.mrf.mxu3 }
 0x333   : > { %v8377_v60 = vadd.f32 %v2537_v11, %v7913_v59  ;;  %v8784_v59 = vld [vmem:[#allocation8_spill] sm:$0xff]  ;;  %v6364_v11 = vld [vmem:[#allocation2 + $0x78] sm:$0xff] }
 0x334   : > { %5381 = vmatmul.bf16.gmra.mxu1 %v5237_v44  ;;  %v2089_v22 = vadd.f32 %v8785_v57, %v8784_v59  ;;  %v8789_v44 = vld [vmem:[#allocation23_spill] sm:$0xff]  ;;  %v8791_v57 = vld [vmem:[#allocation25_spill] sm:$0xff] }
 0x33a   : > { %v2539_v5 = vpop.f32.mrf.mxu3 }
 0x33b   : > { %v8382_v13 = vadd.f32 %v2539_v5, %v7930_v26  ;;  %v2548_v26 = vadd.f32 %v8788_v42, %v2089_v22  ;;  %v3543_v5 = vadd.f32 %v8789_v44, %v2861_v54  ;;  %v8792_v42 = vld [vmem:[#allocation59_spill] sm:$0xff]  ;;  %v8793_v54 = vld [vmem:[#allocation10_spill] sm:$0xff] }
 0x33c   : > { %v8794_v44 = vld [vmem:[#allocation71_spill] sm:$0xff] }
 0x33f   : > { %4238 = vmatmul.bf16.gmra.mxu3 %v6363_v21  ;;  %v8790_v21 = vld [vmem:[#allocation9_spill] sm:$0xff] }
 0x342   : > { %v2542_v47 = vpop.f32.mrf.mxu3 }
 0x343   : > { %v8385_v43 = vadd.f32 %v2542_v47, %v7946_v9  ;;  %v2862_v9 = vadd.f32 %v8790_v21, %v2548_v26  ;;  %v3969_v47 = vadd.f32 %v8070_v0, %v3543_v5  ;;  %v6365_v21 = vld [vmem:[#allocation2 + $0x84] sm:$0xff] }
 0x345   : > { %8781 = vst [vmem:[#allocation38_spill] sm:$0xff] %v8385_v43 }
 0x34a   : > { %v2544_v61 = vpop.f32.mrf.mxu3 }
 0x34b   : > { %v8392_v23 = vadd.f32 %v2544_v61, %v8786_v6  ;;  %v3544_v61 = vadd.f32 %v8791_v57, %v2862_v9  ;;  %v8402_v6 = vpop.f32.mrf.mxu1  ;;  %v8411_v9 = vpop.f32.mrf.mxu0  ;;  %v8797_v57 = vld [vmem:[#allocation11_spill] sm:$0xff] }
 0x34d   : > { %8787 = vst [vmem:[#allocation40_spill] sm:$0xff] %v8392_v23  ;;  %v3970_v0 = vadd.f32 %v8097_v34, %v3544_v61  ;;  %v8798_v34 = vld [vmem:[#allocation68_spill] sm:$0xff] }
 0x34f   : > { %4243 = vmatmul.bf16.gmra.mxu3 %v6364_v11  ;;  %v2863_v11 = vadd.f32 %v8793_v54, %v8792_v42  ;;  %v8421_v42 = vpop.f32.mrf.mxu2 }
 0x352   : > { %v4204_v53 = vpop.f32.mrf.mxu3 }
 0x353   : > { %v4284_v7 = vadd.f32 %v4204_v53, %v3969_v47 }
 0x355   : > { %v4966_v59 = vadd.f32 %v8132_v37, %v4284_v7  ;;  %v8795_v37 = vld [vmem:[#allocation27_spill] sm:$0xff] }
 0x356   : > { %v3545_v47 = vadd.f32 %v8795_v37, %v2863_v11 }
 0x357   : > { %v5392_v22 = vadd.f32 %v5312_v12, %v4966_v59  ;;  %v8414_v12 = vpop.f32.mrf.mxu1  ;;  %v8796_v59 = vld [vmem:[#allocation61_spill] sm:$0xff] }
 0x358   : > { %v3971_v61 = vadd.f32 %v8798_v34, %v3545_v47 }
 0x359   : > { %5457 = vst.msk [vmem:[%s6708_s9 + $0x8] sm:$0xff] %vm5456_vm15, %v5392_v22  ;;  %v2864_v22 = vadd.f32 %v8797_v57, %v8796_v59 }
 0x35a   : > { %v4206_v26 = vpop.f32.mrf.mxu3 }
 0x35b   : > { %v4285_v53 = vadd.f32 %v4206_v26, %v3970_v0  ;;  %v8799_v26 = vld [vmem:[#allocation29_spill] sm:$0xff] }
 0x35d   : > { %v4967_v5 = vadd.f32 %v8794_v44, %v4285_v53  ;;  %v3546_v53 = vadd.f32 %v8799_v26, %v2864_v22  ;;  %v8426_v44 = vpop.f32.mrf.mxu0  ;;  %v6366_v22 = vld [vmem:[#allocation2 + $0x90] sm:$0xff] }
 0x35e   : > { %v8805_v26 = vld [vmem:[#allocation13_spill] sm:$0xff] }
 0x35f   : > { %v5393_v7 = vadd.f32 %v8348_v14, %v4967_v5  ;;  %4248 = vmatmul.bf16.gmra.mxu3 %v6365_v21  ;;  %v8800_v5 = vld [vmem:[#allocation64_spill] sm:$0xff]  ;;  %v8433_v59 = vpop.f32.mrf.mxu1 }
 0x360   : > { %v8801_v21 = vld [vmem:[#allocation12_spill] sm:$0xff] }
 0x361   : > { %5458 = vst.msk [vmem:[%s6708_s9 + $0x18] sm:$0xff] %vm5456_vm15, %v5393_v7  ;;  %v2865_v37 = vadd.f32 %v8801_v21, %v8800_v5  ;;  %v8802_v7 = vld [vmem:[#allocation72_spill] sm:$0xff] }
 0x362   : > { %v4209_v54 = vpop.f32.mrf.mxu3  ;;  %v3972_v47 = vadd.f32 %v8802_v7, %v3546_v53  ;;  %v8806_v53 = vld [vmem:[#allocation76_spill] sm:$0xff] }
 0x363   : > { %v4286_v0 = vadd.f32 %v4209_v54, %v3971_v61  ;;  %v8435_v61 = vpop.f32.mrf.mxu2  ;;  %v8803_v54 = vld [vmem:[#allocation30_spill] sm:$0xff] }
 0x365   : > { %v4968_v11 = vadd.f32 %v8193_v58, %v4286_v0  ;;  %v4908_v21 = vpop.f32.mrf.mxu0 }
 0x367   : > { %v5394_v14 = vadd.f32 %v8354_v51, %v4968_v11  ;;  %v3547_v51 = vadd.f32 %v8803_v54, %v2865_v37  ;;  %v8804_v11 = vld [vmem:[#allocation67_spill] sm:$0xff]  ;;  %v8808_v37 = vld [vmem:[#allocation70_spill] sm:$0xff] }
 0x368   : > { %v8810_v54 = vld [vmem:[#allocation79_spill] sm:$0xff] }
 0x369   : > { %5459 = vst.msk [vmem:[%s6708_s9 + $0x28] sm:$0xff] %vm5456_vm15, %v5394_v14  ;;  %v2866_v14 = vadd.f32 %v8805_v26, %v8804_v11  ;;  %v3973_v5 = vadd.f32 %v8806_v53, %v3547_v51 }
 0x36a   : > { %v4211_v57 = vpop.f32.mrf.mxu3 }
 0x36b   : > { %v4287_v34 = vadd.f32 %v4211_v57, %v3972_v47  ;;  %v5334_v57 = vpop.f32.mrf.mxu1  ;;  %v3914_v24 = vpop.f32.mrf.mxu2 }
 0x36d   : > { %v4969_v58 = vadd.f32 %v8229_v20, %v4287_v34  ;;  %v8807_v34 = vld [vmem:[#allocation32_spill] sm:$0xff]  ;;  %v8453_v26 = vpop.f32.mrf.mxu0 }
 0x36e   : > { %v3548_v23 = vadd.f32 %v8807_v34, %v2866_v14  ;;  %v8813_v34 = vld [vmem:[#allocation15_spill] sm:$0xff] }
 0x36f   : > { %v5395_v0 = vadd.f32 %v8359_v10, %v4969_v58  ;;  %4253 = vmatmul.bf16.gmra.mxu3 %v6366_v22  ;;  %v8809_v58 = vld [vmem:[#allocation14_spill] sm:$0xff] }
 0x370   : > { %v2867_v22 = vadd.f32 %v8809_v58, %v8808_v37 }
 0x371   : > { %5460 = vst.msk [vmem:[%s6708_s9 + $0x38] sm:$0xff] %vm5456_vm15, %v5395_v0  ;;  %v3974_v0 = vadd.f32 %v8810_v54, %v3548_v23 }
 0x372   : > { %v4214_v7 = vpop.f32.mrf.mxu3 }
 0x373   : > { %v4288_v47 = vadd.f32 %v4214_v7, %v3973_v5  ;;  %v8811_v5 = vld [vmem:[#allocation34_spill] sm:$0xff]  ;;  %v8457_v7 = vpop.f32.mrf.mxu1 }
 0x374   : > { %v3549_v14 = vadd.f32 %v8811_v5, %v2867_v22  ;;  %v8814_v22 = vld [vmem:[#allocation36_spill] sm:$0xff] }
 0x375   : > { %v4970_v20 = vadd.f32 %v8252_v2, %v4288_v47  ;;  %v6367_v2 = vld [vmem:[#allocation2 + $0x9c] sm:$0xff]  ;;  %v8460_v47 = vpop.f32.mrf.mxu2 }
 0x377   : > { %v5396_v10 = vadd.f32 %v8370_v18, %v4970_v20  ;;  %v8812_v20 = vld [vmem:[#allocation73_spill] sm:$0xff] }
 0x378   : > { %v2868_v23 = vadd.f32 %v8813_v34, %v8812_v20  ;;  %v6368_v20 = vld [vmem:[#allocation2 + $0xa8] sm:$0xff]  ;;  %v8817_v34 = vld [vmem:[#allocation39_spill] sm:$0xff] }
 0x379   : > { %5461 = vst.msk [vmem:[%s6708_s9 + $0x48] sm:$0xff] %vm5456_vm15, %v5396_v10  ;;  %v3975_v10 = vadd.f32 %v8254_v17, %v3549_v14 }
 0x37a   : > { %v4216_v51 = vpop.f32.mrf.mxu3  ;;  %v3550_v54 = vadd.f32 %v8814_v22, %v2868_v23 }
 0x37b   : > { %v4289_v11 = vadd.f32 %v4216_v51, %v3974_v0  ;;  %v8469_v0 = vpop.f32.mrf.mxu0  ;;  %v8472_v51 = vpop.f32.mrf.mxu1 }
 0x37c   : > { %v3976_v17 = vadd.f32 %v8285_v35, %v3550_v54 }
 0x37d   : > { %v4971_v53 = vadd.f32 %v8280_v19, %v4289_v11  ;;  %v8815_v11 = vld [vmem:[#allocation75_spill] sm:$0xff]  ;;  %v8479_v5 = vpop.f32.mrf.mxu2 }
 0x37f   : > { %v5397_v18 = vadd.f32 %v8379_v29, %v4971_v53  ;;  %4258 = vmatmul.bf16.gmra.mxu3 %v6367_v2  ;;  %v8816_v53 = vld [vmem:[#allocation16_spill] sm:$0xff] }
 0x380   : > { %v2869_v2 = vadd.f32 %v8816_v53, %v8815_v11  ;;  %v8820_v53 = vld [vmem:[#allocation42_spill] sm:$0xff] }
 0x381   : > { %5462 = vst.msk [vmem:[%s6708_s9 + $0x58] sm:$0xff] %vm5456_vm15, %v5397_v18 }
 0x382   : > { %v4219_v37 = vpop.f32.mrf.mxu3  ;;  %v3551_v23 = vadd.f32 %v8817_v34, %v2869_v2 }
 0x383   : > { %v4290_v19 = vadd.f32 %v4219_v37, %v3975_v10  ;;  %v8484_v10 = vpop.f32.mrf.mxu0  ;;  %v8818_v37 = vld [vmem:[#allocation78_spill] sm:$0xff]  ;;  %v8491_v22 = vpop.f32.mrf.mxu1 }
 0x384   : > { %v3977_v35 = vadd.f32 %v8421_v42, %v3551_v23 }
 0x385   : > { %v4972_v58 = vadd.f32 %v8398_v52, %v4290_v19  ;;  %v8819_v19 = vld [vmem:[#allocation17_spill] sm:$0xff] }
 0x387   : > { %v5398_v29 = vadd.f32 %v8402_v6, %v4972_v58  ;;  %v2870_v58 = vadd.f32 %v8819_v19, %v8818_v37 }
 0x389   : > { %5463 = vst.msk [vmem:[%s6708_s9 + $0x68] sm:$0xff] %vm5456_vm15, %v5398_v29  ;;  %v8493_v29 = vpop.f32.mrf.mxu2 }
 0x38a   : > { %v4221_v14 = vpop.f32.mrf.mxu3 }
 0x38b   : > { %v4291_v52 = vadd.f32 %v4221_v14, %v3976_v17  ;;  %v8821_v17 = vld [vmem:[#allocation18_spill] sm:$0xff]  ;;  %v8505_v34 = vpop.f32.mrf.mxu1 }
 0x38c   : > { %v2871_v14 = vadd.f32 %v8821_v17, %v8242_v3  ;;  %v8823_v3 = vld [vmem:[#allocation19_spill] sm:$0xff] }
 0x38d   : > { %v4973_v18 = vadd.f32 %v8411_v9, %v4291_v52  ;;  %v8503_v52 = vpop.f32.mrf.mxu0 }
 0x38f   : > { %v5399_v6 = vadd.f32 %v8414_v12, %v4973_v18  ;;  %4263 = vmatmul.bf16.gmra.mxu3 %v6368_v20  ;;  %v3552_v12 = vadd.f32 %v8820_v53, %v2870_v58  ;;  %v2872_v58 = vadd.f32 %v8823_v3, %v8267_v16 }
 0x391   : > { %5464 = vst.msk [vmem:[%s6708_s9 + $0x78] sm:$0xff] %vm5456_vm15, %v5399_v6  ;;  %v3978_v42 = vadd.f32 %v8435_v61, %v3552_v12  ;;  %v8822_v6 = vld [vmem:[#allocation44_spill] sm:$0xff]  ;;  %v8508_v19 = vpop.f32.mrf.mxu2 }
 0x392   : > { %v4224_v54 = vpop.f32.mrf.mxu3  ;;  %v3553_v37 = vadd.f32 %v8822_v6, %v2871_v14 }
 0x393   : > { %v4292_v9 = vadd.f32 %v4224_v54, %v3977_v35  ;;  %v4361_v35 = vld [vmem:[#allocation2 + $0xcc] sm:$0xf]  ;;  %v4362_v54 = vld [vmem:[#allocation2 + $0xd0] sm:$0xf]  ;;  %v8518_v43 = vpop.f32.mrf.mxu1 }
 0x394   : > { %v3979_v61 = vadd.f32 %v3914_v24, %v3553_v37  ;;  %v4725_v53 = vshrl.u32 %v4361_v35, 16  ;;  %v4728_v12 = vshll.u32 %v4361_v35, 16  ;;  %v8824_v37 = vld [vmem:[#allocation46_spill] sm:$0xff] }
 0x395   : > { %v4974_v11 = vadd.f32 %v8426_v44, %v4292_v9  ;;  %v6369_v44 = vld [vmem:[#allocation2 + $0xb4] sm:$0xff] }
 0x396   : > { %v4730_v16 = vrot.slane %v4728_v12, 5 }
 0x397   : > { %v5400_v2 = vadd.f32 %v8433_v59, %v4974_v11  ;;  %v4363_v11 = vld [vmem:[#allocation2 + $0xd4] sm:$0x1] }
 0x398   : > { %v4744_v14 = vshll.u32 %v4363_v11, 16 }
 0x399   : > { %5465 = vst.msk [vmem:[%s6708_s9 + $0x88] sm:$0xff] %vm5456_vm15, %v5400_v2  ;;  %v4738_v2 = vshrl.u32 %v4362_v54, 16  ;;  %v3926_v12 = vpop.f32.mrf.mxu2 }
 0x39a   : > { %v4226_v18 = vpop.f32.mrf.mxu3  ;;  %v4746_v40 = vrot.slane %v4744_v14, 5 }
 0x39b   : > { %v4293_v20 = vadd.f32 %v4226_v18, %v3978_v42  ;;  %v5013_v42 = vld [vmem:[#allocation2 + $0xcc] sm:$0xe]  ;;  %v5169_v18 = vrot.slane %v4362_v54, 5  ;;  %v4740_v6 = vrot.slane %v4738_v2, 4  ;;  %v5349_v8 = vpop.f32.mrf.mxu1 }
 0x39c   : > { %v6213_v3 = vrot.slane %v5013_v42, 9 }
 0x39d   : > { %v4975_v23 = vadd.f32 %v4908_v21, %v4293_v20  ;;  %v4734_v21 = vshll.u32 %v4362_v54, 16  ;;  %v8514_v20 = vpop.f32.mrf.mxu0  ;;  %v5171_v35 = vrot.slane %v5169_v18, 4 }
 0x39f   : > { %v5401_v59 = vadd.f32 %v5334_v57, %v4975_v23  ;;  %4268 = vmatmul.bf16.gmra.mxu3 %v6369_v44  ;;  %v5172_v57 = vrot.slane %v4363_v11, 5  ;;  %v4727_v23 = vrot.slane %v4725_v53, 4  ;;  %v4736_v44 = vrot.slane %v4734_v21, 5 }
 0x3a0   : > { %v5170_v11 = vsel %vm7375_vm14, %v6213_v3, %v5169_v18 }
 0x3a1   : > { %5466 = vst.msk [vmem:[%s6708_s9 + $0x98] sm:$0xff] %vm5456_vm15, %v5401_v59  ;;  %v3554_v59 = vadd.f32 %v8824_v37, %v2872_v58  ;;  %v5173_v53 = vsel %vm7375_vm14, %v5171_v35, %v5172_v57  ;;  %v5221_v58 = vunpack.c.l.b16 %v5170_v11  ;;  %v8826_v37 = vld [vmem:[#allocation48_spill] sm:$0xff] }
 0x3a2   : > { %v4229_v9 = vpop.f32.mrf.mxu3  ;;  %v5222_v2 = vunpack.c.l.b16 %v5173_v53  ;;  %v8828_v53 = vld [vmem:[#allocation50_spill] sm:$0xff] }
 0x3a3   : > { %v4294_v17 = vadd.f32 %v4229_v9, %v3979_v61  ;;  %v4731_v61 = vor.u32 %v4730_v16, %v4727_v23  ;;  %v4741_v9 = vor.u32 %v4740_v6, %v4736_v44  ;;  %v3980_v14 = vadd.f32 %v8460_v47, %v3554_v59 }
 0x3a4   : > { %v5238_v18 = vpack.c.b16 %v5222_v2, %v5221_v58  ;;  %v8829_v58 = vld [vmem:[#allocation22_spill] sm:$0xff] }
 0x3a5   : > { %v4976_v24 = vadd.f32 %v8453_v26, %v4294_v17  ;;  %v4732_v26 = vrot.slane %v4731_v61, 4  ;;  %v4742_v21 = vrot.slane %v4741_v9, 4  ;;  %v8825_v17 = vld [vmem:[#allocation20_spill] sm:$0xff]  ;;  %v4923_v47 = vpop.f32.mrf.mxu0  ;;  %v3929_v9 = vpop.f32.mrf.mxu2  ;;  %v2875_v2 = vadd.f32 %v8829_v58, %v8303_v39 }
 0x3a6   : > { %v2873_v42 = vadd.f32 %v8825_v17, %v8283_v28  ;;  %5386 = vmatmul.bf16.gmra.mxu1 %v5238_v18  ;;  %v6370_v28 = vld [vmem:[#allocation2 + $0xc0] sm:$0xff]  ;;  %v5352_v17 = vpop.f32.mrf.mxu1  ;;  %v8831_v18 = vld [vmem:[#allocation24_spill] sm:$0xff] }
 0x3a7   : > { %v5402_v54 = vadd.f32 %v8457_v7, %v4976_v24  ;;  %v4737_v7 = vsel %vm6942_vm7, %v4732_v26, %v4736_v44  ;;  %v4747_v63 = vsel %vm6942_vm7, %v4742_v21, %v4746_v40  ;;  %v8827_v40 = vld [vmem:[#allocation21_spill] sm:$0xff]  ;;  %v2876_v39 = vadd.f32 %v8831_v18, %v8308_v31 }
 0x3a8   : > { %v4795_v16 = vunpack.c.l.b16 %v4737_v7  ;;  %v4796_v6 = vunpack.c.l.b16 %v4747_v63  ;;  %v3555_v3 = vadd.f32 %v8826_v37, %v2873_v42  ;;  %v2874_v44 = vadd.f32 %v8827_v40, %v8294_v30  ;;  %v8830_v7 = vld [vmem:[#allocation53_spill] sm:$0xff] }
 0x3a9   : > { %5467 = vst.msk [vmem:[%s6708_s9 + $0xa8] sm:$0xff] %vm5456_vm15, %v5402_v54  ;;  %v3557_v63 = vadd.f32 %v8830_v7, %v2875_v2 }
 0x3aa   : > { %v4231_v23 = vpop.f32.mrf.mxu3  ;;  %v4812_v35 = vpack.c.b16 %v4796_v6, %v4795_v16  ;;  %v3981_v61 = vadd.f32 %v8479_v5, %v3555_v3  ;;  %v3556_v26 = vadd.f32 %v8828_v53, %v2874_v44 }
 0x3ab   : > { %v4295_v57 = vadd.f32 %v4231_v23, %v3980_v14  ;;  %v6371_v14 = vld [vmem:[#allocation2 + $0xcc] sm:$0xff] }
 0x3ac   : > { %4960 = vmatmul.bf16.gmra.mxu0 %v4812_v35  ;;  %v3982_v30 = vadd.f32 %v8493_v29, %v3556_v26  ;;  %v3983_v29 = vadd.f32 %v8508_v19, %v3557_v63  ;;  %v8833_v35 = vld [vmem:[#allocation26_spill] sm:$0xff]  ;;  %v8835_v26 = vld [vmem:[#allocation28_spill] sm:$0xff] }
 0x3ad   : > { %v4977_v24 = vadd.f32 %v8469_v0, %v4295_v57  ;;  %v4926_v21 = vpop.f32.mrf.mxu0  ;;  %v3931_v23 = vpop.f32.mrf.mxu2 }
 0x3af   : > { %v5403_v59 = vadd.f32 %v8472_v51, %v4977_v24  ;;  %4273 = vmatmul.bf16.gmra.mxu3 %v6370_v28  ;;  %v5354_v24 = vpop.f32.mrf.mxu1 }
 0x3b1   : > { %5468 = vst.msk [vmem:[%s6708_s9 + $0xb8] sm:$0xff] %vm5456_vm15, %v5403_v59  ;;  %v2877_v59 = vadd.f32 %v8833_v35, %v8313_v32 }
 0x3b2   : > { %v4234_v0 = vpop.f32.mrf.mxu3 }
 0x3b3   : > { %v4296_v54 = vadd.f32 %v4234_v0, %v3981_v61  ;;  %v8834_v0 = vld [vmem:[#allocation60_spill] sm:$0xff] }
 0x3b5   : > { %v4978_v11 = vadd.f32 %v8484_v10, %v4296_v54  ;;  %v4928_v57 = vpop.f32.mrf.mxu0  ;;  %v3934_v3 = vpop.f32.mrf.mxu2  ;;  %v3559_v54 = vadd.f32 %v8834_v0, %v2877_v59 }
 0x3b7   : > { %v5404_v51 = vadd.f32 %v8491_v22, %v4978_v11 }
 0x3b9   : > { %5469 = vst.msk [vmem:[%s6708_s9 + $0xc8] sm:$0xff] %vm5456_vm15, %v5404_v51  ;;  %v2878_v51 = vadd.f32 %v8835_v26, %v8317_v15 }
 0x3ba   : > { %v4236_v5 = vpop.f32.mrf.mxu3 }
 0x3bb   : > { %v4297_v42 = vadd.f32 %v4236_v5, %v3982_v30 }
 0x3bd   : > { %v4979_v10 = vadd.f32 %v8503_v52, %v4297_v42  ;;  %v8832_v52 = vld [vmem:[#allocation56_spill] sm:$0xff]  ;;  %v4931_v44 = vpop.f32.mrf.mxu0  ;;  %v3936_v53 = vpop.f32.mrf.mxu2 }
 0x3be   : > { %v3558_v37 = vadd.f32 %v8832_v52, %v2876_v39 }
 0x3bf   : > { %v5405_v22 = vadd.f32 %v8505_v34, %v4979_v10  ;;  %4278 = vmatmul.bf16.gmra.mxu3 %v6371_v14  ;;  %v8837_v14 = vld [vmem:[#allocation31_spill] sm:$0xff] }
 0x3c0   : > { %v3984_v31 = vadd.f32 %v3926_v12, %v3558_v37  ;;  %v8836_v12 = vld [vmem:[#allocation63_spill] sm:$0xff]  ;;  %v2879_v10 = vadd.f32 %v8837_v14, %v8322_v46  ;;  %v8840_v37 = vld [vmem:[#allocation69_spill] sm:$0xff] }
 0x3c1   : > { %5470 = vst.msk [vmem:[%s6708_s9 + $0xd8] sm:$0xff] %vm5456_vm15, %v5405_v22  ;;  %v3560_v30 = vadd.f32 %v8836_v12, %v2878_v51  ;;  %v8838_v22 = vld [vmem:[#allocation66_spill] sm:$0xff] }
 0x3c2   : > { %v4239_v16 = vpop.f32.mrf.mxu3  ;;  %v3561_v18 = vadd.f32 %v8838_v22, %v2879_v10  ;;  %v8847_v22 = vld [vmem:[#allocation43_spill] sm:$0xff] }
 0x3c3   : > { %v4298_v6 = vadd.f32 %v4239_v16, %v3983_v29  ;;  %v8839_v29 = vld [vmem:[#allocation33_spill] sm:$0xff] }
 0x3c4   : > { %v2880_v16 = vadd.f32 %v8839_v29, %v8328_v4 }
 0x3c5   : > { %v4980_v28 = vadd.f32 %v8514_v20, %v4298_v6  ;;  %v5357_v20 = vpop.f32.mrf.mxu1  ;;  %v4933_v5 = vpop.f32.mrf.mxu0 }
 0x3c6   : > { %v3939_v7 = vpop.f32.mrf.mxu2 }
 0x3c7   : > { %v5406_v34 = vadd.f32 %v8518_v43, %v4980_v28  ;;  %v3985_v43 = vadd.f32 %v3929_v9, %v3559_v54 }
 0x3c9   : > { %5471 = vst.msk [vmem:[%s6708_s9 + $0xe8] sm:$0xff] %vm5456_vm15, %v5406_v34  ;;  %v3562_v34 = vadd.f32 %v8840_v37, %v2880_v16 }
 0x3ca   : > { %v4241_v40 = vpop.f32.mrf.mxu3 }
 0x3cb   : > { %v4299_v19 = vadd.f32 %v4241_v40, %v3984_v31 }
 0x3cd   : > { %v4981_v61 = vadd.f32 %v4923_v47, %v4299_v19  ;;  %v5359_v42 = vpop.f32.mrf.mxu1  ;;  %v4936_v39 = vpop.f32.mrf.mxu0 }
 0x3ce   : > { %v3941_v52 = vpop.f32.mrf.mxu2 }
 0x3cf   : > { %v5407_v11 = vadd.f32 %v5349_v8, %v4981_v61  ;;  %v3986_v8 = vadd.f32 %v3931_v23, %v3560_v30  ;;  %v8842_v61 = vld [vmem:[#allocation74_spill] sm:$0xff] }
 0x3d1   : > { %5472 = vst.msk [vmem:[%s6708_s9 + $0xf8] sm:$0xff] %vm5456_vm15, %v5407_v11 }
 0x3d2   : > { %v4244_v32 = vpop.f32.mrf.mxu3 }
 0x3d3   : > { %v4300_v58 = vadd.f32 %v4244_v32, %v3985_v43  ;;  %v8844_v32 = vld [vmem:[#allocation77_spill] sm:$0xff] }
 0x3d5   : > { %v4982_v2 = vadd.f32 %v4926_v21, %v4300_v58  ;;  %v5362_v6 = vpop.f32.mrf.mxu1  ;;  %v4938_v31 = vpop.f32.mrf.mxu0 }
 0x3d6   : > { %v3944_v54 = vpop.f32.mrf.mxu2 }
 0x3d7   : > { %v5408_v47 = vadd.f32 %v5352_v17, %v4982_v2  ;;  %v3987_v17 = vadd.f32 %v3934_v3, %v3561_v18  ;;  %v2884_v18 = vadd.f32 %v8847_v22, %v8346_v33 }
 0x3d9   : > { %5473 = vst.msk [vmem:[%s6708_s9 + $0x108] sm:$0xff] %vm5456_vm15, %v5408_v47 }
 0x3da   : > { %v4246_v15 = vpop.f32.mrf.mxu3 }
 0x3db   : > { %v4301_v63 = vadd.f32 %v4246_v15, %v3986_v8  ;;  %v8846_v8 = vld [vmem:[#allocation80_spill] sm:$0xff] }
 0x3dd   : > { %v4983_v9 = vadd.f32 %v4928_v57, %v4301_v63  ;;  %v8841_v57 = vld [vmem:[#allocation35_spill] sm:$0xff]  ;;  %v5364_v19 = vpop.f32.mrf.mxu1  ;;  %v4941_v43 = vpop.f32.mrf.mxu0 }
 0x3de   : > { %v2881_v59 = vadd.f32 %v8841_v57, %v8333_v55  ;;  %v3946_v30 = vpop.f32.mrf.mxu2 }
 0x3df   : > { %v5409_v21 = vadd.f32 %v5354_v24, %v4983_v9  ;;  %v3988_v24 = vadd.f32 %v3936_v53, %v3562_v34 }
 0x3e0   : > { %v3563_v0 = vadd.f32 %v8842_v61, %v2881_v59 }
 0x3e1   : > { %5474 = vst.msk [vmem:[%s6708_s9 + $0x118] sm:$0xff] %vm5456_vm15, %v5409_v21 }
 0x3e2   : > { %v4249_v46 = vpop.f32.mrf.mxu3 }
 0x3e3   : > { %v4302_v28 = vadd.f32 %v4249_v46, %v3987_v17  ;;  %v3566_v17 = vadd.f32 %v8258_v41, %v2884_v18 }
 0x3e5   : > { %v4984_v23 = vadd.f32 %v4931_v44, %v4302_v28  ;;  %v8843_v44 = vld [vmem:[#allocation37_spill] sm:$0xff]  ;;  %v5367_v2 = vpop.f32.mrf.mxu1  ;;  %v4943_v15 = vpop.f32.mrf.mxu0 }
 0x3e6   : > { %v2882_v26 = vadd.f32 %v8843_v44, %v8339_v1  ;;  %v8848_v28 = vld [vmem:[#allocation45_spill] sm:$0xff] }
 0x3e7   : > { %v5410_v35 = vadd.f32 %v5357_v20, %v4984_v23  ;;  %v3989_v20 = vadd.f32 %v3939_v7, %v3563_v0  ;;  %v3992_v23 = vadd.f32 %v3946_v30, %v3566_v17  ;;  %v8850_v44 = vld [vmem:[#allocation49_spill] sm:$0xff] }
 0x3e8   : > { %v3564_v58 = vadd.f32 %v8844_v32, %v2882_v26 }
 0x3e9   : > { %5475 = vst.msk [vmem:[%s6708_s9 + $0x128] sm:$0xff] %vm5456_vm15, %v5410_v35 }
 0x3ea   : > { %v4251_v4 = vpop.f32.mrf.mxu3 }
 0x3eb   : > { %v4303_v40 = vadd.f32 %v4251_v4, %v3988_v24 }
 0x3ed   : > { %v4985_v3 = vadd.f32 %v4933_v5, %v4303_v40  ;;  %v8845_v5 = vld [vmem:[#allocation41_spill] sm:$0xff]  ;;  %v5369_v9 = vpop.f32.mrf.mxu1  ;;  %v4946_v46 = vpop.f32.mrf.mxu0 }
 0x3ee   : > { %v2883_v47 = vadd.f32 %v8845_v5, %v8342_v48 }
 0x3ef   : > { %v5411_v11 = vadd.f32 %v5359_v42, %v4985_v3  ;;  %v3990_v42 = vadd.f32 %v3941_v52, %v3564_v58  ;;  %v2885_v52 = vadd.f32 %v8848_v28, %v8351_v25 }
 0x3f0   : > { %v3565_v7 = vadd.f32 %v8846_v8, %v2883_v47 }
 0x3f1   : > { %5476 = vst.msk [vmem:[%s6708_s9 + $0x138] sm:$0xff] %vm5456_vm15, %v5411_v11  ;;  %v3567_v59 = vadd.f32 %v8287_v45, %v2885_v52  ;;  %v2887_v45 = vadd.f32 %v8850_v44, %v8362_v49  ;;  %v8855_v52 = vld [vmem:[#allocation38_spill] sm:$0xff]  ;;  %v8860_v44 = vld [vmem:[#allocation83_spill] sm:$0xff] }
 0x3f2   : > { %v4254_v55 = vpop.f32.mrf.mxu3  ;;  %v3991_v21 = vadd.f32 %v3944_v54, %v3565_v7 }
 0x3f3   : > { %v4304_v51 = vadd.f32 %v4254_v55, %v3989_v20 }
 0x3f5   : > { %v4986_v53 = vadd.f32 %v4936_v39, %v4304_v51  ;;  %v3949_v39 = vpop.f32.mrf.mxu2  ;;  %v5372_v37 = vpop.f32.mrf.mxu1 }
 0x3f6   : > { %v3993_v4 = vadd.f32 %v3949_v39, %v3567_v59  ;;  %v4948_v40 = vpop.f32.mrf.mxu0  ;;  %v8857_v59 = vld [vmem:[#allocation82_spill] sm:$0xff] }
 0x3f7   : > { %v5412_v12 = vadd.f32 %v5362_v6, %v4986_v53 }
 0x3f9   : > { %5477 = vst.msk [vmem:[%s6708_s9 + $0x148] sm:$0xff] %vm5456_vm15, %v5412_v12 }
 0x3fa   : > { %v4256_v1 = vpop.f32.mrf.mxu3 }
 0x3fb   : > { %v4305_v14 = vadd.f32 %v4256_v1, %v3990_v42 }
 0x3fd   : > { %v4987_v10 = vadd.f32 %v4938_v31, %v4305_v14  ;;  %v3951_v35 = vpop.f32.mrf.mxu2  ;;  %v8849_v31 = vld [vmem:[#allocation47_spill] sm:$0xff]  ;;  %v5374_v3 = vpop.f32.mrf.mxu1 }
 0x3fe   : > { %v2886_v41 = vadd.f32 %v8849_v31, %v8357_v27  ;;  %v4951_v55 = vpop.f32.mrf.mxu0 }
 0x3ff   : > { %v5413_v63 = vadd.f32 %v5364_v19, %v4987_v10 }
 0x400   : > { %v3568_v0 = vadd.f32 %v8300_v36, %v2886_v41  ;;  %v8851_v36 = vld [vmem:[#allocation52_spill] sm:$0xff] }
 0x401   : > { %5478 = vst.msk [vmem:[%s6708_s9 + $0x158] sm:$0xff] %vm5456_vm15, %v5413_v63 }
 0x402   : > { %v4259_v48 = vpop.f32.mrf.mxu3  ;;  %v3994_v26 = vadd.f32 %v3951_v35, %v3568_v0 }
 0x403   : > { %v4306_v29 = vadd.f32 %v4259_v48, %v3991_v21 }
 0x405   : > { %v4988_v16 = vadd.f32 %v4941_v43, %v4306_v29  ;;  %v3954_v54 = vpop.f32.mrf.mxu2  ;;  %v3569_v43 = vadd.f32 %v8305_v38, %v2887_v45  ;;  %v5377_v53 = vpop.f32.mrf.mxu1  ;;  %v8852_v38 = vld [vmem:[#allocation55_spill] sm:$0xff] }
 0x406   : > { %v4953_v42 = vpop.f32.mrf.mxu0  ;;  %v2889_v10 = vadd.f32 %v8852_v38, %v8377_v60 }
 0x407   : > { %v5414_v6 = vadd.f32 %v5367_v2, %v4988_v16  ;;  %v2888_v2 = vadd.f32 %v8851_v36, %v8368_v62  ;;  %v3995_v12 = vadd.f32 %v3954_v54, %v3569_v43 }
 0x409   : > { %5479 = vst.msk [vmem:[%s6708_s9 + $0x168] sm:$0xff] %vm5456_vm15, %v5414_v6  ;;  %v3570_v47 = vadd.f32 %v8310_v56, %v2888_v2  ;;  %v8853_v56 = vld [vmem:[#allocation58_spill] sm:$0xff]  ;;  %v8854_v6 = vld [vmem:[#allocation81_spill] sm:$0xff] }
 0x40a   : > { %v4261_v33 = vpop.f32.mrf.mxu3  ;;  %v2890_v21 = vadd.f32 %v8853_v56, %v8382_v13 }
 0x40b   : > { %v4307_v34 = vadd.f32 %v4261_v33, %v3992_v23  ;;  %v8856_v23 = vld [vmem:[#allocation62_spill] sm:$0xff] }
 0x40d   : > { %v4989_v57 = vadd.f32 %v4943_v15, %v4307_v34  ;;  %v3956_v58 = vpop.f32.mrf.mxu2  ;;  %v5379_v14 = vpop.f32.mrf.mxu1 }
 0x40e   : > { %v3996_v8 = vadd.f32 %v3956_v58, %v3570_v47  ;;  %v4956_v18 = vpop.f32.mrf.mxu0 }
 0x40f   : > { %v5415_v24 = vadd.f32 %v5369_v9, %v4989_v57  ;;  %v3571_v9 = vadd.f32 %v8319_v50, %v2889_v10  ;;  %v2891_v50 = vadd.f32 %v8856_v23, %v8855_v52 }
 0x411   : > { %5480 = vst.msk [vmem:[%s6708_s9 + $0x178] sm:$0xff] %vm5456_vm15, %v5415_v24  ;;  %v3573_v24 = vadd.f32 %v8857_v59, %v2891_v50 }
 0x412   : > { %v4264_v25 = vpop.f32.mrf.mxu3 }
 0x413   : > { %v4308_v19 = vadd.f32 %v4264_v25, %v3993_v4  ;;  %v8858_v4 = vld [vmem:[#allocation40_spill] sm:$0xff] }
 0x415   : > { %v4990_v61 = vadd.f32 %v4946_v46, %v4308_v19  ;;  %v3959_v7 = vpop.f32.mrf.mxu2  ;;  %v5382_v48 = vpop.f32.mrf.mxu1  ;;  %v3572_v46 = vadd.f32 %v8854_v6, %v2890_v21 }
 0x416   : > { %v3997_v39 = vadd.f32 %v3959_v7, %v3571_v9  ;;  %v4958_v33 = vpop.f32.mrf.mxu0 }
 0x417   : > { %v5416_v11 = vadd.f32 %v5372_v37, %v4990_v61 }
 0x419   : > { %5481 = vst.msk [vmem:[%s6708_s9 + $0x188] sm:$0xff] %vm5456_vm15, %v5416_v11 }
 0x41a   : > { %v4266_v27 = vpop.f32.mrf.mxu3 }
 0x41b   : > { %v4309_v20 = vadd.f32 %v4266_v27, %v3994_v26 }
 0x41d   : > { %v4991_v51 = vadd.f32 %v4948_v40, %v4309_v20  ;;  %v3961_v16 = vpop.f32.mrf.mxu2  ;;  %v5384_v35 = vpop.f32.mrf.mxu1  ;;  %v8859_v40 = vld [vmem:[#allocation65_spill] sm:$0xff] }
 0x41e   : > { %v3998_v37 = vadd.f32 %v3961_v16, %v3572_v46  ;;  %v2892_v25 = vadd.f32 %v8859_v40, %v8858_v4 }
 0x41f   : > { %v5417_v32 = vadd.f32 %v5374_v3, %v4991_v51 }
 0x420   : > { %v3574_v45 = vadd.f32 %v8860_v44, %v2892_v25 }
 0x421   : > { %5482 = vst.msk [vmem:[%s6708_s9 + $0x198] sm:$0xff] %vm5456_vm15, %v5417_v32 }
 0x422   : > { %v4269_v49 = vpop.f32.mrf.mxu3 }
 0x423   : > { %v4310_v30 = vadd.f32 %v4269_v49, %v3995_v12 }
 0x425   : > { %v4992_v5 = vadd.f32 %v4951_v55, %v4310_v30  ;;  %v3964_v31 = vpop.f32.mrf.mxu2  ;;  %v5387_v54 = vpop.f32.mrf.mxu1 }
 0x426   : > { %v3999_v19 = vadd.f32 %v3964_v31, %v3573_v24 }
 0x427   : > { %v5418_v1 = vadd.f32 %v5377_v53, %v4992_v5 }
 0x429   : > { %5483 = vst.msk [vmem:[%s6708_s9 + $0x1a8] sm:$0xff] %vm5456_vm15, %v5418_v1  ;;  %v4961_v3 = vpop.f32.mrf.mxu0 }
 0x42a   : > { %v4271_v62 = vpop.f32.mrf.mxu3 }
 0x42b   : > { %v4311_v15 = vadd.f32 %v4271_v62, %v3996_v8 }
 0x42d   : > { %v4993_v63 = vadd.f32 %v4953_v42, %v4311_v15  ;;  %v3966_v27 = vpop.f32.mrf.mxu2  ;;  %v5389_v32 = vpop.f32.mrf.mxu1 }
 0x42e   : > { %v4000_v20 = vadd.f32 %v3966_v27, %v3574_v45 }
 0x42f   : > { %v5419_v22 = vadd.f32 %v5379_v14, %v4993_v63 }
 0x431   : > { %5484 = vst.msk [vmem:[%s6708_s9 + $0x1b8] sm:$0xff] %vm5456_vm15, %v5419_v22  ;;  %v4963_v43 = vpop.f32.mrf.mxu0 }
 0x432   : > { %v4274_v60 = vpop.f32.mrf.mxu3 }
 0x433   : > { %v4312_v29 = vadd.f32 %v4274_v60, %v3997_v39 }
 0x435   : > { %v4994_v17 = vadd.f32 %v4956_v18, %v4312_v29 }
 0x437   : > { %v5420_v28 = vadd.f32 %v5382_v48, %v4994_v17 }
 0x439   : > { %5485 = vst.msk [vmem:[%s6708_s9 + $0x1c8] sm:$0xff] %vm5456_vm15, %v5420_v28 }
 0x43a   : > { %v4276_v13 = vpop.f32.mrf.mxu3 }
 0x43b   : > { %v4313_v34 = vadd.f32 %v4276_v13, %v3998_v37 }
 0x43d   : > { %v4995_v57 = vadd.f32 %v4958_v33, %v4313_v34 }
 0x43f   : > { %v5421_v41 = vadd.f32 %v5384_v35, %v4995_v57 }
 0x441   : > { %5486 = vst.msk [vmem:[%s6708_s9 + $0x1d8] sm:$0xff] %vm5456_vm15, %v5421_v41 }
 0x442   : > { %v4279_v61 = vpop.f32.mrf.mxu3 }
 0x443   : > { %v4314_v0 = vadd.f32 %v4279_v61, %v3999_v19 }
 0x445   : > { %v4996_v11 = vadd.f32 %v4961_v3, %v4314_v0 }
 0x447   : > { %v5422_v26 = vadd.f32 %v5387_v54, %v4996_v11 }
 0x449   : > { %5487 = vst.msk [vmem:[%s6708_s9 + $0x1e8] sm:$0xff] %vm5456_vm15, %v5422_v26 }
 0x44a   : > { %v4281_v55 = vpop.f32.mrf.mxu3 }
 0x44b   : > { %v4315_v51 = vadd.f32 %v4281_v55, %v4000_v20 }
 0x44d   : > { %v4997_v53 = vadd.f32 %v4963_v43, %v4315_v51 }
 0x44f   : > { %v5423_v58 = vadd.f32 %v5389_v32, %v4997_v53 }
 0x451   : > { %5488 = vst.msk [vmem:[%s6708_s9 + $0x1f8] sm:$0xff] %vm5456_vm15, %v5423_v58 }
 0x452   : > { %6559 = shalt.err (!%p6556_p3)
}
 0x453   : > { %s6597_s15 = smov 256   ;;  %s6598_s9 = smov 16  }
 0x454   : > { %6413 = dma.vmem_to_hbm [thread:$0]  (%p6677_p5), %s5503_s18, 8192, %s5505_s8, %s5490_s28, %s6597_s15, %s6597_s15, %s6598_s9  }
 0x455 PF: > { %p6419_p4 = scmp.ge.s32.totalorder %s6594_s27, 2  ;;  %s5519_s14 = sand.u32 1, %s6582_s24  }
 0x456   : > { %s5520_s16 = scalar_lea.sflag [#allocation4], %s5519_s14 }
 0x457   : > { %p6416_p7 = pnand %p6419_p4, %p6681_p6 }
 0x459   : > { %p6417_p8 = pneg %p6416_p7 }
 0x45b   : > { %6577 = dma.done.wait (%p6417_p8), %s5520_s16, 8192  }
 0x45c   : > { %6579 = vsyncadd (%p6417_p8), %s5520_s16, 4294959104  ;;  %p17_p9 = scmp.ge.s32.totalorder %s6664_s30, 4   ;;  %s8861_s24 = smov %s6586_s25 }
 0x45d   : > { %s8862_s25 = smov %s6590_s26  ;;  %s8863_s26 = smov %s6675_s10 }
 0x45e   : > { %s8864_s27 = smov %s6664_s30  ;;  %19 = sbr.rel (!%p17_p9) target bundleno = 3 (0x3), region = 94 }
 0x463   :  { %5526 = vsyncpa [#allocation4], 1 }
 0x464   :  { %5528 = vsyncpa [#allocation4 + $0x1], 1 }

</bundles_post_ra>
